<compile_context>
chip_gen: v5e
topology: v5e:2x2
jax: 0.10.0
libtpu: 0.0.40
codegen_flags: <defaults>
</compile_context>

<pallas_src>
import functools

import jax
import jax.numpy as jnp
from jax import lax
from jax.experimental import pallas as pl
from jax.experimental.pallas import tpu as pltpu

_MM_DTYPE = jnp.bfloat16     # MXU input dtype for matmuls (f32 accumulation)
_LN_EPS = 1e-5


def _dotT(a, b):
    """a @ b.T  (contract last dims of both) — bf16 operands, f32 accumulation."""
    return lax.dot_general(a.astype(_MM_DTYPE), b.astype(_MM_DTYPE),
                           (((1,), (1,)), ((), ())),
                           preferred_element_type=jnp.float32)


def _dotN(a, b):
    """a @ b — bf16 operands, f32 accumulation."""
    return lax.dot_general(a.astype(_MM_DTYPE), b.astype(_MM_DTYPE),
                           (((1,), (0,)), ((), ())),
                           preferred_element_type=jnp.float32)


def _mm(x, w):
    """x @ w.T with a PyTorch-layout weight w = (out_features, in_features)."""
    return _dotT(x, w)


def _layer_norm(x, g, b):
    mu = jnp.mean(x, axis=-1, keepdims=True)
    d = x - mu
    var = jnp.mean(d * d, axis=-1, keepdims=True)
    return d * lax.rsqrt(var + _LN_EPS) * g + b


# --------------------------- fused decoder-layer kernel ----------------------------

def _decoder_layer_kernel(
        # hoisted constants / activations (per-batch blocks for tgt/qpos/ref/mem)
        grp_ref, tgt_ref, qpos_ref, ref_ref, mem_ref,
        # self-attention params
        in_w_ref, in_b_ref, out_w_ref, out_b_ref, n1g_ref, n1b_ref,
        # deformable-attention params
        off_w_ref, off_b_ref, aw_ref, ab_ref, val_w_ref, val_b_ref,
        do_w_ref, do_b_ref, n2g_ref, n2b_ref,
        # FFN params
        f1w_ref, f1b_ref, f2w_ref, f2b_ref, n3g_ref, n3b_ref,
        # output
        o_ref,
        # scratch
        ctx_ref,
        *, Lq, D, H, K, L, scale_shapes):
    f32 = jnp.float32
    M = H                      # deformable attention uses the same head count
    dh = D // H
    MK = M * K
    MLK = M * L * K

    tgt = tgt_ref[0]           # (Lq, D) f32 — this grid step = one batch element
    qpos = qpos_ref[0]

    # -------- self attention (block-diagonal per batch): QKV + SDPA + out-proj -----
    q_in = tgt + qpos                                        # q = k = tgt + query_pos
    in_w = in_w_ref[...]                                     # (3D, D) bf16
    in_b = in_b_ref[...]                                     # (1, 3D) f32
    qk = _mm(q_in, in_w[0:2 * D]) + in_b[:, 0:2 * D]         # (Lq, 2D): [Q | K]
    v = _mm(tgt, in_w[2 * D:3 * D]) + in_b[:, 2 * D:3 * D]   # (Lq, D)

    scale = 1.0 / float(dh) ** 0.5
    for h in range(H):                                       # static, unrolled
        qh = qk[:, h * dh:(h + 1) * dh] * scale
        kh = qk[:, D + h * dh:D + (h + 1) * dh]
        vh = v[:, h * dh:(h + 1) * dh]
        s = _dotT(qh, kh)                                    # (Lq, Lq)
        e = jnp.exp(s - jnp.max(s, axis=-1, keepdims=True))
        p_h = e * pl.reciprocal(jnp.sum(e, axis=-1, keepdims=True), approx=True)
        ctx_ref[:, h * dh:(h + 1) * dh] = _dotN(p_h, vh)     # assemble (Lq, D) ctx
    # one full-contraction output projection (MXU depth = D, not dh)
    tgt2 = _mm(ctx_ref[...], out_w_ref[...]) + out_b_ref[...]
    y1 = _layer_norm(tgt + tgt2, n1g_ref[...], n1b_ref[...])

    # -------------------- multi-scale deformable attention ------------------------
    # value projection for ALL scales of this batch element in one matmul; kept bf16
    v_all = (_mm(mem_ref[0], val_w_ref[...]) + val_b_ref[...]).astype(_MM_DTYPE)

    # query -> sampling offsets (columns ordered (xy, l, m, k))
    #       -> attention logits  (columns ordered (l, m, k))
    offs = _mm(y1, off_w_ref[...]) + off_b_ref[...]          # (Lq, 2*M*L*K)
    logits = _mm(y1, aw_ref[...]) + ab_ref[...]              # (Lq, M*L*K)

    # per-head softmax over the L*K sampling locations; grouped sum / broadcast via
    # two tiny matmuls against the hoisted 0/1 group constant (lane-dense).
    grp = grp_ref[...]                                       # (MLK, M) bf16 constant
    e = jnp.exp(logits - jnp.max(logits, axis=-1, keepdims=True))
    gsum = _dotN(e, grp)                                     # (Lq, M)
    denom = _dotT(gsum, grp)                                 # (Lq, MLK)
    a_soft = e * pl.reciprocal(denom, approx=True)

    ref_xy = ref_ref[0]                                      # (Lq, 2) normalized
    ref_x = ref_xy[:, 0:1]
    ref_y = ref_xy[:, 1:2]

    head_acc = [jnp.zeros((Lq, dh), f32) for _ in range(M)]
    row0 = 0
    for l, (Hl, Wl) in enumerate(scale_shapes):              # static, unrolled
        Sl = Hl * Wl
        off_x = offs[:, l * MK:(l + 1) * MK]                 # (Lq, M*K)
        off_y = offs[:, MLK + l * MK:MLK + (l + 1) * MK]
        a_l = a_soft[:, l * MK:(l + 1) * MK]                 # (Lq, M*K)
        px = ref_x * float(Wl) + off_x                       # pixel coords
        py = ref_y * float(Hl) + off_y
        x0 = jnp.floor(px)
        y0 = jnp.floor(py)
        fx = px - x0
        fy = py - y0

        # 4 bilinear corners: flat spatial index + (bilinear * zero-pad * attention)
        # weight — the softmaxed attention weight is FOLDED in here, so the K points
        # and the attention reduction disappear into the spatial weight matrix.
        corners = []
        for dy, wy in ((0.0, 1.0 - fy), (1.0, fy)):
            for dx, wx in ((0.0, 1.0 - fx), (1.0, fx)):
                xi = x0 + dx
                yi = y0 + dy
                valid = ((xi >= 0.0) & (xi <= float(Wl - 1)) &
                         (yi >= 0.0) & (yi <= float(Hl - 1))).astype(f32)
                xc = jnp.clip(xi, 0.0, float(Wl - 1)).astype(jnp.int32)
                yc = jnp.clip(yi, 0.0, float(Hl - 1)).astype(jnp.int32)
                flat = yc * Wl + xc                          # (Lq, M*K) int32
                corners.append((flat, wy * wx * valid * a_l))

        lane = lax.broadcasted_iota(jnp.int32, (Lq, Sl), 1)
        v_l = v_all[row0:row0 + Sl]                          # (Sl, D) bf16
        for m in range(M):
            # per-(scale, head) folded spatial weights: (Lq, Sl)
            w_m = jnp.zeros((Lq, Sl), f32)
            for k in range(K):
                c = m * K + k
                for flat, wgt in corners:
                    w_m = w_m + (lane == flat[:, c:c + 1]).astype(f32) * wgt[:, c:c + 1]
            # gather + bilinear blend + attention reduction for THIS head's dh cols
            head_acc[m] = head_acc[m] + _dotN(w_m, v_l[:, m * dh:(m + 1) * dh])
        row0 += Sl

    for m in range(M):
        ctx_ref[:, m * dh:(m + 1) * dh] = head_acc[m]
    tgt2 = _mm(ctx_ref[...], do_w_ref[...]) + do_b_ref[...]  # W_m output proj (full D)
    y2 = _layer_norm(y1 + tgt2, n2g_ref[...], n2b_ref[...])

    # --------------------------- feed-forward + norm3 -----------------------------
    hdn = jnp.maximum(_mm(y2, f1w_ref[...]) + f1b_ref[...], 0.0)
    tgt2 = _mm(hdn, f2w_ref[...]) + f2b_ref[...]
    o_ref[0] = _layer_norm(y2 + tgt2, n3g_ref[...], n3b_ref[...])


# ----------------------------------- wrapper ---------------------------------------

def _decoder_layer_box(p, tgt, memory, ref_point, poses, query_pos,
                       n_heads, k_points, n_scales):
    Lq, B, D = tgt.shape
    H, K, L = n_heads, k_points, n_scales
    dh = D // H
    MLK = H * L * K
    d_ff = p['ffn1_w'].shape[0]
    scale_shapes = tuple((int(m.shape[1]), int(m.shape[2])) for m in memory)
    S_total = sum(h * w for h, w in scale_shapes)

    # batch-outermost row order (block-diagonal self-attention, batch grid axis)
    tgt_b = jnp.transpose(tgt, (1, 0, 2))                    # (B, Lq, D)
    qpos_b = jnp.transpose(query_pos, (1, 0, 2))             # (B, Lq, D)
    ref_b = jnp.transpose(ref_point, (1, 0, 2))              # (B, Lq, 2)

    # memory + positional embeddings, all scales flattened per batch, in bf16
    mem_pe = jnp.concatenate(
        [(m + pe).reshape(B, hw[0] * hw[1], D)
         for m, pe, hw in zip(memory, poses, scale_shapes)], axis=1).astype(jnp.bfloat16)

    # hoisted static per-head group mask for the grouped softmax (columns (l, m, k))
    col = jnp.arange(MLK)
    grp = ((col[:, None] // K) % H == jnp.arange(H)[None, :]).astype(jnp.bfloat16)

    bf = lambda w: w.astype(jnp.bfloat16)

    kernel = functools.partial(
        _decoder_layer_kernel, Lq=Lq, D=D, H=H, K=K, L=L, scale_shapes=scale_shapes)

    args = (grp, tgt_b, qpos_b, ref_b, mem_pe,
            bf(p['attn_in_w']), p['attn_in_b'], bf(p['attn_out_w']), p['attn_out_b'],
            p['n1_g'], p['n1_b'],
            bf(p['off_w']), p['off_b'], bf(p['a_w']), p['a_b'],
            bf(p['val_w']), p['val_b'], bf(p['do_w']), p['do_b'],
            p['n2_g'], p['n2_b'],
            bf(p['ffn1_w']), p['ffn1_b'], bf(p['ffn2_w']), p['ffn2_b'],
            p['n3_g'], p['n3_b'])

    def bspec(a, batched):
        shape = tuple(a.shape)
        nd = len(shape)
        if batched:
            return pl.BlockSpec((1,) + shape[1:], lambda b, nd=nd: (b,) + (0,) * (nd - 1))
        return pl.BlockSpec(shape, lambda b, nd=nd: (0,) * nd)

    batched_idx = {1, 2, 3, 4}   # tgt, qpos, ref_point, mem_pe
    in_specs = [bspec(a, i in batched_idx) for i, a in enumerate(args)]
    out_spec = pl.BlockSpec((1, Lq, D), lambda b: (b, 0, 0))

    # advisory cost estimate (per feedback: set it once the kernel is gridded)
    flops = B * (2 * Lq * D * 3 * D + H * 2 * Lq * Lq * dh * 2 + 2 * Lq * D * D
                 + 2 * S_total * D * D + 2 * Lq * D * 3 * MLK
                 + 2 * Lq * S_total * D + 2 * Lq * D * D + 4 * Lq * D * d_ff)
    transcendentals = B * (H * Lq * Lq + Lq * MLK)
    bytes_accessed = sum(int(a.size) * a.dtype.itemsize for a in args) + B * Lq * D * 4

    out = pl.pallas_call(
        kernel,
        out_shape=jax.ShapeDtypeStruct((B, Lq, D), jnp.float32),
        grid_spec=pltpu.PrefetchScalarGridSpec(
            num_scalar_prefetch=0,
            grid=(B,),
            in_specs=in_specs,
            out_specs=out_spec,
            scratch_shapes=[pltpu.VMEM((Lq, D), jnp.float32)]),
        compiler_params=pltpu.CompilerParams(
            dimension_semantics=("parallel",),
            vmem_limit_bytes=32 * 1024 * 1024),
        cost_estimate=pl.CostEstimate(flops=flops, transcendentals=transcendentals,
                                      bytes_accessed=bytes_accessed),
    )(*args)
    return jnp.transpose(out, (1, 0, 2))                     # (B, Lq, D) -> (Lq, B, D)


decoder_layer_box = jax.jit(
    _decoder_layer_box, static_argnames=('n_heads', 'k_points', 'n_scales'))


# ----------------------------------- params ----------------------------------------

def init_params(key, d_model, n_heads, d_ff, k_points, n_scales):
    ks = iter(jax.random.split(key, 24))

    def lin(out_d, in_d):
        kw, kb = jax.random.split(next(ks))
        w = jax.random.normal(kw, (out_d, in_d), jnp.float32) * 0.05
        b = jax.random.normal(kb, (1, out_d), jnp.float32) * 0.05
        return w, b

    p = {}
    p['attn_in_w'], p['attn_in_b'] = lin(3 * d_model, d_model)
    p['attn_out_w'], p['attn_out_b'] = lin(d_model, d_model)
    # offset proj output columns ordered (xy, scale, head, point)
    p['off_w'], p['off_b'] = lin(2 * n_heads * n_scales * k_points, d_model)
    # attention-logit proj output columns ordered (scale, head, point)
    p['a_w'], p['a_b'] = lin(n_heads * n_scales * k_points, d_model)
    p['val_w'], p['val_b'] = lin(d_model, d_model)
    p['do_w'], p['do_b'] = lin(d_model, d_model)
    p['ffn1_w'], p['ffn1_b'] = lin(d_ff, d_model)
    p['ffn2_w'], p['ffn2_b'] = lin(d_model, d_ff)
    for i in (1, 2, 3):
        kg, kb = jax.random.split(next(ks))
        p[f'n{i}_g'] = 1.0 + 0.05 * jax.random.normal(kg, (1, d_model), jnp.float32)
        p[f'n{i}_b'] = 0.05 * jax.random.normal(kb, (1, d_model), jnp.float32)
    return p


# ------------------------------------ main ------------------------------------------

if __name__ == "__main__":
    D_MODEL, N_HEADS, D_FF = 32, 4, 64
    K_POINTS, N_SCALES = 2, 2
    LAST_H = LAST_W = 4
    LQ, B = 8, 2

    root = jax.random.PRNGKey(0)
    kp, kt, kq, kr, km = jax.random.split(root, 5)

    params = init_params(kp, D_MODEL, N_HEADS, D_FF, K_POINTS, N_SCALES)

    tgt = jax.random.normal(kt, (LQ, B, D_MODEL), jnp.float32)
    query_pos = jax.random.normal(kq, (LQ, B, D_MODEL), jnp.float32)
    ref_point = jax.random.uniform(kr, (LQ, B, 2), jnp.float32)

    memory, poses = [], []
    mkeys = jax.random.split(km, 2 * N_SCALES)
    for l in range(N_SCALES):
        Hl, Wl = LAST_H * (2 ** l), LAST_W * (2 ** l)
        memory.append(jax.random.normal(mkeys[2 * l], (B, Hl, Wl, D_MODEL), jnp.float32))
        poses.append(jax.random.normal(mkeys[2 * l + 1], (B, Hl, Wl, D_MODEL), jnp.float32))

    out = decoder_layer_box(params, tgt, memory, ref_point, poses, query_pos,
                            n_heads=N_HEADS, k_points=K_POINTS, n_scales=N_SCALES)
    out = jax.block_until_ready(out)
    assert out.shape == (LQ, B, D_MODEL)
    assert bool(jnp.all(jnp.isfinite(out)))
    print("KERNEL_OK")
</pallas_src>

<mosaic_0001>
module attributes {stable_mosaic.version = 11 : i64} {
  func.func @_decoder_layer_kernel(%arg0: i32, %arg1: memref<16x4xbf16, #tpu.memory_space<vmem>>, %arg2: memref<1x8x32xf32, #tpu.memory_space<vmem>>, %arg3: memref<1x8x32xf32, #tpu.memory_space<vmem>>, %arg4: memref<1x8x2xf32, #tpu.memory_space<vmem>>, %arg5: memref<1x80x32xbf16, #tpu.memory_space<vmem>>, %arg6: memref<96x32xbf16, #tpu.memory_space<vmem>>, %arg7: memref<1x96xf32, #tpu.memory_space<vmem>>, %arg8: memref<32x32xbf16, #tpu.memory_space<vmem>>, %arg9: memref<1x32xf32, #tpu.memory_space<vmem>>, %arg10: memref<1x32xf32, #tpu.memory_space<vmem>>, %arg11: memref<1x32xf32, #tpu.memory_space<vmem>>, %arg12: memref<32x32xbf16, #tpu.memory_space<vmem>>, %arg13: memref<1x32xf32, #tpu.memory_space<vmem>>, %arg14: memref<16x32xbf16, #tpu.memory_space<vmem>>, %arg15: memref<1x16xf32, #tpu.memory_space<vmem>>, %arg16: memref<32x32xbf16, #tpu.memory_space<vmem>>, %arg17: memref<1x32xf32, #tpu.memory_space<vmem>>, %arg18: memref<32x32xbf16, #tpu.memory_space<vmem>>, %arg19: memref<1x32xf32, #tpu.memory_space<vmem>>, %arg20: memref<1x32xf32, #tpu.memory_space<vmem>>, %arg21: memref<1x32xf32, #tpu.memory_space<vmem>>, %arg22: memref<64x32xbf16, #tpu.memory_space<vmem>>, %arg23: memref<1x64xf32, #tpu.memory_space<vmem>>, %arg24: memref<32x64xbf16, #tpu.memory_space<vmem>>, %arg25: memref<1x32xf32, #tpu.memory_space<vmem>>, %arg26: memref<1x32xf32, #tpu.memory_space<vmem>>, %arg27: memref<1x32xf32, #tpu.memory_space<vmem>>, %arg28: memref<1x8x32xf32, #tpu.memory_space<vmem>>, %arg29: memref<8x32xf32, #tpu.memory_space<vmem>>) attributes {dimension_semantics = [#tpu.dimension_semantics<parallel>], iteration_bounds = array<i64: 2>, scalar_prefetch = 0 : i64, scratch_operands = 1 : i64, tpu.core_type = #tpu.core_type<tc>, window_params = [{pipeline_mode = #tpu.pipeline_mode<synchronous>, transform_indices = @transform_0, window_bounds = array<i64: 16, 4>}, {transform_indices = @transform_1, window_bounds = array<i64: 1, 8, 32>}, {transform_indices = @transform_2, window_bounds = array<i64: 1, 8, 32>}, {transform_indices = @transform_3, window_bounds = array<i64: 1, 8, 2>}, {transform_indices = @transform_4, window_bounds = array<i64: 1, 80, 32>}, {pipeline_mode = #tpu.pipeline_mode<synchronous>, transform_indices = @transform_5, window_bounds = array<i64: 96, 32>}, {pipeline_mode = #tpu.pipeline_mode<synchronous>, transform_indices = @transform_6, window_bounds = array<i64: 1, 96>}, {pipeline_mode = #tpu.pipeline_mode<synchronous>, transform_indices = @transform_7, window_bounds = array<i64: 32, 32>}, {pipeline_mode = #tpu.pipeline_mode<synchronous>, transform_indices = @transform_8, window_bounds = array<i64: 1, 32>}, {pipeline_mode = #tpu.pipeline_mode<synchronous>, transform_indices = @transform_9, window_bounds = array<i64: 1, 32>}, {pipeline_mode = #tpu.pipeline_mode<synchronous>, transform_indices = @transform_10, window_bounds = array<i64: 1, 32>}, {pipeline_mode = #tpu.pipeline_mode<synchronous>, transform_indices = @transform_11, window_bounds = array<i64: 32, 32>}, {pipeline_mode = #tpu.pipeline_mode<synchronous>, transform_indices = @transform_12, window_bounds = array<i64: 1, 32>}, {pipeline_mode = #tpu.pipeline_mode<synchronous>, transform_indices = @transform_13, window_bounds = array<i64: 16, 32>}, {pipeline_mode = #tpu.pipeline_mode<synchronous>, transform_indices = @transform_14, window_bounds = array<i64: 1, 16>}, {pipeline_mode = #tpu.pipeline_mode<synchronous>, transform_indices = @transform_15, window_bounds = array<i64: 32, 32>}, {pipeline_mode = #tpu.pipeline_mode<synchronous>, transform_indices = @transform_16, window_bounds = array<i64: 1, 32>}, {pipeline_mode = #tpu.pipeline_mode<synchronous>, transform_indices = @transform_17, window_bounds = array<i64: 32, 32>}, {pipeline_mode = #tpu.pipeline_mode<synchronous>, transform_indices = @transform_18, window_bounds = array<i64: 1, 32>}, {pipeline_mode = #tpu.pipeline_mode<synchronous>, transform_indices = @transform_19, window_bounds = array<i64: 1, 32>}, {pipeline_mode = #tpu.pipeline_mode<synchronous>, transform_indices = @transform_20, window_bounds = array<i64: 1, 32>}, {pipeline_mode = #tpu.pipeline_mode<synchronous>, transform_indices = @transform_21, window_bounds = array<i64: 64, 32>}, {pipeline_mode = #tpu.pipeline_mode<synchronous>, transform_indices = @transform_22, window_bounds = array<i64: 1, 64>}, {pipeline_mode = #tpu.pipeline_mode<synchronous>, transform_indices = @transform_23, window_bounds = array<i64: 32, 64>}, {pipeline_mode = #tpu.pipeline_mode<synchronous>, transform_indices = @transform_24, window_bounds = array<i64: 1, 32>}, {pipeline_mode = #tpu.pipeline_mode<synchronous>, transform_indices = @transform_25, window_bounds = array<i64: 1, 32>}, {pipeline_mode = #tpu.pipeline_mode<synchronous>, transform_indices = @transform_26, window_bounds = array<i64: 1, 32>}, {transform_indices = @transform_27, window_bounds = array<i64: 1, 8, 32>}]} {
    %c0 = arith.constant 0 : index
    %c0_0 = arith.constant 0 : index
    %c0_1 = arith.constant 0 : index
    %0 = vector.load %arg2[%c0, %c0_0, %c0_1] : memref<1x8x32xf32, #tpu.memory_space<vmem>>, vector<1x8x32xf32>
    %1 = vector.shape_cast %0 : vector<1x8x32xf32> to vector<8x32xf32>
    %c0_2 = arith.constant 0 : index
    %c0_3 = arith.constant 0 : index
    %c0_4 = arith.constant 0 : index
    %2 = vector.load %arg3[%c0_2, %c0_3, %c0_4] : memref<1x8x32xf32, #tpu.memory_space<vmem>>, vector<1x8x32xf32>
    %3 = vector.shape_cast %2 : vector<1x8x32xf32> to vector<8x32xf32>
    %4 = arith.addf %1, %3 : vector<8x32xf32>
    %c0_5 = arith.constant 0 : index
    %c0_6 = arith.constant 0 : index
    %5 = vector.load %arg6[%c0_5, %c0_6] : memref<96x32xbf16, #tpu.memory_space<vmem>>, vector<96x32xbf16>
    %c0_7 = arith.constant 0 : index
    %c0_8 = arith.constant 0 : index
    %6 = vector.load %arg7[%c0_7, %c0_8] : memref<1x96xf32, #tpu.memory_space<vmem>>, vector<1x96xf32>
    %7 = vector.extract_strided_slice %5 {offsets = [0, 0], sizes = [64, 32], strides = [1, 1]} : vector<96x32xbf16> to vector<64x32xbf16>
    %8 = arith.truncf %4 : vector<8x32xf32> to vector<8x32xbf16>
    %cst = arith.constant dense<0.000000e+00> : vector<8x64xf32>
    %9 = tpu.matmul %8, %7, %cst {dimension_numbers = #tpu.dot_dimension_numbers<[1], [1], [0], [0], [0, 0, 1, 0], [], []>} : vector<8x32xbf16>, vector<64x32xbf16>, vector<8x64xf32> -> vector<8x64xf32>
    %10 = vector.extract_strided_slice %6 {offsets = [0, 0], sizes = [1, 64], strides = [1, 1]} : vector<1x96xf32> to vector<1x64xf32>
    %11 = vector.broadcast %10 : vector<1x64xf32> to vector<8x64xf32>
    %12 = arith.addf %9, %11 : vector<8x64xf32>
    %13 = vector.extract_strided_slice %5 {offsets = [64, 0], sizes = [32, 32], strides = [1, 1]} : vector<96x32xbf16> to vector<32x32xbf16>
    %14 = arith.truncf %1 : vector<8x32xf32> to vector<8x32xbf16>
    %cst_9 = arith.constant dense<0.000000e+00> : vector<8x32xf32>
    %15 = tpu.matmul %14, %13, %cst_9 {dimension_numbers = #tpu.dot_dimension_numbers<[1], [1], [0], [0], [0, 0, 1, 0], [], []>} : vector<8x32xbf16>, vector<32x32xbf16>, vector<8x32xf32> -> vector<8x32xf32>
    %16 = vector.extract_strided_slice %6 {offsets = [0, 64], sizes = [1, 32], strides = [1, 1]} : vector<1x96xf32> to vector<1x32xf32>
    %17 = vector.broadcast %16 : vector<1x32xf32> to vector<8x32xf32>
    %18 = arith.addf %15, %17 : vector<8x32xf32>
    %19 = vector.extract_strided_slice %12 {offsets = [0, 0], sizes = [8, 8], strides = [1, 1]} : vector<8x64xf32> to vector<8x8xf32>
    %cst_10 = arith.constant 0.353553385 : f32
    %20 = vector.broadcast %cst_10 : f32 to vector<8x8xf32>
    %21 = arith.mulf %19, %20 : vector<8x8xf32>
    %22 = vector.extract_strided_slice %12 {offsets = [0, 32], sizes = [8, 8], strides = [1, 1]} : vector<8x64xf32> to vector<8x8xf32>
    %23 = vector.extract_strided_slice %18 {offsets = [0, 0], sizes = [8, 8], strides = [1, 1]} : vector<8x32xf32> to vector<8x8xf32>
    %24 = arith.truncf %21 : vector<8x8xf32> to vector<8x8xbf16>
    %25 = arith.truncf %22 : vector<8x8xf32> to vector<8x8xbf16>
    %cst_11 = arith.constant dense<0.000000e+00> : vector<8x8xf32>
    %26 = tpu.matmul %24, %25, %cst_11 {dimension_numbers = #tpu.dot_dimension_numbers<[1], [1], [0], [0], [0, 0, 1, 0], [], []>} : vector<8x8xbf16>, vector<8x8xbf16>, vector<8x8xf32> -> vector<8x8xf32>
    %cst_12 = arith.constant dense<0xFF800000> : vector<8xf32>
    %27 = vector.multi_reduction <maximumf>, %26, %cst_12 [1] : vector<8x8xf32> to vector<8xf32>
    %28 = vector.shape_cast %27 : vector<8xf32> to vector<8x1xf32>
    %29 = vector.broadcast %28 : vector<8x1xf32> to vector<8x8xf32>
    %30 = arith.subf %26, %29 : vector<8x8xf32>
    %31 = math.exp %30 : vector<8x8xf32>
    %cst_13 = arith.constant dense<0.000000e+00> : vector<8xf32>
    %32 = vector.multi_reduction <add>, %31, %cst_13 [1] : vector<8x8xf32> to vector<8xf32>
    %33 = vector.shape_cast %32 : vector<8xf32> to vector<8x1xf32>
    %34 = tpu.reciprocal %33 {approx = true} : vector<8x1xf32> -> vector<8x1xf32>
    %35 = vector.broadcast %34 : vector<8x1xf32> to vector<8x8xf32>
    %36 = arith.mulf %31, %35 : vector<8x8xf32>
    %37 = arith.truncf %36 : vector<8x8xf32> to vector<8x8xbf16>
    %38 = arith.truncf %23 : vector<8x8xf32> to vector<8x8xbf16>
    %cst_14 = arith.constant dense<0.000000e+00> : vector<8x8xf32>
    %39 = tpu.matmul %37, %38, %cst_14 {dimension_numbers = #tpu.dot_dimension_numbers<[1], [0], [0], [1], [0, 0, 1, 1], [], []>} : vector<8x8xbf16>, vector<8x8xbf16>, vector<8x8xf32> -> vector<8x8xf32>
    %c0_15 = arith.constant 0 : index
    %c0_16 = arith.constant 0 : index
    %40 = vector.load %arg29[%c0_15, %c0_16] : memref<8x32xf32, #tpu.memory_space<vmem>>, vector<8x8xf32>
    tpu.vector_store %arg29[%c0_15, %c0_16], %39 {strides = array<i32>} : memref<8x32xf32, #tpu.memory_space<vmem>>, vector<8x8xf32>,
    %41 = vector.extract_strided_slice %12 {offsets = [0, 8], sizes = [8, 8], strides = [1, 1]} : vector<8x64xf32> to vector<8x8xf32>
    %cst_17 = arith.constant 0.353553385 : f32
    %42 = vector.broadcast %cst_17 : f32 to vector<8x8xf32>
    %43 = arith.mulf %41, %42 : vector<8x8xf32>
    %44 = vector.extract_strided_slice %12 {offsets = [0, 40], sizes = [8, 8], strides = [1, 1]} : vector<8x64xf32> to vector<8x8xf32>
    %45 = vector.extract_strided_slice %18 {offsets = [0, 8], sizes = [8, 8], strides = [1, 1]} : vector<8x32xf32> to vector<8x8xf32>
    %46 = arith.truncf %43 : vector<8x8xf32> to vector<8x8xbf16>
    %47 = arith.truncf %44 : vector<8x8xf32> to vector<8x8xbf16>
    %cst_18 = arith.constant dense<0.000000e+00> : vector<8x8xf32>
    %48 = tpu.matmul %46, %47, %cst_18 {dimension_numbers = #tpu.dot_dimension_numbers<[1], [1], [0], [0], [0, 0, 1, 0], [], []>} : vector<8x8xbf16>, vector<8x8xbf16>, vector<8x8xf32> -> vector<8x8xf32>
    %cst_19 = arith.constant dense<0xFF800000> : vector<8xf32>
    %49 = vector.multi_reduction <maximumf>, %48, %cst_19 [1] : vector<8x8xf32> to vector<8xf32>
    %50 = vector.shape_cast %49 : vector<8xf32> to vector<8x1xf32>
    %51 = vector.broadcast %50 : vector<8x1xf32> to vector<8x8xf32>
    %52 = arith.subf %48, %51 : vector<8x8xf32>
    %53 = math.exp %52 : vector<8x8xf32>
    %cst_20 = arith.constant dense<0.000000e+00> : vector<8xf32>
    %54 = vector.multi_reduction <add>, %53, %cst_20 [1] : vector<8x8xf32> to vector<8xf32>
    %55 = vector.shape_cast %54 : vector<8xf32> to vector<8x1xf32>
    %56 = tpu.reciprocal %55 {approx = true} : vector<8x1xf32> -> vector<8x1xf32>
    %57 = vector.broadcast %56 : vector<8x1xf32> to vector<8x8xf32>
    %58 = arith.mulf %53, %57 : vector<8x8xf32>
    %59 = arith.truncf %58 : vector<8x8xf32> to vector<8x8xbf16>
    %60 = arith.truncf %45 : vector<8x8xf32> to vector<8x8xbf16>
    %cst_21 = arith.constant dense<0.000000e+00> : vector<8x8xf32>
    %61 = tpu.matmul %59, %60, %cst_21 {dimension_numbers = #tpu.dot_dimension_numbers<[1], [0], [0], [1], [0, 0, 1, 1], [], []>} : vector<8x8xbf16>, vector<8x8xbf16>, vector<8x8xf32> -> vector<8x8xf32>
    %c0_22 = arith.constant 0 : index
    %c8 = arith.constant 8 : index
    %62 = vector.load %arg29[%c0_22, %c8] : memref<8x32xf32, #tpu.memory_space<vmem>>, vector<8x8xf32>
    tpu.vector_store %arg29[%c0_22, %c8], %61 {strides = array<i32>} : memref<8x32xf32, #tpu.memory_space<vmem>>, vector<8x8xf32>,
    %63 = vector.extract_strided_slice %12 {offsets = [0, 16], sizes = [8, 8], strides = [1, 1]} : vector<8x64xf32> to vector<8x8xf32>
    %cst_23 = arith.constant 0.353553385 : f32
    %64 = vector.broadcast %cst_23 : f32 to vector<8x8xf32>
    %65 = arith.mulf %63, %64 : vector<8x8xf32>
    %66 = vector.extract_strided_slice %12 {offsets = [0, 48], sizes = [8, 8], strides = [1, 1]} : vector<8x64xf32> to vector<8x8xf32>
    %67 = vector.extract_strided_slice %18 {offsets = [0, 16], sizes = [8, 8], strides = [1, 1]} : vector<8x32xf32> to vector<8x8xf32>
    %68 = arith.truncf %65 : vector<8x8xf32> to vector<8x8xbf16>
    %69 = arith.truncf %66 : vector<8x8xf32> to vector<8x8xbf16>
    %cst_24 = arith.constant dense<0.000000e+00> : vector<8x8xf32>
    %70 = tpu.matmul %68, %69, %cst_24 {dimension_numbers = #tpu.dot_dimension_numbers<[1], [1], [0], [0], [0, 0, 1, 0], [], []>} : vector<8x8xbf16>, vector<8x8xbf16>, vector<8x8xf32> -> vector<8x8xf32>
    %cst_25 = arith.constant dense<0xFF800000> : vector<8xf32>
    %71 = vector.multi_reduction <maximumf>, %70, %cst_25 [1] : vector<8x8xf32> to vector<8xf32>
    %72 = vector.shape_cast %71 : vector<8xf32> to vector<8x1xf32>
    %73 = vector.broadcast %72 : vector<8x1xf32> to vector<8x8xf32>
    %74 = arith.subf %70, %73 : vector<8x8xf32>
    %75 = math.exp %74 : vector<8x8xf32>
    %cst_26 = arith.constant dense<0.000000e+00> : vector<8xf32>
    %76 = vector.multi_reduction <add>, %75, %cst_26 [1] : vector<8x8xf32> to vector<8xf32>
    %77 = vector.shape_cast %76 : vector<8xf32> to vector<8x1xf32>
    %78 = tpu.reciprocal %77 {approx = true} : vector<8x1xf32> -> vector<8x1xf32>
    %79 = vector.broadcast %78 : vector<8x1xf32> to vector<8x8xf32>
    %80 = arith.mulf %75, %79 : vector<8x8xf32>
    %81 = arith.truncf %80 : vector<8x8xf32> to vector<8x8xbf16>
    %82 = arith.truncf %67 : vector<8x8xf32> to vector<8x8xbf16>
    %cst_27 = arith.constant dense<0.000000e+00> : vector<8x8xf32>
    %83 = tpu.matmul %81, %82, %cst_27 {dimension_numbers = #tpu.dot_dimension_numbers<[1], [0], [0], [1], [0, 0, 1, 1], [], []>} : vector<8x8xbf16>, vector<8x8xbf16>, vector<8x8xf32> -> vector<8x8xf32>
    %c0_28 = arith.constant 0 : index
    %c16 = arith.constant 16 : index
    %84 = vector.load %arg29[%c0_28, %c16] : memref<8x32xf32, #tpu.memory_space<vmem>>, vector<8x8xf32>
    tpu.vector_store %arg29[%c0_28, %c16], %83 {strides = array<i32>} : memref<8x32xf32, #tpu.memory_space<vmem>>, vector<8x8xf32>,
    %85 = vector.extract_strided_slice %12 {offsets = [0, 24], sizes = [8, 8], strides = [1, 1]} : vector<8x64xf32> to vector<8x8xf32>
    %cst_29 = arith.constant 0.353553385 : f32
    %86 = vector.broadcast %cst_29 : f32 to vector<8x8xf32>
    %87 = arith.mulf %85, %86 : vector<8x8xf32>
    %88 = vector.extract_strided_slice %12 {offsets = [0, 56], sizes = [8, 8], strides = [1, 1]} : vector<8x64xf32> to vector<8x8xf32>
    %89 = vector.extract_strided_slice %18 {offsets = [0, 24], sizes = [8, 8], strides = [1, 1]} : vector<8x32xf32> to vector<8x8xf32>
    %90 = arith.truncf %87 : vector<8x8xf32> to vector<8x8xbf16>
    %91 = arith.truncf %88 : vector<8x8xf32> to vector<8x8xbf16>
    %cst_30 = arith.constant dense<0.000000e+00> : vector<8x8xf32>
    %92 = tpu.matmul %90, %91, %cst_30 {dimension_numbers = #tpu.dot_dimension_numbers<[1], [1], [0], [0], [0, 0, 1, 0], [], []>} : vector<8x8xbf16>, vector<8x8xbf16>, vector<8x8xf32> -> vector<8x8xf32>
    %cst_31 = arith.constant dense<0xFF800000> : vector<8xf32>
    %93 = vector.multi_reduction <maximumf>, %92, %cst_31 [1] : vector<8x8xf32> to vector<8xf32>
    %94 = vector.shape_cast %93 : vector<8xf32> to vector<8x1xf32>
    %95 = vector.broadcast %94 : vector<8x1xf32> to vector<8x8xf32>
    %96 = arith.subf %92, %95 : vector<8x8xf32>
    %97 = math.exp %96 : vector<8x8xf32>
    %cst_32 = arith.constant dense<0.000000e+00> : vector<8xf32>
    %98 = vector.multi_reduction <add>, %97, %cst_32 [1] : vector<8x8xf32> to vector<8xf32>
    %99 = vector.shape_cast %98 : vector<8xf32> to vector<8x1xf32>
    %100 = tpu.reciprocal %99 {approx = true} : vector<8x1xf32> -> vector<8x1xf32>
    %101 = vector.broadcast %100 : vector<8x1xf32> to vector<8x8xf32>
    %102 = arith.mulf %97, %101 : vector<8x8xf32>
    %103 = arith.truncf %102 : vector<8x8xf32> to vector<8x8xbf16>
    %104 = arith.truncf %89 : vector<8x8xf32> to vector<8x8xbf16>
    %cst_33 = arith.constant dense<0.000000e+00> : vector<8x8xf32>
    %105 = tpu.matmul %103, %104, %cst_33 {dimension_numbers = #tpu.dot_dimension_numbers<[1], [0], [0], [1], [0, 0, 1, 1], [], []>} : vector<8x8xbf16>, vector<8x8xbf16>, vector<8x8xf32> -> vector<8x8xf32>
    %c0_34 = arith.constant 0 : index
    %c24 = arith.constant 24 : index
    %106 = vector.load %arg29[%c0_34, %c24] : memref<8x32xf32, #tpu.memory_space<vmem>>, vector<8x8xf32>
    tpu.vector_store %arg29[%c0_34, %c24], %105 {strides = array<i32>} : memref<8x32xf32, #tpu.memory_space<vmem>>, vector<8x8xf32>,
    %c0_35 = arith.constant 0 : index
    %c0_36 = arith.constant 0 : index
    %107 = vector.load %arg29[%c0_35, %c0_36] : memref<8x32xf32, #tpu.memory_space<vmem>>, vector<8x32xf32>
    %c0_37 = arith.constant 0 : index
    %c0_38 = arith.constant 0 : index
    %108 = vector.load %arg8[%c0_37, %c0_38] : memref<32x32xbf16, #tpu.memory_space<vmem>>, vector<32x32xbf16>
    %109 = arith.truncf %107 : vector<8x32xf32> to vector<8x32xbf16>
    %cst_39 = arith.constant dense<0.000000e+00> : vector<8x32xf32>
    %110 = tpu.matmul %109, %108, %cst_39 {dimension_numbers = #tpu.dot_dimension_numbers<[1], [1], [0], [0], [0, 0, 1, 0], [], []>} : vector<8x32xbf16>, vector<32x32xbf16>, vector<8x32xf32> -> vector<8x32xf32>
    %c0_40 = arith.constant 0 : index
    %c0_41 = arith.constant 0 : index
    %111 = vector.load %arg9[%c0_40, %c0_41] : memref<1x32xf32, #tpu.memory_space<vmem>>, vector<1x32xf32>
    %112 = vector.broadcast %111 : vector<1x32xf32> to vector<8x32xf32>
    %113 = arith.addf %110, %112 : vector<8x32xf32>
    %114 = arith.addf %1, %113 : vector<8x32xf32>
    %c0_42 = arith.constant 0 : index
    %c0_43 = arith.constant 0 : index
    %115 = vector.load %arg10[%c0_42, %c0_43] : memref<1x32xf32, #tpu.memory_space<vmem>>, vector<1x32xf32>
    %c0_44 = arith.constant 0 : index
    %c0_45 = arith.constant 0 : index
    %116 = vector.load %arg11[%c0_44, %c0_45] : memref<1x32xf32, #tpu.memory_space<vmem>>, vector<1x32xf32>
    %cst_46 = arith.constant dense<0.000000e+00> : vector<8xf32>
    %117 = vector.multi_reduction <add>, %114, %cst_46 [1] : vector<8x32xf32> to vector<8xf32>
    %118 = vector.shape_cast %117 : vector<8xf32> to vector<8x1xf32>
    %cst_47 = arith.constant 3.200000e+01 : f32
    %119 = vector.broadcast %cst_47 : f32 to vector<8x1xf32>
    %120 = arith.divf %118, %119 : vector<8x1xf32>
    %121 = vector.broadcast %120 : vector<8x1xf32> to vector<8x32xf32>
    %122 = arith.subf %114, %121 : vector<8x32xf32>
    %123 = arith.mulf %122, %122 : vector<8x32xf32>
    %cst_48 = arith.constant dense<0.000000e+00> : vector<8xf32>
    %124 = vector.multi_reduction <add>, %123, %cst_48 [1] : vector<8x32xf32> to vector<8xf32>
    %125 = vector.shape_cast %124 : vector<8xf32> to vector<8x1xf32>
    %cst_49 = arith.constant 3.200000e+01 : f32
    %126 = vector.broadcast %cst_49 : f32 to vector<8x1xf32>
    %127 = arith.divf %125, %126 : vector<8x1xf32>
    %cst_50 = arith.constant 9.99999974E-6 : f32
    %128 = vector.broadcast %cst_50 : f32 to vector<8x1xf32>
    %129 = arith.addf %127, %128 : vector<8x1xf32>
    %130 = math.rsqrt %129 : vector<8x1xf32>
    %131 = vector.broadcast %130 : vector<8x1xf32> to vector<8x32xf32>
    %132 = arith.mulf %122, %131 : vector<8x32xf32>
    %133 = vector.broadcast %115 : vector<1x32xf32> to vector<8x32xf32>
    %134 = arith.mulf %132, %133 : vector<8x32xf32>
    %135 = vector.broadcast %116 : vector<1x32xf32> to vector<8x32xf32>
    %136 = arith.addf %134, %135 : vector<8x32xf32>
    %c0_51 = arith.constant 0 : index
    %c0_52 = arith.constant 0 : index
    %c0_53 = arith.constant 0 : index
    %137 = vector.load %arg5[%c0_51, %c0_52, %c0_53] : memref<1x80x32xbf16, #tpu.memory_space<vmem>>, vector<1x80x32xbf16>
    %138 = vector.shape_cast %137 : vector<1x80x32xbf16> to vector<80x32xbf16>
    %c0_54 = arith.constant 0 : index
    %c0_55 = arith.constant 0 : index
    %139 = vector.load %arg16[%c0_54, %c0_55] : memref<32x32xbf16, #tpu.memory_space<vmem>>, vector<32x32xbf16>
    %cst_56 = arith.constant dense<0.000000e+00> : vector<80x32xf32>
    %140 = tpu.matmul %138, %139, %cst_56 {dimension_numbers = #tpu.dot_dimension_numbers<[1], [1], [0], [0], [0, 0, 1, 0], [], []>} : vector<80x32xbf16>, vector<32x32xbf16>, vector<80x32xf32> -> vector<80x32xf32>
    %c0_57 = arith.constant 0 : index
    %c0_58 = arith.constant 0 : index
    %141 = vector.load %arg17[%c0_57, %c0_58] : memref<1x32xf32, #tpu.memory_space<vmem>>, vector<1x32xf32>
    %142 = vector.broadcast %141 : vector<1x32xf32> to vector<80x32xf32>
    %143 = arith.addf %140, %142 : vector<80x32xf32>
    %144 = arith.truncf %143 : vector<80x32xf32> to vector<80x32xbf16>
    %c0_59 = arith.constant 0 : index
    %c0_60 = arith.constant 0 : index
    %145 = vector.load %arg12[%c0_59, %c0_60] : memref<32x32xbf16, #tpu.memory_space<vmem>>, vector<32x32xbf16>
    %146 = arith.truncf %136 : vector<8x32xf32> to vector<8x32xbf16>
    %cst_61 = arith.constant dense<0.000000e+00> : vector<8x32xf32>
    %147 = tpu.matmul %146, %145, %cst_61 {dimension_numbers = #tpu.dot_dimension_numbers<[1], [1], [0], [0], [0, 0, 1, 0], [], []>} : vector<8x32xbf16>, vector<32x32xbf16>, vector<8x32xf32> -> vector<8x32xf32>
    %c0_62 = arith.constant 0 : index
    %c0_63 = arith.constant 0 : index
    %148 = vector.load %arg13[%c0_62, %c0_63] : memref<1x32xf32, #tpu.memory_space<vmem>>, vector<1x32xf32>
    %149 = vector.broadcast %148 : vector<1x32xf32> to vector<8x32xf32>
    %150 = arith.addf %147, %149 : vector<8x32xf32>
    %c0_64 = arith.constant 0 : index
    %c0_65 = arith.constant 0 : index
    %151 = vector.load %arg14[%c0_64, %c0_65] : memref<16x32xbf16, #tpu.memory_space<vmem>>, vector<16x32xbf16>
    %152 = arith.truncf %136 : vector<8x32xf32> to vector<8x32xbf16>
    %cst_66 = arith.constant dense<0.000000e+00> : vector<8x16xf32>
    %153 = tpu.matmul %152, %151, %cst_66 {dimension_numbers = #tpu.dot_dimension_numbers<[1], [1], [0], [0], [0, 0, 1, 0], [], []>} : vector<8x32xbf16>, vector<16x32xbf16>, vector<8x16xf32> -> vector<8x16xf32>
    %c0_67 = arith.constant 0 : index
    %c0_68 = arith.constant 0 : index
    %154 = vector.load %arg15[%c0_67, %c0_68] : memref<1x16xf32, #tpu.memory_space<vmem>>, vector<1x16xf32>
    %155 = vector.broadcast %154 : vector<1x16xf32> to vector<8x16xf32>
    %156 = arith.addf %153, %155 : vector<8x16xf32>
    %c0_69 = arith.constant 0 : index
    %c0_70 = arith.constant 0 : index
    %157 = vector.load %arg1[%c0_69, %c0_70] : memref<16x4xbf16, #tpu.memory_space<vmem>>, vector<16x4xbf16>
    %cst_71 = arith.constant dense<0xFF800000> : vector<8xf32>
    %158 = vector.multi_reduction <maximumf>, %156, %cst_71 [1] : vector<8x16xf32> to vector<8xf32>
    %159 = vector.shape_cast %158 : vector<8xf32> to vector<8x1xf32>
    %160 = vector.broadcast %159 : vector<8x1xf32> to vector<8x16xf32>
    %161 = arith.subf %156, %160 : vector<8x16xf32>
    %162 = math.exp %161 : vector<8x16xf32>
    %163 = arith.truncf %162 : vector<8x16xf32> to vector<8x16xbf16>
    %cst_72 = arith.constant dense<0.000000e+00> : vector<8x4xf32>
    %164 = tpu.matmul %163, %157, %cst_72 {dimension_numbers = #tpu.dot_dimension_numbers<[1], [0], [0], [1], [0, 0, 1, 1], [], []>} : vector<8x16xbf16>, vector<16x4xbf16>, vector<8x4xf32> -> vector<8x4xf32>
    %165 = arith.truncf %164 : vector<8x4xf32> to vector<8x4xbf16>
    %cst_73 = arith.constant dense<0.000000e+00> : vector<8x16xf32>
    %166 = tpu.matmul %165, %157, %cst_73 {dimension_numbers = #tpu.dot_dimension_numbers<[1], [1], [0], [0], [0, 0, 1, 0], [], []>} : vector<8x4xbf16>, vector<16x4xbf16>, vector<8x16xf32> -> vector<8x16xf32>
    %167 = tpu.reciprocal %166 {approx = true} : vector<8x16xf32> -> vector<8x16xf32>
    %168 = arith.mulf %162, %167 : vector<8x16xf32>
    %c0_74 = arith.constant 0 : index
    %c0_75 = arith.constant 0 : index
    %c0_76 = arith.constant 0 : index
    %169 = vector.load %arg4[%c0_74, %c0_75, %c0_76] : memref<1x8x2xf32, #tpu.memory_space<vmem>>, vector<1x8x2xf32>
    %170 = vector.shape_cast %169 : vector<1x8x2xf32> to vector<8x2xf32>
    %171 = vector.extract_strided_slice %170 {offsets = [0, 0], sizes = [8, 1], strides = [1, 1]} : vector<8x2xf32> to vector<8x1xf32>
    %172 = vector.extract_strided_slice %170 {offsets = [0, 1], sizes = [8, 1], strides = [1, 1]} : vector<8x2xf32> to vector<8x1xf32>
    %cst_77 = arith.constant 0.000000e+00 : f32
    %173 = vector.broadcast %cst_77 : f32 to vector<8x8xf32>
    %cst_78 = arith.constant 0.000000e+00 : f32
    %174 = vector.broadcast %cst_78 : f32 to vector<8x8xf32>
    %cst_79 = arith.constant 0.000000e+00 : f32
    %175 = vector.broadcast %cst_79 : f32 to vector<8x8xf32>
    %cst_80 = arith.constant 0.000000e+00 : f32
    %176 = vector.broadcast %cst_80 : f32 to vector<8x8xf32>
    %177 = vector.extract_strided_slice %150 {offsets = [0, 0], sizes = [8, 8], strides = [1, 1]} : vector<8x32xf32> to vector<8x8xf32>
    %178 = vector.extract_strided_slice %150 {offsets = [0, 16], sizes = [8, 8], strides = [1, 1]} : vector<8x32xf32> to vector<8x8xf32>
    %179 = vector.extract_strided_slice %168 {offsets = [0, 0], sizes = [8, 8], strides = [1, 1]} : vector<8x16xf32> to vector<8x8xf32>
    %cst_81 = arith.constant 4.000000e+00 : f32
    %180 = vector.broadcast %cst_81 : f32 to vector<8x1xf32>
    %181 = arith.mulf %171, %180 : vector<8x1xf32>
    %182 = vector.broadcast %181 : vector<8x1xf32> to vector<8x8xf32>
    %183 = arith.addf %182, %177 : vector<8x8xf32>
    %cst_82 = arith.constant 4.000000e+00 : f32
    %184 = vector.broadcast %cst_82 : f32 to vector<8x1xf32>
    %185 = arith.mulf %172, %184 : vector<8x1xf32>
    %186 = vector.broadcast %185 : vector<8x1xf32> to vector<8x8xf32>
    %187 = arith.addf %186, %178 : vector<8x8xf32>
    %188 = math.floor %183 : vector<8x8xf32>
    %189 = math.floor %187 : vector<8x8xf32>
    %190 = arith.subf %183, %188 : vector<8x8xf32>
    %191 = arith.subf %187, %189 : vector<8x8xf32>
    %cst_83 = arith.constant 1.000000e+00 : f32
    %192 = vector.broadcast %cst_83 : f32 to vector<8x8xf32>
    %193 = arith.subf %192, %191 : vector<8x8xf32>
    %cst_84 = arith.constant 1.000000e+00 : f32
    %194 = vector.broadcast %cst_84 : f32 to vector<8x8xf32>
    %195 = arith.subf %194, %190 : vector<8x8xf32>
    %cst_85 = arith.constant 0.000000e+00 : f32
    %196 = vector.broadcast %cst_85 : f32 to vector<8x8xf32>
    %197 = arith.addf %188, %196 : vector<8x8xf32>
    %cst_86 = arith.constant 0.000000e+00 : f32
    %198 = vector.broadcast %cst_86 : f32 to vector<8x8xf32>
    %199 = arith.addf %189, %198 : vector<8x8xf32>
    %cst_87 = arith.constant 0.000000e+00 : f32
    %200 = vector.broadcast %cst_87 : f32 to vector<8x8xf32>
    %201 = arith.cmpf oge, %197, %200 : vector<8x8xf32>
    %cst_88 = arith.constant 3.000000e+00 : f32
    %202 = vector.broadcast %cst_88 : f32 to vector<8x8xf32>
    %203 = arith.cmpf ole, %197, %202 : vector<8x8xf32>
    %204 = arith.andi %201, %203 : vector<8x8xi1>
    %cst_89 = arith.constant 0.000000e+00 : f32
    %205 = vector.broadcast %cst_89 : f32 to vector<8x8xf32>
    %206 = arith.cmpf oge, %199, %205 : vector<8x8xf32>
    %207 = arith.andi %204, %206 : vector<8x8xi1>
    %cst_90 = arith.constant 3.000000e+00 : f32
    %208 = vector.broadcast %cst_90 : f32 to vector<8x8xf32>
    %209 = arith.cmpf ole, %199, %208 : vector<8x8xf32>
    %210 = arith.andi %207, %209 : vector<8x8xi1>
    %211 = arith.extui %210 : vector<8x8xi1> to vector<8x8xi32>
    %212 = arith.sitofp %211 : vector<8x8xi32> to vector<8x8xf32>
    %cst_91 = arith.constant 0.000000e+00 : f32
    %cst_92 = arith.constant 3.000000e+00 : f32
    %213 = vector.broadcast %cst_91 : f32 to vector<8x8xf32>
    %214 = arith.maximumf %213, %197 : vector<8x8xf32>
    %215 = vector.broadcast %cst_92 : f32 to vector<8x8xf32>
    %216 = arith.minimumf %215, %214 : vector<8x8xf32>
    %217 = arith.fptosi %216 : vector<8x8xf32> to vector<8x8xi32>
    %cst_93 = arith.constant 0.000000e+00 : f32
    %cst_94 = arith.constant 3.000000e+00 : f32
    %218 = vector.broadcast %cst_93 : f32 to vector<8x8xf32>
    %219 = arith.maximumf %218, %199 : vector<8x8xf32>
    %220 = vector.broadcast %cst_94 : f32 to vector<8x8xf32>
    %221 = arith.minimumf %220, %219 : vector<8x8xf32>
    %222 = arith.fptosi %221 : vector<8x8xf32> to vector<8x8xi32>
    %c4_i32 = arith.constant 4 : i32
    %223 = vector.broadcast %c4_i32 : i32 to vector<8x8xi32>
    %224 = arith.muli %222, %223 : vector<8x8xi32>
    %225 = arith.addi %224, %217 : vector<8x8xi32>
    %226 = arith.mulf %193, %195 : vector<8x8xf32>
    %227 = arith.mulf %226, %212 : vector<8x8xf32>
    %228 = arith.mulf %227, %179 : vector<8x8xf32>
    %cst_95 = arith.constant 1.000000e+00 : f32
    %229 = vector.broadcast %cst_95 : f32 to vector<8x8xf32>
    %230 = arith.addf %188, %229 : vector<8x8xf32>
    %cst_96 = arith.constant 0.000000e+00 : f32
    %231 = vector.broadcast %cst_96 : f32 to vector<8x8xf32>
    %232 = arith.addf %189, %231 : vector<8x8xf32>
    %cst_97 = arith.constant 0.000000e+00 : f32
    %233 = vector.broadcast %cst_97 : f32 to vector<8x8xf32>
    %234 = arith.cmpf oge, %230, %233 : vector<8x8xf32>
    %cst_98 = arith.constant 3.000000e+00 : f32
    %235 = vector.broadcast %cst_98 : f32 to vector<8x8xf32>
    %236 = arith.cmpf ole, %230, %235 : vector<8x8xf32>
    %237 = arith.andi %234, %236 : vector<8x8xi1>
    %cst_99 = arith.constant 0.000000e+00 : f32
    %238 = vector.broadcast %cst_99 : f32 to vector<8x8xf32>
    %239 = arith.cmpf oge, %232, %238 : vector<8x8xf32>
    %240 = arith.andi %237, %239 : vector<8x8xi1>
    %cst_100 = arith.constant 3.000000e+00 : f32
    %241 = vector.broadcast %cst_100 : f32 to vector<8x8xf32>
    %242 = arith.cmpf ole, %232, %241 : vector<8x8xf32>
    %243 = arith.andi %240, %242 : vector<8x8xi1>
    %244 = arith.extui %243 : vector<8x8xi1> to vector<8x8xi32>
    %245 = arith.sitofp %244 : vector<8x8xi32> to vector<8x8xf32>
    %cst_101 = arith.constant 0.000000e+00 : f32
    %cst_102 = arith.constant 3.000000e+00 : f32
    %246 = vector.broadcast %cst_101 : f32 to vector<8x8xf32>
    %247 = arith.maximumf %246, %230 : vector<8x8xf32>
    %248 = vector.broadcast %cst_102 : f32 to vector<8x8xf32>
    %249 = arith.minimumf %248, %247 : vector<8x8xf32>
    %250 = arith.fptosi %249 : vector<8x8xf32> to vector<8x8xi32>
    %cst_103 = arith.constant 0.000000e+00 : f32
    %cst_104 = arith.constant 3.000000e+00 : f32
    %251 = vector.broadcast %cst_103 : f32 to vector<8x8xf32>
    %252 = arith.maximumf %251, %232 : vector<8x8xf32>
    %253 = vector.broadcast %cst_104 : f32 to vector<8x8xf32>
    %254 = arith.minimumf %253, %252 : vector<8x8xf32>
    %255 = arith.fptosi %254 : vector<8x8xf32> to vector<8x8xi32>
    %c4_i32_105 = arith.constant 4 : i32
    %256 = vector.broadcast %c4_i32_105 : i32 to vector<8x8xi32>
    %257 = arith.muli %255, %256 : vector<8x8xi32>
    %258 = arith.addi %257, %250 : vector<8x8xi32>
    %259 = arith.mulf %193, %190 : vector<8x8xf32>
    %260 = arith.mulf %259, %245 : vector<8x8xf32>
    %261 = arith.mulf %260, %179 : vector<8x8xf32>
    %cst_106 = arith.constant 1.000000e+00 : f32
    %262 = vector.broadcast %cst_106 : f32 to vector<8x8xf32>
    %263 = arith.subf %262, %190 : vector<8x8xf32>
    %cst_107 = arith.constant 0.000000e+00 : f32
    %264 = vector.broadcast %cst_107 : f32 to vector<8x8xf32>
    %265 = arith.addf %188, %264 : vector<8x8xf32>
    %cst_108 = arith.constant 1.000000e+00 : f32
    %266 = vector.broadcast %cst_108 : f32 to vector<8x8xf32>
    %267 = arith.addf %189, %266 : vector<8x8xf32>
    %cst_109 = arith.constant 0.000000e+00 : f32
    %268 = vector.broadcast %cst_109 : f32 to vector<8x8xf32>
    %269 = arith.cmpf oge, %265, %268 : vector<8x8xf32>
    %cst_110 = arith.constant 3.000000e+00 : f32
    %270 = vector.broadcast %cst_110 : f32 to vector<8x8xf32>
    %271 = arith.cmpf ole, %265, %270 : vector<8x8xf32>
    %272 = arith.andi %269, %271 : vector<8x8xi1>
    %cst_111 = arith.constant 0.000000e+00 : f32
    %273 = vector.broadcast %cst_111 : f32 to vector<8x8xf32>
    %274 = arith.cmpf oge, %267, %273 : vector<8x8xf32>
    %275 = arith.andi %272, %274 : vector<8x8xi1>
    %cst_112 = arith.constant 3.000000e+00 : f32
    %276 = vector.broadcast %cst_112 : f32 to vector<8x8xf32>
    %277 = arith.cmpf ole, %267, %276 : vector<8x8xf32>
    %278 = arith.andi %275, %277 : vector<8x8xi1>
    %279 = arith.extui %278 : vector<8x8xi1> to vector<8x8xi32>
    %280 = arith.sitofp %279 : vector<8x8xi32> to vector<8x8xf32>
    %cst_113 = arith.constant 0.000000e+00 : f32
    %cst_114 = arith.constant 3.000000e+00 : f32
    %281 = vector.broadcast %cst_113 : f32 to vector<8x8xf32>
    %282 = arith.maximumf %281, %265 : vector<8x8xf32>
    %283 = vector.broadcast %cst_114 : f32 to vector<8x8xf32>
    %284 = arith.minimumf %283, %282 : vector<8x8xf32>
    %285 = arith.fptosi %284 : vector<8x8xf32> to vector<8x8xi32>
    %cst_115 = arith.constant 0.000000e+00 : f32
    %cst_116 = arith.constant 3.000000e+00 : f32
    %286 = vector.broadcast %cst_115 : f32 to vector<8x8xf32>
    %287 = arith.maximumf %286, %267 : vector<8x8xf32>
    %288 = vector.broadcast %cst_116 : f32 to vector<8x8xf32>
    %289 = arith.minimumf %288, %287 : vector<8x8xf32>
    %290 = arith.fptosi %289 : vector<8x8xf32> to vector<8x8xi32>
    %c4_i32_117 = arith.constant 4 : i32
    %291 = vector.broadcast %c4_i32_117 : i32 to vector<8x8xi32>
    %292 = arith.muli %290, %291 : vector<8x8xi32>
    %293 = arith.addi %292, %285 : vector<8x8xi32>
    %294 = arith.mulf %191, %263 : vector<8x8xf32>
    %295 = arith.mulf %294, %280 : vector<8x8xf32>
    %296 = arith.mulf %295, %179 : vector<8x8xf32>
    %cst_118 = arith.constant 1.000000e+00 : f32
    %297 = vector.broadcast %cst_118 : f32 to vector<8x8xf32>
    %298 = arith.addf %188, %297 : vector<8x8xf32>
    %cst_119 = arith.constant 1.000000e+00 : f32
    %299 = vector.broadcast %cst_119 : f32 to vector<8x8xf32>
    %300 = arith.addf %189, %299 : vector<8x8xf32>
    %cst_120 = arith.constant 0.000000e+00 : f32
    %301 = vector.broadcast %cst_120 : f32 to vector<8x8xf32>
    %302 = arith.cmpf oge, %298, %301 : vector<8x8xf32>
    %cst_121 = arith.constant 3.000000e+00 : f32
    %303 = vector.broadcast %cst_121 : f32 to vector<8x8xf32>
    %304 = arith.cmpf ole, %298, %303 : vector<8x8xf32>
    %305 = arith.andi %302, %304 : vector<8x8xi1>
    %cst_122 = arith.constant 0.000000e+00 : f32
    %306 = vector.broadcast %cst_122 : f32 to vector<8x8xf32>
    %307 = arith.cmpf oge, %300, %306 : vector<8x8xf32>
    %308 = arith.andi %305, %307 : vector<8x8xi1>
    %cst_123 = arith.constant 3.000000e+00 : f32
    %309 = vector.broadcast %cst_123 : f32 to vector<8x8xf32>
    %310 = arith.cmpf ole, %300, %309 : vector<8x8xf32>
    %311 = arith.andi %308, %310 : vector<8x8xi1>
    %312 = arith.extui %311 : vector<8x8xi1> to vector<8x8xi32>
    %313 = arith.sitofp %312 : vector<8x8xi32> to vector<8x8xf32>
    %cst_124 = arith.constant 0.000000e+00 : f32
    %cst_125 = arith.constant 3.000000e+00 : f32
    %314 = vector.broadcast %cst_124 : f32 to vector<8x8xf32>
    %315 = arith.maximumf %314, %298 : vector<8x8xf32>
    %316 = vector.broadcast %cst_125 : f32 to vector<8x8xf32>
    %317 = arith.minimumf %316, %315 : vector<8x8xf32>
    %318 = arith.fptosi %317 : vector<8x8xf32> to vector<8x8xi32>
    %cst_126 = arith.constant 0.000000e+00 : f32
    %cst_127 = arith.constant 3.000000e+00 : f32
    %319 = vector.broadcast %cst_126 : f32 to vector<8x8xf32>
    %320 = arith.maximumf %319, %300 : vector<8x8xf32>
    %321 = vector.broadcast %cst_127 : f32 to vector<8x8xf32>
    %322 = arith.minimumf %321, %320 : vector<8x8xf32>
    %323 = arith.fptosi %322 : vector<8x8xf32> to vector<8x8xi32>
    %c4_i32_128 = arith.constant 4 : i32
    %324 = vector.broadcast %c4_i32_128 : i32 to vector<8x8xi32>
    %325 = arith.muli %323, %324 : vector<8x8xi32>
    %326 = arith.addi %325, %318 : vector<8x8xi32>
    %327 = arith.mulf %191, %190 : vector<8x8xf32>
    %328 = arith.mulf %327, %313 : vector<8x8xf32>
    %329 = arith.mulf %328, %179 : vector<8x8xf32>
    %330 = tpu.iota {dimensions = array<i32: 1>} : vector<8x16xi32>
    %331 = vector.extract_strided_slice %144 {offsets = [0, 0], sizes = [16, 32], strides = [1, 1]} : vector<80x32xbf16> to vector<16x32xbf16>
    %cst_129 = arith.constant 0.000000e+00 : f32
    %332 = vector.broadcast %cst_129 : f32 to vector<8x16xf32>
    %333 = vector.extract_strided_slice %225 {offsets = [0, 0], sizes = [8, 1], strides = [1, 1]} : vector<8x8xi32> to vector<8x1xi32>
    %334 = vector.broadcast %333 : vector<8x1xi32> to vector<8x16xi32>
    %335 = arith.cmpi eq, %330, %334 : vector<8x16xi32>
    %336 = arith.extui %335 : vector<8x16xi1> to vector<8x16xi32>
    %337 = arith.sitofp %336 : vector<8x16xi32> to vector<8x16xf32>
    %338 = vector.extract_strided_slice %228 {offsets = [0, 0], sizes = [8, 1], strides = [1, 1]} : vector<8x8xf32> to vector<8x1xf32>
    %339 = vector.broadcast %338 : vector<8x1xf32> to vector<8x16xf32>
    %340 = arith.mulf %337, %339 : vector<8x16xf32>
    %341 = arith.addf %332, %340 : vector<8x16xf32>
    %342 = vector.extract_strided_slice %258 {offsets = [0, 0], sizes = [8, 1], strides = [1, 1]} : vector<8x8xi32> to vector<8x1xi32>
    %343 = vector.broadcast %342 : vector<8x1xi32> to vector<8x16xi32>
    %344 = arith.cmpi eq, %330, %343 : vector<8x16xi32>
    %345 = arith.extui %344 : vector<8x16xi1> to vector<8x16xi32>
    %346 = arith.sitofp %345 : vector<8x16xi32> to vector<8x16xf32>
    %347 = vector.extract_strided_slice %261 {offsets = [0, 0], sizes = [8, 1], strides = [1, 1]} : vector<8x8xf32> to vector<8x1xf32>
    %348 = vector.broadcast %347 : vector<8x1xf32> to vector<8x16xf32>
    %349 = arith.mulf %346, %348 : vector<8x16xf32>
    %350 = arith.addf %341, %349 : vector<8x16xf32>
    %351 = vector.extract_strided_slice %293 {offsets = [0, 0], sizes = [8, 1], strides = [1, 1]} : vector<8x8xi32> to vector<8x1xi32>
    %352 = vector.broadcast %351 : vector<8x1xi32> to vector<8x16xi32>
    %353 = arith.cmpi eq, %330, %352 : vector<8x16xi32>
    %354 = arith.extui %353 : vector<8x16xi1> to vector<8x16xi32>
    %355 = arith.sitofp %354 : vector<8x16xi32> to vector<8x16xf32>
    %356 = vector.extract_strided_slice %296 {offsets = [0, 0], sizes = [8, 1], strides = [1, 1]} : vector<8x8xf32> to vector<8x1xf32>
    %357 = vector.broadcast %356 : vector<8x1xf32> to vector<8x16xf32>
    %358 = arith.mulf %355, %357 : vector<8x16xf32>
    %359 = arith.addf %350, %358 : vector<8x16xf32>
    %360 = vector.extract_strided_slice %326 {offsets = [0, 0], sizes = [8, 1], strides = [1, 1]} : vector<8x8xi32> to vector<8x1xi32>
    %361 = vector.broadcast %360 : vector<8x1xi32> to vector<8x16xi32>
    %362 = arith.cmpi eq, %330, %361 : vector<8x16xi32>
    %363 = arith.extui %362 : vector<8x16xi1> to vector<8x16xi32>
    %364 = arith.sitofp %363 : vector<8x16xi32> to vector<8x16xf32>
    %365 = vector.extract_strided_slice %329 {offsets = [0, 0], sizes = [8, 1], strides = [1, 1]} : vector<8x8xf32> to vector<8x1xf32>
    %366 = vector.broadcast %365 : vector<8x1xf32> to vector<8x16xf32>
    %367 = arith.mulf %364, %366 : vector<8x16xf32>
    %368 = arith.addf %359, %367 : vector<8x16xf32>
    %369 = vector.extract_strided_slice %225 {offsets = [0, 1], sizes = [8, 1], strides = [1, 1]} : vector<8x8xi32> to vector<8x1xi32>
    %370 = vector.broadcast %369 : vector<8x1xi32> to vector<8x16xi32>
    %371 = arith.cmpi eq, %330, %370 : vector<8x16xi32>
    %372 = arith.extui %371 : vector<8x16xi1> to vector<8x16xi32>
    %373 = arith.sitofp %372 : vector<8x16xi32> to vector<8x16xf32>
    %374 = vector.extract_strided_slice %228 {offsets = [0, 1], sizes = [8, 1], strides = [1, 1]} : vector<8x8xf32> to vector<8x1xf32>
    %375 = vector.broadcast %374 : vector<8x1xf32> to vector<8x16xf32>
    %376 = arith.mulf %373, %375 : vector<8x16xf32>
    %377 = arith.addf %368, %376 : vector<8x16xf32>
    %378 = vector.extract_strided_slice %258 {offsets = [0, 1], sizes = [8, 1], strides = [1, 1]} : vector<8x8xi32> to vector<8x1xi32>
    %379 = vector.broadcast %378 : vector<8x1xi32> to vector<8x16xi32>
    %380 = arith.cmpi eq, %330, %379 : vector<8x16xi32>
    %381 = arith.extui %380 : vector<8x16xi1> to vector<8x16xi32>
    %382 = arith.sitofp %381 : vector<8x16xi32> to vector<8x16xf32>
    %383 = vector.extract_strided_slice %261 {offsets = [0, 1], sizes = [8, 1], strides = [1, 1]} : vector<8x8xf32> to vector<8x1xf32>
    %384 = vector.broadcast %383 : vector<8x1xf32> to vector<8x16xf32>
    %385 = arith.mulf %382, %384 : vector<8x16xf32>
    %386 = arith.addf %377, %385 : vector<8x16xf32>
    %387 = vector.extract_strided_slice %293 {offsets = [0, 1], sizes = [8, 1], strides = [1, 1]} : vector<8x8xi32> to vector<8x1xi32>
    %388 = vector.broadcast %387 : vector<8x1xi32> to vector<8x16xi32>
    %389 = arith.cmpi eq, %330, %388 : vector<8x16xi32>
    %390 = arith.extui %389 : vector<8x16xi1> to vector<8x16xi32>
    %391 = arith.sitofp %390 : vector<8x16xi32> to vector<8x16xf32>
    %392 = vector.extract_strided_slice %296 {offsets = [0, 1], sizes = [8, 1], strides = [1, 1]} : vector<8x8xf32> to vector<8x1xf32>
    %393 = vector.broadcast %392 : vector<8x1xf32> to vector<8x16xf32>
    %394 = arith.mulf %391, %393 : vector<8x16xf32>
    %395 = arith.addf %386, %394 : vector<8x16xf32>
    %396 = vector.extract_strided_slice %326 {offsets = [0, 1], sizes = [8, 1], strides = [1, 1]} : vector<8x8xi32> to vector<8x1xi32>
    %397 = vector.broadcast %396 : vector<8x1xi32> to vector<8x16xi32>
    %398 = arith.cmpi eq, %330, %397 : vector<8x16xi32>
    %399 = arith.extui %398 : vector<8x16xi1> to vector<8x16xi32>
    %400 = arith.sitofp %399 : vector<8x16xi32> to vector<8x16xf32>
    %401 = vector.extract_strided_slice %329 {offsets = [0, 1], sizes = [8, 1], strides = [1, 1]} : vector<8x8xf32> to vector<8x1xf32>
    %402 = vector.broadcast %401 : vector<8x1xf32> to vector<8x16xf32>
    %403 = arith.mulf %400, %402 : vector<8x16xf32>
    %404 = arith.addf %395, %403 : vector<8x16xf32>
    %405 = vector.extract_strided_slice %331 {offsets = [0, 0], sizes = [16, 8], strides = [1, 1]} : vector<16x32xbf16> to vector<16x8xbf16>
    %406 = arith.truncf %404 : vector<8x16xf32> to vector<8x16xbf16>
    %cst_130 = arith.constant dense<0.000000e+00> : vector<8x8xf32>
    %407 = tpu.matmul %406, %405, %cst_130 {dimension_numbers = #tpu.dot_dimension_numbers<[1], [0], [0], [1], [0, 0, 1, 1], [], []>} : vector<8x16xbf16>, vector<16x8xbf16>, vector<8x8xf32> -> vector<8x8xf32>
    %408 = arith.addf %173, %407 : vector<8x8xf32>
    %cst_131 = arith.constant 0.000000e+00 : f32
    %409 = vector.broadcast %cst_131 : f32 to vector<8x16xf32>
    %410 = vector.extract_strided_slice %225 {offsets = [0, 2], sizes = [8, 1], strides = [1, 1]} : vector<8x8xi32> to vector<8x1xi32>
    %411 = vector.broadcast %410 : vector<8x1xi32> to vector<8x16xi32>
    %412 = arith.cmpi eq, %330, %411 : vector<8x16xi32>
    %413 = arith.extui %412 : vector<8x16xi1> to vector<8x16xi32>
    %414 = arith.sitofp %413 : vector<8x16xi32> to vector<8x16xf32>
    %415 = vector.extract_strided_slice %228 {offsets = [0, 2], sizes = [8, 1], strides = [1, 1]} : vector<8x8xf32> to vector<8x1xf32>
    %416 = vector.broadcast %415 : vector<8x1xf32> to vector<8x16xf32>
    %417 = arith.mulf %414, %416 : vector<8x16xf32>
    %418 = arith.addf %409, %417 : vector<8x16xf32>
    %419 = vector.extract_strided_slice %258 {offsets = [0, 2], sizes = [8, 1], strides = [1, 1]} : vector<8x8xi32> to vector<8x1xi32>
    %420 = vector.broadcast %419 : vector<8x1xi32> to vector<8x16xi32>
    %421 = arith.cmpi eq, %330, %420 : vector<8x16xi32>
    %422 = arith.extui %421 : vector<8x16xi1> to vector<8x16xi32>
    %423 = arith.sitofp %422 : vector<8x16xi32> to vector<8x16xf32>
    %424 = vector.extract_strided_slice %261 {offsets = [0, 2], sizes = [8, 1], strides = [1, 1]} : vector<8x8xf32> to vector<8x1xf32>
    %425 = vector.broadcast %424 : vector<8x1xf32> to vector<8x16xf32>
    %426 = arith.mulf %423, %425 : vector<8x16xf32>
    %427 = arith.addf %418, %426 : vector<8x16xf32>
    %428 = vector.extract_strided_slice %293 {offsets = [0, 2], sizes = [8, 1], strides = [1, 1]} : vector<8x8xi32> to vector<8x1xi32>
    %429 = vector.broadcast %428 : vector<8x1xi32> to vector<8x16xi32>
    %430 = arith.cmpi eq, %330, %429 : vector<8x16xi32>
    %431 = arith.extui %430 : vector<8x16xi1> to vector<8x16xi32>
    %432 = arith.sitofp %431 : vector<8x16xi32> to vector<8x16xf32>
    %433 = vector.extract_strided_slice %296 {offsets = [0, 2], sizes = [8, 1], strides = [1, 1]} : vector<8x8xf32> to vector<8x1xf32>
    %434 = vector.broadcast %433 : vector<8x1xf32> to vector<8x16xf32>
    %435 = arith.mulf %432, %434 : vector<8x16xf32>
    %436 = arith.addf %427, %435 : vector<8x16xf32>
    %437 = vector.extract_strided_slice %326 {offsets = [0, 2], sizes = [8, 1], strides = [1, 1]} : vector<8x8xi32> to vector<8x1xi32>
    %438 = vector.broadcast %437 : vector<8x1xi32> to vector<8x16xi32>
    %439 = arith.cmpi eq, %330, %438 : vector<8x16xi32>
    %440 = arith.extui %439 : vector<8x16xi1> to vector<8x16xi32>
    %441 = arith.sitofp %440 : vector<8x16xi32> to vector<8x16xf32>
    %442 = vector.extract_strided_slice %329 {offsets = [0, 2], sizes = [8, 1], strides = [1, 1]} : vector<8x8xf32> to vector<8x1xf32>
    %443 = vector.broadcast %442 : vector<8x1xf32> to vector<8x16xf32>
    %444 = arith.mulf %441, %443 : vector<8x16xf32>
    %445 = arith.addf %436, %444 : vector<8x16xf32>
    %446 = vector.extract_strided_slice %225 {offsets = [0, 3], sizes = [8, 1], strides = [1, 1]} : vector<8x8xi32> to vector<8x1xi32>
    %447 = vector.broadcast %446 : vector<8x1xi32> to vector<8x16xi32>
    %448 = arith.cmpi eq, %330, %447 : vector<8x16xi32>
    %449 = arith.extui %448 : vector<8x16xi1> to vector<8x16xi32>
    %450 = arith.sitofp %449 : vector<8x16xi32> to vector<8x16xf32>
    %451 = vector.extract_strided_slice %228 {offsets = [0, 3], sizes = [8, 1], strides = [1, 1]} : vector<8x8xf32> to vector<8x1xf32>
    %452 = vector.broadcast %451 : vector<8x1xf32> to vector<8x16xf32>
    %453 = arith.mulf %450, %452 : vector<8x16xf32>
    %454 = arith.addf %445, %453 : vector<8x16xf32>
    %455 = vector.extract_strided_slice %258 {offsets = [0, 3], sizes = [8, 1], strides = [1, 1]} : vector<8x8xi32> to vector<8x1xi32>
    %456 = vector.broadcast %455 : vector<8x1xi32> to vector<8x16xi32>
    %457 = arith.cmpi eq, %330, %456 : vector<8x16xi32>
    %458 = arith.extui %457 : vector<8x16xi1> to vector<8x16xi32>
    %459 = arith.sitofp %458 : vector<8x16xi32> to vector<8x16xf32>
    %460 = vector.extract_strided_slice %261 {offsets = [0, 3], sizes = [8, 1], strides = [1, 1]} : vector<8x8xf32> to vector<8x1xf32>
    %461 = vector.broadcast %460 : vector<8x1xf32> to vector<8x16xf32>
    %462 = arith.mulf %459, %461 : vector<8x16xf32>
    %463 = arith.addf %454, %462 : vector<8x16xf32>
    %464 = vector.extract_strided_slice %293 {offsets = [0, 3], sizes = [8, 1], strides = [1, 1]} : vector<8x8xi32> to vector<8x1xi32>
    %465 = vector.broadcast %464 : vector<8x1xi32> to vector<8x16xi32>
    %466 = arith.cmpi eq, %330, %465 : vector<8x16xi32>
    %467 = arith.extui %466 : vector<8x16xi1> to vector<8x16xi32>
    %468 = arith.sitofp %467 : vector<8x16xi32> to vector<8x16xf32>
    %469 = vector.extract_strided_slice %296 {offsets = [0, 3], sizes = [8, 1], strides = [1, 1]} : vector<8x8xf32> to vector<8x1xf32>
    %470 = vector.broadcast %469 : vector<8x1xf32> to vector<8x16xf32>
    %471 = arith.mulf %468, %470 : vector<8x16xf32>
    %472 = arith.addf %463, %471 : vector<8x16xf32>
    %473 = vector.extract_strided_slice %326 {offsets = [0, 3], sizes = [8, 1], strides = [1, 1]} : vector<8x8xi32> to vector<8x1xi32>
    %474 = vector.broadcast %473 : vector<8x1xi32> to vector<8x16xi32>
    %475 = arith.cmpi eq, %330, %474 : vector<8x16xi32>
    %476 = arith.extui %475 : vector<8x16xi1> to vector<8x16xi32>
    %477 = arith.sitofp %476 : vector<8x16xi32> to vector<8x16xf32>
    %478 = vector.extract_strided_slice %329 {offsets = [0, 3], sizes = [8, 1], strides = [1, 1]} : vector<8x8xf32> to vector<8x1xf32>
    %479 = vector.broadcast %478 : vector<8x1xf32> to vector<8x16xf32>
    %480 = arith.mulf %477, %479 : vector<8x16xf32>
    %481 = arith.addf %472, %480 : vector<8x16xf32>
    %482 = vector.extract_strided_slice %331 {offsets = [0, 8], sizes = [16, 8], strides = [1, 1]} : vector<16x32xbf16> to vector<16x8xbf16>
    %483 = arith.truncf %481 : vector<8x16xf32> to vector<8x16xbf16>
    %cst_132 = arith.constant dense<0.000000e+00> : vector<8x8xf32>
    %484 = tpu.matmul %483, %482, %cst_132 {dimension_numbers = #tpu.dot_dimension_numbers<[1], [0], [0], [1], [0, 0, 1, 1], [], []>} : vector<8x16xbf16>, vector<16x8xbf16>, vector<8x8xf32> -> vector<8x8xf32>
    %485 = arith.addf %174, %484 : vector<8x8xf32>
    %cst_133 = arith.constant 0.000000e+00 : f32
    %486 = vector.broadcast %cst_133 : f32 to vector<8x16xf32>
    %487 = vector.extract_strided_slice %225 {offsets = [0, 4], sizes = [8, 1], strides = [1, 1]} : vector<8x8xi32> to vector<8x1xi32>
    %488 = vector.broadcast %487 : vector<8x1xi32> to vector<8x16xi32>
    %489 = arith.cmpi eq, %330, %488 : vector<8x16xi32>
    %490 = arith.extui %489 : vector<8x16xi1> to vector<8x16xi32>
    %491 = arith.sitofp %490 : vector<8x16xi32> to vector<8x16xf32>
    %492 = vector.extract_strided_slice %228 {offsets = [0, 4], sizes = [8, 1], strides = [1, 1]} : vector<8x8xf32> to vector<8x1xf32>
    %493 = vector.broadcast %492 : vector<8x1xf32> to vector<8x16xf32>
    %494 = arith.mulf %491, %493 : vector<8x16xf32>
    %495 = arith.addf %486, %494 : vector<8x16xf32>
    %496 = vector.extract_strided_slice %258 {offsets = [0, 4], sizes = [8, 1], strides = [1, 1]} : vector<8x8xi32> to vector<8x1xi32>
    %497 = vector.broadcast %496 : vector<8x1xi32> to vector<8x16xi32>
    %498 = arith.cmpi eq, %330, %497 : vector<8x16xi32>
    %499 = arith.extui %498 : vector<8x16xi1> to vector<8x16xi32>
    %500 = arith.sitofp %499 : vector<8x16xi32> to vector<8x16xf32>
    %501 = vector.extract_strided_slice %261 {offsets = [0, 4], sizes = [8, 1], strides = [1, 1]} : vector<8x8xf32> to vector<8x1xf32>
    %502 = vector.broadcast %501 : vector<8x1xf32> to vector<8x16xf32>
    %503 = arith.mulf %500, %502 : vector<8x16xf32>
    %504 = arith.addf %495, %503 : vector<8x16xf32>
    %505 = vector.extract_strided_slice %293 {offsets = [0, 4], sizes = [8, 1], strides = [1, 1]} : vector<8x8xi32> to vector<8x1xi32>
    %506 = vector.broadcast %505 : vector<8x1xi32> to vector<8x16xi32>
    %507 = arith.cmpi eq, %330, %506 : vector<8x16xi32>
    %508 = arith.extui %507 : vector<8x16xi1> to vector<8x16xi32>
    %509 = arith.sitofp %508 : vector<8x16xi32> to vector<8x16xf32>
    %510 = vector.extract_strided_slice %296 {offsets = [0, 4], sizes = [8, 1], strides = [1, 1]} : vector<8x8xf32> to vector<8x1xf32>
    %511 = vector.broadcast %510 : vector<8x1xf32> to vector<8x16xf32>
    %512 = arith.mulf %509, %511 : vector<8x16xf32>
    %513 = arith.addf %504, %512 : vector<8x16xf32>
    %514 = vector.extract_strided_slice %326 {offsets = [0, 4], sizes = [8, 1], strides = [1, 1]} : vector<8x8xi32> to vector<8x1xi32>
    %515 = vector.broadcast %514 : vector<8x1xi32> to vector<8x16xi32>
    %516 = arith.cmpi eq, %330, %515 : vector<8x16xi32>
    %517 = arith.extui %516 : vector<8x16xi1> to vector<8x16xi32>
    %518 = arith.sitofp %517 : vector<8x16xi32> to vector<8x16xf32>
    %519 = vector.extract_strided_slice %329 {offsets = [0, 4], sizes = [8, 1], strides = [1, 1]} : vector<8x8xf32> to vector<8x1xf32>
    %520 = vector.broadcast %519 : vector<8x1xf32> to vector<8x16xf32>
    %521 = arith.mulf %518, %520 : vector<8x16xf32>
    %522 = arith.addf %513, %521 : vector<8x16xf32>
    %523 = vector.extract_strided_slice %225 {offsets = [0, 5], sizes = [8, 1], strides = [1, 1]} : vector<8x8xi32> to vector<8x1xi32>
    %524 = vector.broadcast %523 : vector<8x1xi32> to vector<8x16xi32>
    %525 = arith.cmpi eq, %330, %524 : vector<8x16xi32>
    %526 = arith.extui %525 : vector<8x16xi1> to vector<8x16xi32>
    %527 = arith.sitofp %526 : vector<8x16xi32> to vector<8x16xf32>
    %528 = vector.extract_strided_slice %228 {offsets = [0, 5], sizes = [8, 1], strides = [1, 1]} : vector<8x8xf32> to vector<8x1xf32>
    %529 = vector.broadcast %528 : vector<8x1xf32> to vector<8x16xf32>
    %530 = arith.mulf %527, %529 : vector<8x16xf32>
    %531 = arith.addf %522, %530 : vector<8x16xf32>
    %532 = vector.extract_strided_slice %258 {offsets = [0, 5], sizes = [8, 1], strides = [1, 1]} : vector<8x8xi32> to vector<8x1xi32>
    %533 = vector.broadcast %532 : vector<8x1xi32> to vector<8x16xi32>
    %534 = arith.cmpi eq, %330, %533 : vector<8x16xi32>
    %535 = arith.extui %534 : vector<8x16xi1> to vector<8x16xi32>
    %536 = arith.sitofp %535 : vector<8x16xi32> to vector<8x16xf32>
    %537 = vector.extract_strided_slice %261 {offsets = [0, 5], sizes = [8, 1], strides = [1, 1]} : vector<8x8xf32> to vector<8x1xf32>
    %538 = vector.broadcast %537 : vector<8x1xf32> to vector<8x16xf32>
    %539 = arith.mulf %536, %538 : vector<8x16xf32>
    %540 = arith.addf %531, %539 : vector<8x16xf32>
    %541 = vector.extract_strided_slice %293 {offsets = [0, 5], sizes = [8, 1], strides = [1, 1]} : vector<8x8xi32> to vector<8x1xi32>
    %542 = vector.broadcast %541 : vector<8x1xi32> to vector<8x16xi32>
    %543 = arith.cmpi eq, %330, %542 : vector<8x16xi32>
    %544 = arith.extui %543 : vector<8x16xi1> to vector<8x16xi32>
    %545 = arith.sitofp %544 : vector<8x16xi32> to vector<8x16xf32>
    %546 = vector.extract_strided_slice %296 {offsets = [0, 5], sizes = [8, 1], strides = [1, 1]} : vector<8x8xf32> to vector<8x1xf32>
    %547 = vector.broadcast %546 : vector<8x1xf32> to vector<8x16xf32>
    %548 = arith.mulf %545, %547 : vector<8x16xf32>
    %549 = arith.addf %540, %548 : vector<8x16xf32>
    %550 = vector.extract_strided_slice %326 {offsets = [0, 5], sizes = [8, 1], strides = [1, 1]} : vector<8x8xi32> to vector<8x1xi32>
    %551 = vector.broadcast %550 : vector<8x1xi32> to vector<8x16xi32>
    %552 = arith.cmpi eq, %330, %551 : vector<8x16xi32>
    %553 = arith.extui %552 : vector<8x16xi1> to vector<8x16xi32>
    %554 = arith.sitofp %553 : vector<8x16xi32> to vector<8x16xf32>
    %555 = vector.extract_strided_slice %329 {offsets = [0, 5], sizes = [8, 1], strides = [1, 1]} : vector<8x8xf32> to vector<8x1xf32>
    %556 = vector.broadcast %555 : vector<8x1xf32> to vector<8x16xf32>
    %557 = arith.mulf %554, %556 : vector<8x16xf32>
    %558 = arith.addf %549, %557 : vector<8x16xf32>
    %559 = vector.extract_strided_slice %331 {offsets = [0, 16], sizes = [16, 8], strides = [1, 1]} : vector<16x32xbf16> to vector<16x8xbf16>
    %560 = arith.truncf %558 : vector<8x16xf32> to vector<8x16xbf16>
    %cst_134 = arith.constant dense<0.000000e+00> : vector<8x8xf32>
    %561 = tpu.matmul %560, %559, %cst_134 {dimension_numbers = #tpu.dot_dimension_numbers<[1], [0], [0], [1], [0, 0, 1, 1], [], []>} : vector<8x16xbf16>, vector<16x8xbf16>, vector<8x8xf32> -> vector<8x8xf32>
    %562 = arith.addf %175, %561 : vector<8x8xf32>
    %cst_135 = arith.constant 0.000000e+00 : f32
    %563 = vector.broadcast %cst_135 : f32 to vector<8x16xf32>
    %564 = vector.extract_strided_slice %225 {offsets = [0, 6], sizes = [8, 1], strides = [1, 1]} : vector<8x8xi32> to vector<8x1xi32>
    %565 = vector.broadcast %564 : vector<8x1xi32> to vector<8x16xi32>
    %566 = arith.cmpi eq, %330, %565 : vector<8x16xi32>
    %567 = arith.extui %566 : vector<8x16xi1> to vector<8x16xi32>
    %568 = arith.sitofp %567 : vector<8x16xi32> to vector<8x16xf32>
    %569 = vector.extract_strided_slice %228 {offsets = [0, 6], sizes = [8, 1], strides = [1, 1]} : vector<8x8xf32> to vector<8x1xf32>
    %570 = vector.broadcast %569 : vector<8x1xf32> to vector<8x16xf32>
    %571 = arith.mulf %568, %570 : vector<8x16xf32>
    %572 = arith.addf %563, %571 : vector<8x16xf32>
    %573 = vector.extract_strided_slice %258 {offsets = [0, 6], sizes = [8, 1], strides = [1, 1]} : vector<8x8xi32> to vector<8x1xi32>
    %574 = vector.broadcast %573 : vector<8x1xi32> to vector<8x16xi32>
    %575 = arith.cmpi eq, %330, %574 : vector<8x16xi32>
    %576 = arith.extui %575 : vector<8x16xi1> to vector<8x16xi32>
    %577 = arith.sitofp %576 : vector<8x16xi32> to vector<8x16xf32>
    %578 = vector.extract_strided_slice %261 {offsets = [0, 6], sizes = [8, 1], strides = [1, 1]} : vector<8x8xf32> to vector<8x1xf32>
    %579 = vector.broadcast %578 : vector<8x1xf32> to vector<8x16xf32>
    %580 = arith.mulf %577, %579 : vector<8x16xf32>
    %581 = arith.addf %572, %580 : vector<8x16xf32>
    %582 = vector.extract_strided_slice %293 {offsets = [0, 6], sizes = [8, 1], strides = [1, 1]} : vector<8x8xi32> to vector<8x1xi32>
    %583 = vector.broadcast %582 : vector<8x1xi32> to vector<8x16xi32>
    %584 = arith.cmpi eq, %330, %583 : vector<8x16xi32>
    %585 = arith.extui %584 : vector<8x16xi1> to vector<8x16xi32>
    %586 = arith.sitofp %585 : vector<8x16xi32> to vector<8x16xf32>
    %587 = vector.extract_strided_slice %296 {offsets = [0, 6], sizes = [8, 1], strides = [1, 1]} : vector<8x8xf32> to vector<8x1xf32>
    %588 = vector.broadcast %587 : vector<8x1xf32> to vector<8x16xf32>
    %589 = arith.mulf %586, %588 : vector<8x16xf32>
    %590 = arith.addf %581, %589 : vector<8x16xf32>
    %591 = vector.extract_strided_slice %326 {offsets = [0, 6], sizes = [8, 1], strides = [1, 1]} : vector<8x8xi32> to vector<8x1xi32>
    %592 = vector.broadcast %591 : vector<8x1xi32> to vector<8x16xi32>
    %593 = arith.cmpi eq, %330, %592 : vector<8x16xi32>
    %594 = arith.extui %593 : vector<8x16xi1> to vector<8x16xi32>
    %595 = arith.sitofp %594 : vector<8x16xi32> to vector<8x16xf32>
    %596 = vector.extract_strided_slice %329 {offsets = [0, 6], sizes = [8, 1], strides = [1, 1]} : vector<8x8xf32> to vector<8x1xf32>
    %597 = vector.broadcast %596 : vector<8x1xf32> to vector<8x16xf32>
    %598 = arith.mulf %595, %597 : vector<8x16xf32>
    %599 = arith.addf %590, %598 : vector<8x16xf32>
    %600 = vector.extract_strided_slice %225 {offsets = [0, 7], sizes = [8, 1], strides = [1, 1]} : vector<8x8xi32> to vector<8x1xi32>
    %601 = vector.broadcast %600 : vector<8x1xi32> to vector<8x16xi32>
    %602 = arith.cmpi eq, %330, %601 : vector<8x16xi32>
    %603 = arith.extui %602 : vector<8x16xi1> to vector<8x16xi32>
    %604 = arith.sitofp %603 : vector<8x16xi32> to vector<8x16xf32>
    %605 = vector.extract_strided_slice %228 {offsets = [0, 7], sizes = [8, 1], strides = [1, 1]} : vector<8x8xf32> to vector<8x1xf32>
    %606 = vector.broadcast %605 : vector<8x1xf32> to vector<8x16xf32>
    %607 = arith.mulf %604, %606 : vector<8x16xf32>
    %608 = arith.addf %599, %607 : vector<8x16xf32>
    %609 = vector.extract_strided_slice %258 {offsets = [0, 7], sizes = [8, 1], strides = [1, 1]} : vector<8x8xi32> to vector<8x1xi32>
    %610 = vector.broadcast %609 : vector<8x1xi32> to vector<8x16xi32>
    %611 = arith.cmpi eq, %330, %610 : vector<8x16xi32>
    %612 = arith.extui %611 : vector<8x16xi1> to vector<8x16xi32>
    %613 = arith.sitofp %612 : vector<8x16xi32> to vector<8x16xf32>
    %614 = vector.extract_strided_slice %261 {offsets = [0, 7], sizes = [8, 1], strides = [1, 1]} : vector<8x8xf32> to vector<8x1xf32>
    %615 = vector.broadcast %614 : vector<8x1xf32> to vector<8x16xf32>
    %616 = arith.mulf %613, %615 : vector<8x16xf32>
    %617 = arith.addf %608, %616 : vector<8x16xf32>
    %618 = vector.extract_strided_slice %293 {offsets = [0, 7], sizes = [8, 1], strides = [1, 1]} : vector<8x8xi32> to vector<8x1xi32>
    %619 = vector.broadcast %618 : vector<8x1xi32> to vector<8x16xi32>
    %620 = arith.cmpi eq, %330, %619 : vector<8x16xi32>
    %621 = arith.extui %620 : vector<8x16xi1> to vector<8x16xi32>
    %622 = arith.sitofp %621 : vector<8x16xi32> to vector<8x16xf32>
    %623 = vector.extract_strided_slice %296 {offsets = [0, 7], sizes = [8, 1], strides = [1, 1]} : vector<8x8xf32> to vector<8x1xf32>
    %624 = vector.broadcast %623 : vector<8x1xf32> to vector<8x16xf32>
    %625 = arith.mulf %622, %624 : vector<8x16xf32>
    %626 = arith.addf %617, %625 : vector<8x16xf32>
    %627 = vector.extract_strided_slice %326 {offsets = [0, 7], sizes = [8, 1], strides = [1, 1]} : vector<8x8xi32> to vector<8x1xi32>
    %628 = vector.broadcast %627 : vector<8x1xi32> to vector<8x16xi32>
    %629 = arith.cmpi eq, %330, %628 : vector<8x16xi32>
    %630 = arith.extui %629 : vector<8x16xi1> to vector<8x16xi32>
    %631 = arith.sitofp %630 : vector<8x16xi32> to vector<8x16xf32>
    %632 = vector.extract_strided_slice %329 {offsets = [0, 7], sizes = [8, 1], strides = [1, 1]} : vector<8x8xf32> to vector<8x1xf32>
    %633 = vector.broadcast %632 : vector<8x1xf32> to vector<8x16xf32>
    %634 = arith.mulf %631, %633 : vector<8x16xf32>
    %635 = arith.addf %626, %634 : vector<8x16xf32>
    %636 = vector.extract_strided_slice %331 {offsets = [0, 24], sizes = [16, 8], strides = [1, 1]} : vector<16x32xbf16> to vector<16x8xbf16>
    %637 = arith.truncf %635 : vector<8x16xf32> to vector<8x16xbf16>
    %cst_136 = arith.constant dense<0.000000e+00> : vector<8x8xf32>
    %638 = tpu.matmul %637, %636, %cst_136 {dimension_numbers = #tpu.dot_dimension_numbers<[1], [0], [0], [1], [0, 0, 1, 1], [], []>} : vector<8x16xbf16>, vector<16x8xbf16>, vector<8x8xf32> -> vector<8x8xf32>
    %639 = arith.addf %176, %638 : vector<8x8xf32>
    %640 = vector.extract_strided_slice %150 {offsets = [0, 8], sizes = [8, 8], strides = [1, 1]} : vector<8x32xf32> to vector<8x8xf32>
    %641 = vector.extract_strided_slice %150 {offsets = [0, 24], sizes = [8, 8], strides = [1, 1]} : vector<8x32xf32> to vector<8x8xf32>
    %642 = vector.extract_strided_slice %168 {offsets = [0, 8], sizes = [8, 8], strides = [1, 1]} : vector<8x16xf32> to vector<8x8xf32>
    %cst_137 = arith.constant 8.000000e+00 : f32
    %643 = vector.broadcast %cst_137 : f32 to vector<8x1xf32>
    %644 = arith.mulf %171, %643 : vector<8x1xf32>
    %645 = vector.broadcast %644 : vector<8x1xf32> to vector<8x8xf32>
    %646 = arith.addf %645, %640 : vector<8x8xf32>
    %cst_138 = arith.constant 8.000000e+00 : f32
    %647 = vector.broadcast %cst_138 : f32 to vector<8x1xf32>
    %648 = arith.mulf %172, %647 : vector<8x1xf32>
    %649 = vector.broadcast %648 : vector<8x1xf32> to vector<8x8xf32>
    %650 = arith.addf %649, %641 : vector<8x8xf32>
    %651 = math.floor %646 : vector<8x8xf32>
    %652 = math.floor %650 : vector<8x8xf32>
    %653 = arith.subf %646, %651 : vector<8x8xf32>
    %654 = arith.subf %650, %652 : vector<8x8xf32>
    %cst_139 = arith.constant 1.000000e+00 : f32
    %655 = vector.broadcast %cst_139 : f32 to vector<8x8xf32>
    %656 = arith.subf %655, %654 : vector<8x8xf32>
    %cst_140 = arith.constant 1.000000e+00 : f32
    %657 = vector.broadcast %cst_140 : f32 to vector<8x8xf32>
    %658 = arith.subf %657, %653 : vector<8x8xf32>
    %cst_141 = arith.constant 0.000000e+00 : f32
    %659 = vector.broadcast %cst_141 : f32 to vector<8x8xf32>
    %660 = arith.addf %651, %659 : vector<8x8xf32>
    %cst_142 = arith.constant 0.000000e+00 : f32
    %661 = vector.broadcast %cst_142 : f32 to vector<8x8xf32>
    %662 = arith.addf %652, %661 : vector<8x8xf32>
    %cst_143 = arith.constant 0.000000e+00 : f32
    %663 = vector.broadcast %cst_143 : f32 to vector<8x8xf32>
    %664 = arith.cmpf oge, %660, %663 : vector<8x8xf32>
    %cst_144 = arith.constant 7.000000e+00 : f32
    %665 = vector.broadcast %cst_144 : f32 to vector<8x8xf32>
    %666 = arith.cmpf ole, %660, %665 : vector<8x8xf32>
    %667 = arith.andi %664, %666 : vector<8x8xi1>
    %cst_145 = arith.constant 0.000000e+00 : f32
    %668 = vector.broadcast %cst_145 : f32 to vector<8x8xf32>
    %669 = arith.cmpf oge, %662, %668 : vector<8x8xf32>
    %670 = arith.andi %667, %669 : vector<8x8xi1>
    %cst_146 = arith.constant 7.000000e+00 : f32
    %671 = vector.broadcast %cst_146 : f32 to vector<8x8xf32>
    %672 = arith.cmpf ole, %662, %671 : vector<8x8xf32>
    %673 = arith.andi %670, %672 : vector<8x8xi1>
    %674 = arith.extui %673 : vector<8x8xi1> to vector<8x8xi32>
    %675 = arith.sitofp %674 : vector<8x8xi32> to vector<8x8xf32>
    %cst_147 = arith.constant 0.000000e+00 : f32
    %cst_148 = arith.constant 7.000000e+00 : f32
    %676 = vector.broadcast %cst_147 : f32 to vector<8x8xf32>
    %677 = arith.maximumf %676, %660 : vector<8x8xf32>
    %678 = vector.broadcast %cst_148 : f32 to vector<8x8xf32>
    %679 = arith.minimumf %678, %677 : vector<8x8xf32>
    %680 = arith.fptosi %679 : vector<8x8xf32> to vector<8x8xi32>
    %cst_149 = arith.constant 0.000000e+00 : f32
    %cst_150 = arith.constant 7.000000e+00 : f32
    %681 = vector.broadcast %cst_149 : f32 to vector<8x8xf32>
    %682 = arith.maximumf %681, %662 : vector<8x8xf32>
    %683 = vector.broadcast %cst_150 : f32 to vector<8x8xf32>
    %684 = arith.minimumf %683, %682 : vector<8x8xf32>
    %685 = arith.fptosi %684 : vector<8x8xf32> to vector<8x8xi32>
    %c8_i32 = arith.constant 8 : i32
    %686 = vector.broadcast %c8_i32 : i32 to vector<8x8xi32>
    %687 = arith.muli %685, %686 : vector<8x8xi32>
    %688 = arith.addi %687, %680 : vector<8x8xi32>
    %689 = arith.mulf %656, %658 : vector<8x8xf32>
    %690 = arith.mulf %689, %675 : vector<8x8xf32>
    %691 = arith.mulf %690, %642 : vector<8x8xf32>
    %cst_151 = arith.constant 1.000000e+00 : f32
    %692 = vector.broadcast %cst_151 : f32 to vector<8x8xf32>
    %693 = arith.addf %651, %692 : vector<8x8xf32>
    %cst_152 = arith.constant 0.000000e+00 : f32
    %694 = vector.broadcast %cst_152 : f32 to vector<8x8xf32>
    %695 = arith.addf %652, %694 : vector<8x8xf32>
    %cst_153 = arith.constant 0.000000e+00 : f32
    %696 = vector.broadcast %cst_153 : f32 to vector<8x8xf32>
    %697 = arith.cmpf oge, %693, %696 : vector<8x8xf32>
    %cst_154 = arith.constant 7.000000e+00 : f32
    %698 = vector.broadcast %cst_154 : f32 to vector<8x8xf32>
    %699 = arith.cmpf ole, %693, %698 : vector<8x8xf32>
    %700 = arith.andi %697, %699 : vector<8x8xi1>
    %cst_155 = arith.constant 0.000000e+00 : f32
    %701 = vector.broadcast %cst_155 : f32 to vector<8x8xf32>
    %702 = arith.cmpf oge, %695, %701 : vector<8x8xf32>
    %703 = arith.andi %700, %702 : vector<8x8xi1>
    %cst_156 = arith.constant 7.000000e+00 : f32
    %704 = vector.broadcast %cst_156 : f32 to vector<8x8xf32>
    %705 = arith.cmpf ole, %695, %704 : vector<8x8xf32>
    %706 = arith.andi %703, %705 : vector<8x8xi1>
    %707 = arith.extui %706 : vector<8x8xi1> to vector<8x8xi32>
    %708 = arith.sitofp %707 : vector<8x8xi32> to vector<8x8xf32>
    %cst_157 = arith.constant 0.000000e+00 : f32
    %cst_158 = arith.constant 7.000000e+00 : f32
    %709 = vector.broadcast %cst_157 : f32 to vector<8x8xf32>
    %710 = arith.maximumf %709, %693 : vector<8x8xf32>
    %711 = vector.broadcast %cst_158 : f32 to vector<8x8xf32>
    %712 = arith.minimumf %711, %710 : vector<8x8xf32>
    %713 = arith.fptosi %712 : vector<8x8xf32> to vector<8x8xi32>
    %cst_159 = arith.constant 0.000000e+00 : f32
    %cst_160 = arith.constant 7.000000e+00 : f32
    %714 = vector.broadcast %cst_159 : f32 to vector<8x8xf32>
    %715 = arith.maximumf %714, %695 : vector<8x8xf32>
    %716 = vector.broadcast %cst_160 : f32 to vector<8x8xf32>
    %717 = arith.minimumf %716, %715 : vector<8x8xf32>
    %718 = arith.fptosi %717 : vector<8x8xf32> to vector<8x8xi32>
    %c8_i32_161 = arith.constant 8 : i32
    %719 = vector.broadcast %c8_i32_161 : i32 to vector<8x8xi32>
    %720 = arith.muli %718, %719 : vector<8x8xi32>
    %721 = arith.addi %720, %713 : vector<8x8xi32>
    %722 = arith.mulf %656, %653 : vector<8x8xf32>
    %723 = arith.mulf %722, %708 : vector<8x8xf32>
    %724 = arith.mulf %723, %642 : vector<8x8xf32>
    %cst_162 = arith.constant 1.000000e+00 : f32
    %725 = vector.broadcast %cst_162 : f32 to vector<8x8xf32>
    %726 = arith.subf %725, %653 : vector<8x8xf32>
    %cst_163 = arith.constant 0.000000e+00 : f32
    %727 = vector.broadcast %cst_163 : f32 to vector<8x8xf32>
    %728 = arith.addf %651, %727 : vector<8x8xf32>
    %cst_164 = arith.constant 1.000000e+00 : f32
    %729 = vector.broadcast %cst_164 : f32 to vector<8x8xf32>
    %730 = arith.addf %652, %729 : vector<8x8xf32>
    %cst_165 = arith.constant 0.000000e+00 : f32
    %731 = vector.broadcast %cst_165 : f32 to vector<8x8xf32>
    %732 = arith.cmpf oge, %728, %731 : vector<8x8xf32>
    %cst_166 = arith.constant 7.000000e+00 : f32
    %733 = vector.broadcast %cst_166 : f32 to vector<8x8xf32>
    %734 = arith.cmpf ole, %728, %733 : vector<8x8xf32>
    %735 = arith.andi %732, %734 : vector<8x8xi1>
    %cst_167 = arith.constant 0.000000e+00 : f32
    %736 = vector.broadcast %cst_167 : f32 to vector<8x8xf32>
    %737 = arith.cmpf oge, %730, %736 : vector<8x8xf32>
    %738 = arith.andi %735, %737 : vector<8x8xi1>
    %cst_168 = arith.constant 7.000000e+00 : f32
    %739 = vector.broadcast %cst_168 : f32 to vector<8x8xf32>
    %740 = arith.cmpf ole, %730, %739 : vector<8x8xf32>
    %741 = arith.andi %738, %740 : vector<8x8xi1>
    %742 = arith.extui %741 : vector<8x8xi1> to vector<8x8xi32>
    %743 = arith.sitofp %742 : vector<8x8xi32> to vector<8x8xf32>
    %cst_169 = arith.constant 0.000000e+00 : f32
    %cst_170 = arith.constant 7.000000e+00 : f32
    %744 = vector.broadcast %cst_169 : f32 to vector<8x8xf32>
    %745 = arith.maximumf %744, %728 : vector<8x8xf32>
    %746 = vector.broadcast %cst_170 : f32 to vector<8x8xf32>
    %747 = arith.minimumf %746, %745 : vector<8x8xf32>
    %748 = arith.fptosi %747 : vector<8x8xf32> to vector<8x8xi32>
    %cst_171 = arith.constant 0.000000e+00 : f32
    %cst_172 = arith.constant 7.000000e+00 : f32
    %749 = vector.broadcast %cst_171 : f32 to vector<8x8xf32>
    %750 = arith.maximumf %749, %730 : vector<8x8xf32>
    %751 = vector.broadcast %cst_172 : f32 to vector<8x8xf32>
    %752 = arith.minimumf %751, %750 : vector<8x8xf32>
    %753 = arith.fptosi %752 : vector<8x8xf32> to vector<8x8xi32>
    %c8_i32_173 = arith.constant 8 : i32
    %754 = vector.broadcast %c8_i32_173 : i32 to vector<8x8xi32>
    %755 = arith.muli %753, %754 : vector<8x8xi32>
    %756 = arith.addi %755, %748 : vector<8x8xi32>
    %757 = arith.mulf %654, %726 : vector<8x8xf32>
    %758 = arith.mulf %757, %743 : vector<8x8xf32>
    %759 = arith.mulf %758, %642 : vector<8x8xf32>
    %cst_174 = arith.constant 1.000000e+00 : f32
    %760 = vector.broadcast %cst_174 : f32 to vector<8x8xf32>
    %761 = arith.addf %651, %760 : vector<8x8xf32>
    %cst_175 = arith.constant 1.000000e+00 : f32
    %762 = vector.broadcast %cst_175 : f32 to vector<8x8xf32>
    %763 = arith.addf %652, %762 : vector<8x8xf32>
    %cst_176 = arith.constant 0.000000e+00 : f32
    %764 = vector.broadcast %cst_176 : f32 to vector<8x8xf32>
    %765 = arith.cmpf oge, %761, %764 : vector<8x8xf32>
    %cst_177 = arith.constant 7.000000e+00 : f32
    %766 = vector.broadcast %cst_177 : f32 to vector<8x8xf32>
    %767 = arith.cmpf ole, %761, %766 : vector<8x8xf32>
    %768 = arith.andi %765, %767 : vector<8x8xi1>
    %cst_178 = arith.constant 0.000000e+00 : f32
    %769 = vector.broadcast %cst_178 : f32 to vector<8x8xf32>
    %770 = arith.cmpf oge, %763, %769 : vector<8x8xf32>
    %771 = arith.andi %768, %770 : vector<8x8xi1>
    %cst_179 = arith.constant 7.000000e+00 : f32
    %772 = vector.broadcast %cst_179 : f32 to vector<8x8xf32>
    %773 = arith.cmpf ole, %763, %772 : vector<8x8xf32>
    %774 = arith.andi %771, %773 : vector<8x8xi1>
    %775 = arith.extui %774 : vector<8x8xi1> to vector<8x8xi32>
    %776 = arith.sitofp %775 : vector<8x8xi32> to vector<8x8xf32>
    %cst_180 = arith.constant 0.000000e+00 : f32
    %cst_181 = arith.constant 7.000000e+00 : f32
    %777 = vector.broadcast %cst_180 : f32 to vector<8x8xf32>
    %778 = arith.maximumf %777, %761 : vector<8x8xf32>
    %779 = vector.broadcast %cst_181 : f32 to vector<8x8xf32>
    %780 = arith.minimumf %779, %778 : vector<8x8xf32>
    %781 = arith.fptosi %780 : vector<8x8xf32> to vector<8x8xi32>
    %cst_182 = arith.constant 0.000000e+00 : f32
    %cst_183 = arith.constant 7.000000e+00 : f32
    %782 = vector.broadcast %cst_182 : f32 to vector<8x8xf32>
    %783 = arith.maximumf %782, %763 : vector<8x8xf32>
    %784 = vector.broadcast %cst_183 : f32 to vector<8x8xf32>
    %785 = arith.minimumf %784, %783 : vector<8x8xf32>
    %786 = arith.fptosi %785 : vector<8x8xf32> to vector<8x8xi32>
    %c8_i32_184 = arith.constant 8 : i32
    %787 = vector.broadcast %c8_i32_184 : i32 to vector<8x8xi32>
    %788 = arith.muli %786, %787 : vector<8x8xi32>
    %789 = arith.addi %788, %781 : vector<8x8xi32>
    %790 = arith.mulf %654, %653 : vector<8x8xf32>
    %791 = arith.mulf %790, %776 : vector<8x8xf32>
    %792 = arith.mulf %791, %642 : vector<8x8xf32>
    %793 = tpu.iota {dimensions = array<i32: 1>} : vector<8x64xi32>
    %794 = vector.extract_strided_slice %144 {offsets = [16, 0], sizes = [64, 32], strides = [1, 1]} : vector<80x32xbf16> to vector<64x32xbf16>
    %cst_185 = arith.constant 0.000000e+00 : f32
    %795 = vector.broadcast %cst_185 : f32 to vector<8x64xf32>
    %796 = vector.extract_strided_slice %688 {offsets = [0, 0], sizes = [8, 1], strides = [1, 1]} : vector<8x8xi32> to vector<8x1xi32>
    %797 = vector.broadcast %796 : vector<8x1xi32> to vector<8x64xi32>
    %798 = arith.cmpi eq, %793, %797 : vector<8x64xi32>
    %799 = arith.extui %798 : vector<8x64xi1> to vector<8x64xi32>
    %800 = arith.sitofp %799 : vector<8x64xi32> to vector<8x64xf32>
    %801 = vector.extract_strided_slice %691 {offsets = [0, 0], sizes = [8, 1], strides = [1, 1]} : vector<8x8xf32> to vector<8x1xf32>
    %802 = vector.broadcast %801 : vector<8x1xf32> to vector<8x64xf32>
    %803 = arith.mulf %800, %802 : vector<8x64xf32>
    %804 = arith.addf %795, %803 : vector<8x64xf32>
    %805 = vector.extract_strided_slice %721 {offsets = [0, 0], sizes = [8, 1], strides = [1, 1]} : vector<8x8xi32> to vector<8x1xi32>
    %806 = vector.broadcast %805 : vector<8x1xi32> to vector<8x64xi32>
    %807 = arith.cmpi eq, %793, %806 : vector<8x64xi32>
    %808 = arith.extui %807 : vector<8x64xi1> to vector<8x64xi32>
    %809 = arith.sitofp %808 : vector<8x64xi32> to vector<8x64xf32>
    %810 = vector.extract_strided_slice %724 {offsets = [0, 0], sizes = [8, 1], strides = [1, 1]} : vector<8x8xf32> to vector<8x1xf32>
    %811 = vector.broadcast %810 : vector<8x1xf32> to vector<8x64xf32>
    %812 = arith.mulf %809, %811 : vector<8x64xf32>
    %813 = arith.addf %804, %812 : vector<8x64xf32>
    %814 = vector.extract_strided_slice %756 {offsets = [0, 0], sizes = [8, 1], strides = [1, 1]} : vector<8x8xi32> to vector<8x1xi32>
    %815 = vector.broadcast %814 : vector<8x1xi32> to vector<8x64xi32>
    %816 = arith.cmpi eq, %793, %815 : vector<8x64xi32>
    %817 = arith.extui %816 : vector<8x64xi1> to vector<8x64xi32>
    %818 = arith.sitofp %817 : vector<8x64xi32> to vector<8x64xf32>
    %819 = vector.extract_strided_slice %759 {offsets = [0, 0], sizes = [8, 1], strides = [1, 1]} : vector<8x8xf32> to vector<8x1xf32>
    %820 = vector.broadcast %819 : vector<8x1xf32> to vector<8x64xf32>
    %821 = arith.mulf %818, %820 : vector<8x64xf32>
    %822 = arith.addf %813, %821 : vector<8x64xf32>
    %823 = vector.extract_strided_slice %789 {offsets = [0, 0], sizes = [8, 1], strides = [1, 1]} : vector<8x8xi32> to vector<8x1xi32>
    %824 = vector.broadcast %823 : vector<8x1xi32> to vector<8x64xi32>
    %825 = arith.cmpi eq, %793, %824 : vector<8x64xi32>
    %826 = arith.extui %825 : vector<8x64xi1> to vector<8x64xi32>
    %827 = arith.sitofp %826 : vector<8x64xi32> to vector<8x64xf32>
    %828 = vector.extract_strided_slice %792 {offsets = [0, 0], sizes = [8, 1], strides = [1, 1]} : vector<8x8xf32> to vector<8x1xf32>
    %829 = vector.broadcast %828 : vector<8x1xf32> to vector<8x64xf32>
    %830 = arith.mulf %827, %829 : vector<8x64xf32>
    %831 = arith.addf %822, %830 : vector<8x64xf32>
    %832 = vector.extract_strided_slice %688 {offsets = [0, 1], sizes = [8, 1], strides = [1, 1]} : vector<8x8xi32> to vector<8x1xi32>
    %833 = vector.broadcast %832 : vector<8x1xi32> to vector<8x64xi32>
    %834 = arith.cmpi eq, %793, %833 : vector<8x64xi32>
    %835 = arith.extui %834 : vector<8x64xi1> to vector<8x64xi32>
    %836 = arith.sitofp %835 : vector<8x64xi32> to vector<8x64xf32>
    %837 = vector.extract_strided_slice %691 {offsets = [0, 1], sizes = [8, 1], strides = [1, 1]} : vector<8x8xf32> to vector<8x1xf32>
    %838 = vector.broadcast %837 : vector<8x1xf32> to vector<8x64xf32>
    %839 = arith.mulf %836, %838 : vector<8x64xf32>
    %840 = arith.addf %831, %839 : vector<8x64xf32>
    %841 = vector.extract_strided_slice %721 {offsets = [0, 1], sizes = [8, 1], strides = [1, 1]} : vector<8x8xi32> to vector<8x1xi32>
    %842 = vector.broadcast %841 : vector<8x1xi32> to vector<8x64xi32>
    %843 = arith.cmpi eq, %793, %842 : vector<8x64xi32>
    %844 = arith.extui %843 : vector<8x64xi1> to vector<8x64xi32>
    %845 = arith.sitofp %844 : vector<8x64xi32> to vector<8x64xf32>
    %846 = vector.extract_strided_slice %724 {offsets = [0, 1], sizes = [8, 1], strides = [1, 1]} : vector<8x8xf32> to vector<8x1xf32>
    %847 = vector.broadcast %846 : vector<8x1xf32> to vector<8x64xf32>
    %848 = arith.mulf %845, %847 : vector<8x64xf32>
    %849 = arith.addf %840, %848 : vector<8x64xf32>
    %850 = vector.extract_strided_slice %756 {offsets = [0, 1], sizes = [8, 1], strides = [1, 1]} : vector<8x8xi32> to vector<8x1xi32>
    %851 = vector.broadcast %850 : vector<8x1xi32> to vector<8x64xi32>
    %852 = arith.cmpi eq, %793, %851 : vector<8x64xi32>
    %853 = arith.extui %852 : vector<8x64xi1> to vector<8x64xi32>
    %854 = arith.sitofp %853 : vector<8x64xi32> to vector<8x64xf32>
    %855 = vector.extract_strided_slice %759 {offsets = [0, 1], sizes = [8, 1], strides = [1, 1]} : vector<8x8xf32> to vector<8x1xf32>
    %856 = vector.broadcast %855 : vector<8x1xf32> to vector<8x64xf32>
    %857 = arith.mulf %854, %856 : vector<8x64xf32>
    %858 = arith.addf %849, %857 : vector<8x64xf32>
    %859 = vector.extract_strided_slice %789 {offsets = [0, 1], sizes = [8, 1], strides = [1, 1]} : vector<8x8xi32> to vector<8x1xi32>
    %860 = vector.broadcast %859 : vector<8x1xi32> to vector<8x64xi32>
    %861 = arith.cmpi eq, %793, %860 : vector<8x64xi32>
    %862 = arith.extui %861 : vector<8x64xi1> to vector<8x64xi32>
    %863 = arith.sitofp %862 : vector<8x64xi32> to vector<8x64xf32>
    %864 = vector.extract_strided_slice %792 {offsets = [0, 1], sizes = [8, 1], strides = [1, 1]} : vector<8x8xf32> to vector<8x1xf32>
    %865 = vector.broadcast %864 : vector<8x1xf32> to vector<8x64xf32>
    %866 = arith.mulf %863, %865 : vector<8x64xf32>
    %867 = arith.addf %858, %866 : vector<8x64xf32>
    %868 = vector.extract_strided_slice %794 {offsets = [0, 0], sizes = [64, 8], strides = [1, 1]} : vector<64x32xbf16> to vector<64x8xbf16>
    %869 = arith.truncf %867 : vector<8x64xf32> to vector<8x64xbf16>
    %cst_186 = arith.constant dense<0.000000e+00> : vector<8x8xf32>
    %870 = tpu.matmul %869, %868, %cst_186 {dimension_numbers = #tpu.dot_dimension_numbers<[1], [0], [0], [1], [0, 0, 1, 1], [], []>} : vector<8x64xbf16>, vector<64x8xbf16>, vector<8x8xf32> -> vector<8x8xf32>
    %871 = arith.addf %408, %870 : vector<8x8xf32>
    %cst_187 = arith.constant 0.000000e+00 : f32
    %872 = vector.broadcast %cst_187 : f32 to vector<8x64xf32>
    %873 = vector.extract_strided_slice %688 {offsets = [0, 2], sizes = [8, 1], strides = [1, 1]} : vector<8x8xi32> to vector<8x1xi32>
    %874 = vector.broadcast %873 : vector<8x1xi32> to vector<8x64xi32>
    %875 = arith.cmpi eq, %793, %874 : vector<8x64xi32>
    %876 = arith.extui %875 : vector<8x64xi1> to vector<8x64xi32>
    %877 = arith.sitofp %876 : vector<8x64xi32> to vector<8x64xf32>
    %878 = vector.extract_strided_slice %691 {offsets = [0, 2], sizes = [8, 1], strides = [1, 1]} : vector<8x8xf32> to vector<8x1xf32>
    %879 = vector.broadcast %878 : vector<8x1xf32> to vector<8x64xf32>
    %880 = arith.mulf %877, %879 : vector<8x64xf32>
    %881 = arith.addf %872, %880 : vector<8x64xf32>
    %882 = vector.extract_strided_slice %721 {offsets = [0, 2], sizes = [8, 1], strides = [1, 1]} : vector<8x8xi32> to vector<8x1xi32>
    %883 = vector.broadcast %882 : vector<8x1xi32> to vector<8x64xi32>
    %884 = arith.cmpi eq, %793, %883 : vector<8x64xi32>
    %885 = arith.extui %884 : vector<8x64xi1> to vector<8x64xi32>
    %886 = arith.sitofp %885 : vector<8x64xi32> to vector<8x64xf32>
    %887 = vector.extract_strided_slice %724 {offsets = [0, 2], sizes = [8, 1], strides = [1, 1]} : vector<8x8xf32> to vector<8x1xf32>
    %888 = vector.broadcast %887 : vector<8x1xf32> to vector<8x64xf32>
    %889 = arith.mulf %886, %888 : vector<8x64xf32>
    %890 = arith.addf %881, %889 : vector<8x64xf32>
    %891 = vector.extract_strided_slice %756 {offsets = [0, 2], sizes = [8, 1], strides = [1, 1]} : vector<8x8xi32> to vector<8x1xi32>
    %892 = vector.broadcast %891 : vector<8x1xi32> to vector<8x64xi32>
    %893 = arith.cmpi eq, %793, %892 : vector<8x64xi32>
    %894 = arith.extui %893 : vector<8x64xi1> to vector<8x64xi32>
    %895 = arith.sitofp %894 : vector<8x64xi32> to vector<8x64xf32>
    %896 = vector.extract_strided_slice %759 {offsets = [0, 2], sizes = [8, 1], strides = [1, 1]} : vector<8x8xf32> to vector<8x1xf32>
    %897 = vector.broadcast %896 : vector<8x1xf32> to vector<8x64xf32>
    %898 = arith.mulf %895, %897 : vector<8x64xf32>
    %899 = arith.addf %890, %898 : vector<8x64xf32>
    %900 = vector.extract_strided_slice %789 {offsets = [0, 2], sizes = [8, 1], strides = [1, 1]} : vector<8x8xi32> to vector<8x1xi32>
    %901 = vector.broadcast %900 : vector<8x1xi32> to vector<8x64xi32>
    %902 = arith.cmpi eq, %793, %901 : vector<8x64xi32>
    %903 = arith.extui %902 : vector<8x64xi1> to vector<8x64xi32>
    %904 = arith.sitofp %903 : vector<8x64xi32> to vector<8x64xf32>
    %905 = vector.extract_strided_slice %792 {offsets = [0, 2], sizes = [8, 1], strides = [1, 1]} : vector<8x8xf32> to vector<8x1xf32>
    %906 = vector.broadcast %905 : vector<8x1xf32> to vector<8x64xf32>
    %907 = arith.mulf %904, %906 : vector<8x64xf32>
    %908 = arith.addf %899, %907 : vector<8x64xf32>
    %909 = vector.extract_strided_slice %688 {offsets = [0, 3], sizes = [8, 1], strides = [1, 1]} : vector<8x8xi32> to vector<8x1xi32>
    %910 = vector.broadcast %909 : vector<8x1xi32> to vector<8x64xi32>
    %911 = arith.cmpi eq, %793, %910 : vector<8x64xi32>
    %912 = arith.extui %911 : vector<8x64xi1> to vector<8x64xi32>
    %913 = arith.sitofp %912 : vector<8x64xi32> to vector<8x64xf32>
    %914 = vector.extract_strided_slice %691 {offsets = [0, 3], sizes = [8, 1], strides = [1, 1]} : vector<8x8xf32> to vector<8x1xf32>
    %915 = vector.broadcast %914 : vector<8x1xf32> to vector<8x64xf32>
    %916 = arith.mulf %913, %915 : vector<8x64xf32>
    %917 = arith.addf %908, %916 : vector<8x64xf32>
    %918 = vector.extract_strided_slice %721 {offsets = [0, 3], sizes = [8, 1], strides = [1, 1]} : vector<8x8xi32> to vector<8x1xi32>
    %919 = vector.broadcast %918 : vector<8x1xi32> to vector<8x64xi32>
    %920 = arith.cmpi eq, %793, %919 : vector<8x64xi32>
    %921 = arith.extui %920 : vector<8x64xi1> to vector<8x64xi32>
    %922 = arith.sitofp %921 : vector<8x64xi32> to vector<8x64xf32>
    %923 = vector.extract_strided_slice %724 {offsets = [0, 3], sizes = [8, 1], strides = [1, 1]} : vector<8x8xf32> to vector<8x1xf32>
    %924 = vector.broadcast %923 : vector<8x1xf32> to vector<8x64xf32>
    %925 = arith.mulf %922, %924 : vector<8x64xf32>
    %926 = arith.addf %917, %925 : vector<8x64xf32>
    %927 = vector.extract_strided_slice %756 {offsets = [0, 3], sizes = [8, 1], strides = [1, 1]} : vector<8x8xi32> to vector<8x1xi32>
    %928 = vector.broadcast %927 : vector<8x1xi32> to vector<8x64xi32>
    %929 = arith.cmpi eq, %793, %928 : vector<8x64xi32>
    %930 = arith.extui %929 : vector<8x64xi1> to vector<8x64xi32>
    %931 = arith.sitofp %930 : vector<8x64xi32> to vector<8x64xf32>
    %932 = vector.extract_strided_slice %759 {offsets = [0, 3], sizes = [8, 1], strides = [1, 1]} : vector<8x8xf32> to vector<8x1xf32>
    %933 = vector.broadcast %932 : vector<8x1xf32> to vector<8x64xf32>
    %934 = arith.mulf %931, %933 : vector<8x64xf32>
    %935 = arith.addf %926, %934 : vector<8x64xf32>
    %936 = vector.extract_strided_slice %789 {offsets = [0, 3], sizes = [8, 1], strides = [1, 1]} : vector<8x8xi32> to vector<8x1xi32>
    %937 = vector.broadcast %936 : vector<8x1xi32> to vector<8x64xi32>
    %938 = arith.cmpi eq, %793, %937 : vector<8x64xi32>
    %939 = arith.extui %938 : vector<8x64xi1> to vector<8x64xi32>
    %940 = arith.sitofp %939 : vector<8x64xi32> to vector<8x64xf32>
    %941 = vector.extract_strided_slice %792 {offsets = [0, 3], sizes = [8, 1], strides = [1, 1]} : vector<8x8xf32> to vector<8x1xf32>
    %942 = vector.broadcast %941 : vector<8x1xf32> to vector<8x64xf32>
    %943 = arith.mulf %940, %942 : vector<8x64xf32>
    %944 = arith.addf %935, %943 : vector<8x64xf32>
    %945 = vector.extract_strided_slice %794 {offsets = [0, 8], sizes = [64, 8], strides = [1, 1]} : vector<64x32xbf16> to vector<64x8xbf16>
    %946 = arith.truncf %944 : vector<8x64xf32> to vector<8x64xbf16>
    %cst_188 = arith.constant dense<0.000000e+00> : vector<8x8xf32>
    %947 = tpu.matmul %946, %945, %cst_188 {dimension_numbers = #tpu.dot_dimension_numbers<[1], [0], [0], [1], [0, 0, 1, 1], [], []>} : vector<8x64xbf16>, vector<64x8xbf16>, vector<8x8xf32> -> vector<8x8xf32>
    %948 = arith.addf %485, %947 : vector<8x8xf32>
    %cst_189 = arith.constant 0.000000e+00 : f32
    %949 = vector.broadcast %cst_189 : f32 to vector<8x64xf32>
    %950 = vector.extract_strided_slice %688 {offsets = [0, 4], sizes = [8, 1], strides = [1, 1]} : vector<8x8xi32> to vector<8x1xi32>
    %951 = vector.broadcast %950 : vector<8x1xi32> to vector<8x64xi32>
    %952 = arith.cmpi eq, %793, %951 : vector<8x64xi32>
    %953 = arith.extui %952 : vector<8x64xi1> to vector<8x64xi32>
    %954 = arith.sitofp %953 : vector<8x64xi32> to vector<8x64xf32>
    %955 = vector.extract_strided_slice %691 {offsets = [0, 4], sizes = [8, 1], strides = [1, 1]} : vector<8x8xf32> to vector<8x1xf32>
    %956 = vector.broadcast %955 : vector<8x1xf32> to vector<8x64xf32>
    %957 = arith.mulf %954, %956 : vector<8x64xf32>
    %958 = arith.addf %949, %957 : vector<8x64xf32>
    %959 = vector.extract_strided_slice %721 {offsets = [0, 4], sizes = [8, 1], strides = [1, 1]} : vector<8x8xi32> to vector<8x1xi32>
    %960 = vector.broadcast %959 : vector<8x1xi32> to vector<8x64xi32>
    %961 = arith.cmpi eq, %793, %960 : vector<8x64xi32>
    %962 = arith.extui %961 : vector<8x64xi1> to vector<8x64xi32>
    %963 = arith.sitofp %962 : vector<8x64xi32> to vector<8x64xf32>
    %964 = vector.extract_strided_slice %724 {offsets = [0, 4], sizes = [8, 1], strides = [1, 1]} : vector<8x8xf32> to vector<8x1xf32>
    %965 = vector.broadcast %964 : vector<8x1xf32> to vector<8x64xf32>
    %966 = arith.mulf %963, %965 : vector<8x64xf32>
    %967 = arith.addf %958, %966 : vector<8x64xf32>
    %968 = vector.extract_strided_slice %756 {offsets = [0, 4], sizes = [8, 1], strides = [1, 1]} : vector<8x8xi32> to vector<8x1xi32>
    %969 = vector.broadcast %968 : vector<8x1xi32> to vector<8x64xi32>
    %970 = arith.cmpi eq, %793, %969 : vector<8x64xi32>
    %971 = arith.extui %970 : vector<8x64xi1> to vector<8x64xi32>
    %972 = arith.sitofp %971 : vector<8x64xi32> to vector<8x64xf32>
    %973 = vector.extract_strided_slice %759 {offsets = [0, 4], sizes = [8, 1], strides = [1, 1]} : vector<8x8xf32> to vector<8x1xf32>
    %974 = vector.broadcast %973 : vector<8x1xf32> to vector<8x64xf32>
    %975 = arith.mulf %972, %974 : vector<8x64xf32>
    %976 = arith.addf %967, %975 : vector<8x64xf32>
    %977 = vector.extract_strided_slice %789 {offsets = [0, 4], sizes = [8, 1], strides = [1, 1]} : vector<8x8xi32> to vector<8x1xi32>
    %978 = vector.broadcast %977 : vector<8x1xi32> to vector<8x64xi32>
    %979 = arith.cmpi eq, %793, %978 : vector<8x64xi32>
    %980 = arith.extui %979 : vector<8x64xi1> to vector<8x64xi32>
    %981 = arith.sitofp %980 : vector<8x64xi32> to vector<8x64xf32>
    %982 = vector.extract_strided_slice %792 {offsets = [0, 4], sizes = [8, 1], strides = [1, 1]} : vector<8x8xf32> to vector<8x1xf32>
    %983 = vector.broadcast %982 : vector<8x1xf32> to vector<8x64xf32>
    %984 = arith.mulf %981, %983 : vector<8x64xf32>
    %985 = arith.addf %976, %984 : vector<8x64xf32>
    %986 = vector.extract_strided_slice %688 {offsets = [0, 5], sizes = [8, 1], strides = [1, 1]} : vector<8x8xi32> to vector<8x1xi32>
    %987 = vector.broadcast %986 : vector<8x1xi32> to vector<8x64xi32>
    %988 = arith.cmpi eq, %793, %987 : vector<8x64xi32>
    %989 = arith.extui %988 : vector<8x64xi1> to vector<8x64xi32>
    %990 = arith.sitofp %989 : vector<8x64xi32> to vector<8x64xf32>
    %991 = vector.extract_strided_slice %691 {offsets = [0, 5], sizes = [8, 1], strides = [1, 1]} : vector<8x8xf32> to vector<8x1xf32>
    %992 = vector.broadcast %991 : vector<8x1xf32> to vector<8x64xf32>
    %993 = arith.mulf %990, %992 : vector<8x64xf32>
    %994 = arith.addf %985, %993 : vector<8x64xf32>
    %995 = vector.extract_strided_slice %721 {offsets = [0, 5], sizes = [8, 1], strides = [1, 1]} : vector<8x8xi32> to vector<8x1xi32>
    %996 = vector.broadcast %995 : vector<8x1xi32> to vector<8x64xi32>
    %997 = arith.cmpi eq, %793, %996 : vector<8x64xi32>
    %998 = arith.extui %997 : vector<8x64xi1> to vector<8x64xi32>
    %999 = arith.sitofp %998 : vector<8x64xi32> to vector<8x64xf32>
    %1000 = vector.extract_strided_slice %724 {offsets = [0, 5], sizes = [8, 1], strides = [1, 1]} : vector<8x8xf32> to vector<8x1xf32>
    %1001 = vector.broadcast %1000 : vector<8x1xf32> to vector<8x64xf32>
    %1002 = arith.mulf %999, %1001 : vector<8x64xf32>
    %1003 = arith.addf %994, %1002 : vector<8x64xf32>
    %1004 = vector.extract_strided_slice %756 {offsets = [0, 5], sizes = [8, 1], strides = [1, 1]} : vector<8x8xi32> to vector<8x1xi32>
    %1005 = vector.broadcast %1004 : vector<8x1xi32> to vector<8x64xi32>
    %1006 = arith.cmpi eq, %793, %1005 : vector<8x64xi32>
    %1007 = arith.extui %1006 : vector<8x64xi1> to vector<8x64xi32>
    %1008 = arith.sitofp %1007 : vector<8x64xi32> to vector<8x64xf32>
    %1009 = vector.extract_strided_slice %759 {offsets = [0, 5], sizes = [8, 1], strides = [1, 1]} : vector<8x8xf32> to vector<8x1xf32>
    %1010 = vector.broadcast %1009 : vector<8x1xf32> to vector<8x64xf32>
    %1011 = arith.mulf %1008, %1010 : vector<8x64xf32>
    %1012 = arith.addf %1003, %1011 : vector<8x64xf32>
    %1013 = vector.extract_strided_slice %789 {offsets = [0, 5], sizes = [8, 1], strides = [1, 1]} : vector<8x8xi32> to vector<8x1xi32>
    %1014 = vector.broadcast %1013 : vector<8x1xi32> to vector<8x64xi32>
    %1015 = arith.cmpi eq, %793, %1014 : vector<8x64xi32>
    %1016 = arith.extui %1015 : vector<8x64xi1> to vector<8x64xi32>
    %1017 = arith.sitofp %1016 : vector<8x64xi32> to vector<8x64xf32>
    %1018 = vector.extract_strided_slice %792 {offsets = [0, 5], sizes = [8, 1], strides = [1, 1]} : vector<8x8xf32> to vector<8x1xf32>
    %1019 = vector.broadcast %1018 : vector<8x1xf32> to vector<8x64xf32>
    %1020 = arith.mulf %1017, %1019 : vector<8x64xf32>
    %1021 = arith.addf %1012, %1020 : vector<8x64xf32>
    %1022 = vector.extract_strided_slice %794 {offsets = [0, 16], sizes = [64, 8], strides = [1, 1]} : vector<64x32xbf16> to vector<64x8xbf16>
    %1023 = arith.truncf %1021 : vector<8x64xf32> to vector<8x64xbf16>
    %cst_190 = arith.constant dense<0.000000e+00> : vector<8x8xf32>
    %1024 = tpu.matmul %1023, %1022, %cst_190 {dimension_numbers = #tpu.dot_dimension_numbers<[1], [0], [0], [1], [0, 0, 1, 1], [], []>} : vector<8x64xbf16>, vector<64x8xbf16>, vector<8x8xf32> -> vector<8x8xf32>
    %1025 = arith.addf %562, %1024 : vector<8x8xf32>
    %cst_191 = arith.constant 0.000000e+00 : f32
    %1026 = vector.broadcast %cst_191 : f32 to vector<8x64xf32>
    %1027 = vector.extract_strided_slice %688 {offsets = [0, 6], sizes = [8, 1], strides = [1, 1]} : vector<8x8xi32> to vector<8x1xi32>
    %1028 = vector.broadcast %1027 : vector<8x1xi32> to vector<8x64xi32>
    %1029 = arith.cmpi eq, %793, %1028 : vector<8x64xi32>
    %1030 = arith.extui %1029 : vector<8x64xi1> to vector<8x64xi32>
    %1031 = arith.sitofp %1030 : vector<8x64xi32> to vector<8x64xf32>
    %1032 = vector.extract_strided_slice %691 {offsets = [0, 6], sizes = [8, 1], strides = [1, 1]} : vector<8x8xf32> to vector<8x1xf32>
    %1033 = vector.broadcast %1032 : vector<8x1xf32> to vector<8x64xf32>
    %1034 = arith.mulf %1031, %1033 : vector<8x64xf32>
    %1035 = arith.addf %1026, %1034 : vector<8x64xf32>
    %1036 = vector.extract_strided_slice %721 {offsets = [0, 6], sizes = [8, 1], strides = [1, 1]} : vector<8x8xi32> to vector<8x1xi32>
    %1037 = vector.broadcast %1036 : vector<8x1xi32> to vector<8x64xi32>
    %1038 = arith.cmpi eq, %793, %1037 : vector<8x64xi32>
    %1039 = arith.extui %1038 : vector<8x64xi1> to vector<8x64xi32>
    %1040 = arith.sitofp %1039 : vector<8x64xi32> to vector<8x64xf32>
    %1041 = vector.extract_strided_slice %724 {offsets = [0, 6], sizes = [8, 1], strides = [1, 1]} : vector<8x8xf32> to vector<8x1xf32>
    %1042 = vector.broadcast %1041 : vector<8x1xf32> to vector<8x64xf32>
    %1043 = arith.mulf %1040, %1042 : vector<8x64xf32>
    %1044 = arith.addf %1035, %1043 : vector<8x64xf32>
    %1045 = vector.extract_strided_slice %756 {offsets = [0, 6], sizes = [8, 1], strides = [1, 1]} : vector<8x8xi32> to vector<8x1xi32>
    %1046 = vector.broadcast %1045 : vector<8x1xi32> to vector<8x64xi32>
    %1047 = arith.cmpi eq, %793, %1046 : vector<8x64xi32>
    %1048 = arith.extui %1047 : vector<8x64xi1> to vector<8x64xi32>
    %1049 = arith.sitofp %1048 : vector<8x64xi32> to vector<8x64xf32>
    %1050 = vector.extract_strided_slice %759 {offsets = [0, 6], sizes = [8, 1], strides = [1, 1]} : vector<8x8xf32> to vector<8x1xf32>
    %1051 = vector.broadcast %1050 : vector<8x1xf32> to vector<8x64xf32>
    %1052 = arith.mulf %1049, %1051 : vector<8x64xf32>
    %1053 = arith.addf %1044, %1052 : vector<8x64xf32>
    %1054 = vector.extract_strided_slice %789 {offsets = [0, 6], sizes = [8, 1], strides = [1, 1]} : vector<8x8xi32> to vector<8x1xi32>
    %1055 = vector.broadcast %1054 : vector<8x1xi32> to vector<8x64xi32>
    %1056 = arith.cmpi eq, %793, %1055 : vector<8x64xi32>
    %1057 = arith.extui %1056 : vector<8x64xi1> to vector<8x64xi32>
    %1058 = arith.sitofp %1057 : vector<8x64xi32> to vector<8x64xf32>
    %1059 = vector.extract_strided_slice %792 {offsets = [0, 6], sizes = [8, 1], strides = [1, 1]} : vector<8x8xf32> to vector<8x1xf32>
    %1060 = vector.broadcast %1059 : vector<8x1xf32> to vector<8x64xf32>
    %1061 = arith.mulf %1058, %1060 : vector<8x64xf32>
    %1062 = arith.addf %1053, %1061 : vector<8x64xf32>
    %1063 = vector.extract_strided_slice %688 {offsets = [0, 7], sizes = [8, 1], strides = [1, 1]} : vector<8x8xi32> to vector<8x1xi32>
    %1064 = vector.broadcast %1063 : vector<8x1xi32> to vector<8x64xi32>
    %1065 = arith.cmpi eq, %793, %1064 : vector<8x64xi32>
    %1066 = arith.extui %1065 : vector<8x64xi1> to vector<8x64xi32>
    %1067 = arith.sitofp %1066 : vector<8x64xi32> to vector<8x64xf32>
    %1068 = vector.extract_strided_slice %691 {offsets = [0, 7], sizes = [8, 1], strides = [1, 1]} : vector<8x8xf32> to vector<8x1xf32>
    %1069 = vector.broadcast %1068 : vector<8x1xf32> to vector<8x64xf32>
    %1070 = arith.mulf %1067, %1069 : vector<8x64xf32>
    %1071 = arith.addf %1062, %1070 : vector<8x64xf32>
    %1072 = vector.extract_strided_slice %721 {offsets = [0, 7], sizes = [8, 1], strides = [1, 1]} : vector<8x8xi32> to vector<8x1xi32>
    %1073 = vector.broadcast %1072 : vector<8x1xi32> to vector<8x64xi32>
    %1074 = arith.cmpi eq, %793, %1073 : vector<8x64xi32>
    %1075 = arith.extui %1074 : vector<8x64xi1> to vector<8x64xi32>
    %1076 = arith.sitofp %1075 : vector<8x64xi32> to vector<8x64xf32>
    %1077 = vector.extract_strided_slice %724 {offsets = [0, 7], sizes = [8, 1], strides = [1, 1]} : vector<8x8xf32> to vector<8x1xf32>
    %1078 = vector.broadcast %1077 : vector<8x1xf32> to vector<8x64xf32>
    %1079 = arith.mulf %1076, %1078 : vector<8x64xf32>
    %1080 = arith.addf %1071, %1079 : vector<8x64xf32>
    %1081 = vector.extract_strided_slice %756 {offsets = [0, 7], sizes = [8, 1], strides = [1, 1]} : vector<8x8xi32> to vector<8x1xi32>
    %1082 = vector.broadcast %1081 : vector<8x1xi32> to vector<8x64xi32>
    %1083 = arith.cmpi eq, %793, %1082 : vector<8x64xi32>
    %1084 = arith.extui %1083 : vector<8x64xi1> to vector<8x64xi32>
    %1085 = arith.sitofp %1084 : vector<8x64xi32> to vector<8x64xf32>
    %1086 = vector.extract_strided_slice %759 {offsets = [0, 7], sizes = [8, 1], strides = [1, 1]} : vector<8x8xf32> to vector<8x1xf32>
    %1087 = vector.broadcast %1086 : vector<8x1xf32> to vector<8x64xf32>
    %1088 = arith.mulf %1085, %1087 : vector<8x64xf32>
    %1089 = arith.addf %1080, %1088 : vector<8x64xf32>
    %1090 = vector.extract_strided_slice %789 {offsets = [0, 7], sizes = [8, 1], strides = [1, 1]} : vector<8x8xi32> to vector<8x1xi32>
    %1091 = vector.broadcast %1090 : vector<8x1xi32> to vector<8x64xi32>
    %1092 = arith.cmpi eq, %793, %1091 : vector<8x64xi32>
    %1093 = arith.extui %1092 : vector<8x64xi1> to vector<8x64xi32>
    %1094 = arith.sitofp %1093 : vector<8x64xi32> to vector<8x64xf32>
    %1095 = vector.extract_strided_slice %792 {offsets = [0, 7], sizes = [8, 1], strides = [1, 1]} : vector<8x8xf32> to vector<8x1xf32>
    %1096 = vector.broadcast %1095 : vector<8x1xf32> to vector<8x64xf32>
    %1097 = arith.mulf %1094, %1096 : vector<8x64xf32>
    %1098 = arith.addf %1089, %1097 : vector<8x64xf32>
    %1099 = vector.extract_strided_slice %794 {offsets = [0, 24], sizes = [64, 8], strides = [1, 1]} : vector<64x32xbf16> to vector<64x8xbf16>
    %1100 = arith.truncf %1098 : vector<8x64xf32> to vector<8x64xbf16>
    %cst_192 = arith.constant dense<0.000000e+00> : vector<8x8xf32>
    %1101 = tpu.matmul %1100, %1099, %cst_192 {dimension_numbers = #tpu.dot_dimension_numbers<[1], [0], [0], [1], [0, 0, 1, 1], [], []>} : vector<8x64xbf16>, vector<64x8xbf16>, vector<8x8xf32> -> vector<8x8xf32>
    %1102 = arith.addf %639, %1101 : vector<8x8xf32>
    %c0_193 = arith.constant 0 : index
    %c0_194 = arith.constant 0 : index
    %1103 = vector.load %arg29[%c0_193, %c0_194] : memref<8x32xf32, #tpu.memory_space<vmem>>, vector<8x8xf32>
    tpu.vector_store %arg29[%c0_193, %c0_194], %871 {strides = array<i32>} : memref<8x32xf32, #tpu.memory_space<vmem>>, vector<8x8xf32>,
    %c0_195 = arith.constant 0 : index
    %c8_196 = arith.constant 8 : index
    %1104 = vector.load %arg29[%c0_195, %c8_196] : memref<8x32xf32, #tpu.memory_space<vmem>>, vector<8x8xf32>
    tpu.vector_store %arg29[%c0_195, %c8_196], %948 {strides = array<i32>} : memref<8x32xf32, #tpu.memory_space<vmem>>, vector<8x8xf32>,
    %c0_197 = arith.constant 0 : index
    %c16_198 = arith.constant 16 : index
    %1105 = vector.load %arg29[%c0_197, %c16_198] : memref<8x32xf32, #tpu.memory_space<vmem>>, vector<8x8xf32>
    tpu.vector_store %arg29[%c0_197, %c16_198], %1025 {strides = array<i32>} : memref<8x32xf32, #tpu.memory_space<vmem>>, vector<8x8xf32>,
    %c0_199 = arith.constant 0 : index
    %c24_200 = arith.constant 24 : index
    %1106 = vector.load %arg29[%c0_199, %c24_200] : memref<8x32xf32, #tpu.memory_space<vmem>>, vector<8x8xf32>
    tpu.vector_store %arg29[%c0_199, %c24_200], %1102 {strides = array<i32>} : memref<8x32xf32, #tpu.memory_space<vmem>>, vector<8x8xf32>,
    %c0_201 = arith.constant 0 : index
    %c0_202 = arith.constant 0 : index
    %1107 = vector.load %arg29[%c0_201, %c0_202] : memref<8x32xf32, #tpu.memory_space<vmem>>, vector<8x32xf32>
    %c0_203 = arith.constant 0 : index
    %c0_204 = arith.constant 0 : index
    %1108 = vector.load %arg18[%c0_203, %c0_204] : memref<32x32xbf16, #tpu.memory_space<vmem>>, vector<32x32xbf16>
    %1109 = arith.truncf %1107 : vector<8x32xf32> to vector<8x32xbf16>
    %cst_205 = arith.constant dense<0.000000e+00> : vector<8x32xf32>
    %1110 = tpu.matmul %1109, %1108, %cst_205 {dimension_numbers = #tpu.dot_dimension_numbers<[1], [1], [0], [0], [0, 0, 1, 0], [], []>} : vector<8x32xbf16>, vector<32x32xbf16>, vector<8x32xf32> -> vector<8x32xf32>
    %c0_206 = arith.constant 0 : index
    %c0_207 = arith.constant 0 : index
    %1111 = vector.load %arg19[%c0_206, %c0_207] : memref<1x32xf32, #tpu.memory_space<vmem>>, vector<1x32xf32>
    %1112 = vector.broadcast %1111 : vector<1x32xf32> to vector<8x32xf32>
    %1113 = arith.addf %1110, %1112 : vector<8x32xf32>
    %1114 = arith.addf %136, %1113 : vector<8x32xf32>
    %c0_208 = arith.constant 0 : index
    %c0_209 = arith.constant 0 : index
    %1115 = vector.load %arg20[%c0_208, %c0_209] : memref<1x32xf32, #tpu.memory_space<vmem>>, vector<1x32xf32>
    %c0_210 = arith.constant 0 : index
    %c0_211 = arith.constant 0 : index
    %1116 = vector.load %arg21[%c0_210, %c0_211] : memref<1x32xf32, #tpu.memory_space<vmem>>, vector<1x32xf32>
    %cst_212 = arith.constant dense<0.000000e+00> : vector<8xf32>
    %1117 = vector.multi_reduction <add>, %1114, %cst_212 [1] : vector<8x32xf32> to vector<8xf32>
    %1118 = vector.shape_cast %1117 : vector<8xf32> to vector<8x1xf32>
    %cst_213 = arith.constant 3.200000e+01 : f32
    %1119 = vector.broadcast %cst_213 : f32 to vector<8x1xf32>
    %1120 = arith.divf %1118, %1119 : vector<8x1xf32>
    %1121 = vector.broadcast %1120 : vector<8x1xf32> to vector<8x32xf32>
    %1122 = arith.subf %1114, %1121 : vector<8x32xf32>
    %1123 = arith.mulf %1122, %1122 : vector<8x32xf32>
    %cst_214 = arith.constant dense<0.000000e+00> : vector<8xf32>
    %1124 = vector.multi_reduction <add>, %1123, %cst_214 [1] : vector<8x32xf32> to vector<8xf32>
    %1125 = vector.shape_cast %1124 : vector<8xf32> to vector<8x1xf32>
    %cst_215 = arith.constant 3.200000e+01 : f32
    %1126 = vector.broadcast %cst_215 : f32 to vector<8x1xf32>
    %1127 = arith.divf %1125, %1126 : vector<8x1xf32>
    %cst_216 = arith.constant 9.99999974E-6 : f32
    %1128 = vector.broadcast %cst_216 : f32 to vector<8x1xf32>
    %1129 = arith.addf %1127, %1128 : vector<8x1xf32>
    %1130 = math.rsqrt %1129 : vector<8x1xf32>
    %1131 = vector.broadcast %1130 : vector<8x1xf32> to vector<8x32xf32>
    %1132 = arith.mulf %1122, %1131 : vector<8x32xf32>
    %1133 = vector.broadcast %1115 : vector<1x32xf32> to vector<8x32xf32>
    %1134 = arith.mulf %1132, %1133 : vector<8x32xf32>
    %1135 = vector.broadcast %1116 : vector<1x32xf32> to vector<8x32xf32>
    %1136 = arith.addf %1134, %1135 : vector<8x32xf32>
    %c0_217 = arith.constant 0 : index
    %c0_218 = arith.constant 0 : index
    %1137 = vector.load %arg22[%c0_217, %c0_218] : memref<64x32xbf16, #tpu.memory_space<vmem>>, vector<64x32xbf16>
    %1138 = arith.truncf %1136 : vector<8x32xf32> to vector<8x32xbf16>
    %cst_219 = arith.constant dense<0.000000e+00> : vector<8x64xf32>
    %1139 = tpu.matmul %1138, %1137, %cst_219 {dimension_numbers = #tpu.dot_dimension_numbers<[1], [1], [0], [0], [0, 0, 1, 0], [], []>} : vector<8x32xbf16>, vector<64x32xbf16>, vector<8x64xf32> -> vector<8x64xf32>
    %c0_220 = arith.constant 0 : index
    %c0_221 = arith.constant 0 : index
    %1140 = vector.load %arg23[%c0_220, %c0_221] : memref<1x64xf32, #tpu.memory_space<vmem>>, vector<1x64xf32>
    %1141 = vector.broadcast %1140 : vector<1x64xf32> to vector<8x64xf32>
    %1142 = arith.addf %1139, %1141 : vector<8x64xf32>
    %cst_222 = arith.constant 0.000000e+00 : f32
    %1143 = vector.broadcast %cst_222 : f32 to vector<8x64xf32>
    %1144 = arith.maximumf %1142, %1143 : vector<8x64xf32>
    %c0_223 = arith.constant 0 : index
    %c0_224 = arith.constant 0 : index
    %1145 = vector.load %arg24[%c0_223, %c0_224] : memref<32x64xbf16, #tpu.memory_space<vmem>>, vector<32x64xbf16>
    %1146 = arith.truncf %1144 : vector<8x64xf32> to vector<8x64xbf16>
    %cst_225 = arith.constant dense<0.000000e+00> : vector<8x32xf32>
    %1147 = tpu.matmul %1146, %1145, %cst_225 {dimension_numbers = #tpu.dot_dimension_numbers<[1], [1], [0], [0], [0, 0, 1, 0], [], []>} : vector<8x64xbf16>, vector<32x64xbf16>, vector<8x32xf32> -> vector<8x32xf32>
    %c0_226 = arith.constant 0 : index
    %c0_227 = arith.constant 0 : index
    %1148 = vector.load %arg25[%c0_226, %c0_227] : memref<1x32xf32, #tpu.memory_space<vmem>>, vector<1x32xf32>
    %1149 = vector.broadcast %1148 : vector<1x32xf32> to vector<8x32xf32>
    %1150 = arith.addf %1147, %1149 : vector<8x32xf32>
    %1151 = arith.addf %1136, %1150 : vector<8x32xf32>
    %c0_228 = arith.constant 0 : index
    %c0_229 = arith.constant 0 : index
    %1152 = vector.load %arg26[%c0_228, %c0_229] : memref<1x32xf32, #tpu.memory_space<vmem>>, vector<1x32xf32>
    %c0_230 = arith.constant 0 : index
    %c0_231 = arith.constant 0 : index
    %1153 = vector.load %arg27[%c0_230, %c0_231] : memref<1x32xf32, #tpu.memory_space<vmem>>, vector<1x32xf32>
    %cst_232 = arith.constant dense<0.000000e+00> : vector<8xf32>
    %1154 = vector.multi_reduction <add>, %1151, %cst_232 [1] : vector<8x32xf32> to vector<8xf32>
    %1155 = vector.shape_cast %1154 : vector<8xf32> to vector<8x1xf32>
    %cst_233 = arith.constant 3.200000e+01 : f32
    %1156 = vector.broadcast %cst_233 : f32 to vector<8x1xf32>
    %1157 = arith.divf %1155, %1156 : vector<8x1xf32>
    %1158 = vector.broadcast %1157 : vector<8x1xf32> to vector<8x32xf32>
    %1159 = arith.subf %1151, %1158 : vector<8x32xf32>
    %1160 = arith.mulf %1159, %1159 : vector<8x32xf32>
    %cst_234 = arith.constant dense<0.000000e+00> : vector<8xf32>
    %1161 = vector.multi_reduction <add>, %1160, %cst_234 [1] : vector<8x32xf32> to vector<8xf32>
    %1162 = vector.shape_cast %1161 : vector<8xf32> to vector<8x1xf32>
    %cst_235 = arith.constant 3.200000e+01 : f32
    %1163 = vector.broadcast %cst_235 : f32 to vector<8x1xf32>
    %1164 = arith.divf %1162, %1163 : vector<8x1xf32>
    %cst_236 = arith.constant 9.99999974E-6 : f32
    %1165 = vector.broadcast %cst_236 : f32 to vector<8x1xf32>
    %1166 = arith.addf %1164, %1165 : vector<8x1xf32>
    %1167 = math.rsqrt %1166 : vector<8x1xf32>
    %1168 = vector.broadcast %1167 : vector<8x1xf32> to vector<8x32xf32>
    %1169 = arith.mulf %1159, %1168 : vector<8x32xf32>
    %1170 = vector.broadcast %1152 : vector<1x32xf32> to vector<8x32xf32>
    %1171 = arith.mulf %1169, %1170 : vector<8x32xf32>
    %1172 = vector.broadcast %1153 : vector<1x32xf32> to vector<8x32xf32>
    %1173 = arith.addf %1171, %1172 : vector<8x32xf32>
    %c0_237 = arith.constant 0 : index
    %c0_238 = arith.constant 0 : index
    %c0_239 = arith.constant 0 : index
    %1174 = vector.load %arg28[%c0_237, %c0_238, %c0_239] : memref<1x8x32xf32, #tpu.memory_space<vmem>>, vector<1x8x32xf32>
    %1175 = vector.shape_cast %1174 : vector<1x8x32xf32> to vector<8x32xf32>
    %1176 = vector.shape_cast %1173 : vector<8x32xf32> to vector<1x8x32xf32>
    tpu.vector_store %arg28[%c0_237, %c0_238, %c0_239], %1176 {strides = array<i32>} : memref<1x8x32xf32, #tpu.memory_space<vmem>>, vector<1x8x32xf32>,
    return
  }
  func.func @transform_0(%arg0: i32) -> (i32, i32) {
    %c0_i32 = arith.constant 0 : i32
    %c0_i32_0 = arith.constant 0 : i32
    %c0_i32_1 = arith.constant 0 : i32
    return %c0_i32, %c0_i32_0 : i32, i32
  }
  func.func @transform_1(%arg0: i32) -> (i32, i32, i32) {
    %c0_i32 = arith.constant 0 : i32
    %c0_i32_0 = arith.constant 0 : i32
    %c0_i32_1 = arith.constant 0 : i32
    return %arg0, %c0_i32, %c0_i32_0 : i32, i32, i32
  }
  func.func @transform_2(%arg0: i32) -> (i32, i32, i32) {
    %c0_i32 = arith.constant 0 : i32
    %c0_i32_0 = arith.constant 0 : i32
    %c0_i32_1 = arith.constant 0 : i32
    return %arg0, %c0_i32, %c0_i32_0 : i32, i32, i32
  }
  func.func @transform_3(%arg0: i32) -> (i32, i32, i32) {
    %c0_i32 = arith.constant 0 : i32
    %c0_i32_0 = arith.constant 0 : i32
    %c0_i32_1 = arith.constant 0 : i32
    return %arg0, %c0_i32, %c0_i32_0 : i32, i32, i32
  }
  func.func @transform_4(%arg0: i32) -> (i32, i32, i32) {
    %c0_i32 = arith.constant 0 : i32
    %c0_i32_0 = arith.constant 0 : i32
    %c0_i32_1 = arith.constant 0 : i32
    return %arg0, %c0_i32, %c0_i32_0 : i32, i32, i32
  }
  func.func @transform_5(%arg0: i32) -> (i32, i32) {
    %c0_i32 = arith.constant 0 : i32
    %c0_i32_0 = arith.constant 0 : i32
    %c0_i32_1 = arith.constant 0 : i32
    return %c0_i32, %c0_i32_0 : i32, i32
  }
  func.func @transform_6(%arg0: i32) -> (i32, i32) {
    %c0_i32 = arith.constant 0 : i32
    %c0_i32_0 = arith.constant 0 : i32
    %c0_i32_1 = arith.constant 0 : i32
    return %c0_i32, %c0_i32_0 : i32, i32
  }
  func.func @transform_7(%arg0: i32) -> (i32, i32) {
    %c0_i32 = arith.constant 0 : i32
    %c0_i32_0 = arith.constant 0 : i32
    %c0_i32_1 = arith.constant 0 : i32
    return %c0_i32, %c0_i32_0 : i32, i32
  }
  func.func @transform_8(%arg0: i32) -> (i32, i32) {
    %c0_i32 = arith.constant 0 : i32
    %c0_i32_0 = arith.constant 0 : i32
    %c0_i32_1 = arith.constant 0 : i32
    return %c0_i32, %c0_i32_0 : i32, i32
  }
  func.func @transform_9(%arg0: i32) -> (i32, i32) {
    %c0_i32 = arith.constant 0 : i32
    %c0_i32_0 = arith.constant 0 : i32
    %c0_i32_1 = arith.constant 0 : i32
    return %c0_i32, %c0_i32_0 : i32, i32
  }
  func.func @transform_10(%arg0: i32) -> (i32, i32) {
    %c0_i32 = arith.constant 0 : i32
    %c0_i32_0 = arith.constant 0 : i32
    %c0_i32_1 = arith.constant 0 : i32
    return %c0_i32, %c0_i32_0 : i32, i32
  }
  func.func @transform_11(%arg0: i32) -> (i32, i32) {
    %c0_i32 = arith.constant 0 : i32
    %c0_i32_0 = arith.constant 0 : i32
    %c0_i32_1 = arith.constant 0 : i32
    return %c0_i32, %c0_i32_0 : i32, i32
  }
  func.func @transform_12(%arg0: i32) -> (i32, i32) {
    %c0_i32 = arith.constant 0 : i32
    %c0_i32_0 = arith.constant 0 : i32
    %c0_i32_1 = arith.constant 0 : i32
    return %c0_i32, %c0_i32_0 : i32, i32
  }
  func.func @transform_13(%arg0: i32) -> (i32, i32) {
    %c0_i32 = arith.constant 0 : i32
    %c0_i32_0 = arith.constant 0 : i32
    %c0_i32_1 = arith.constant 0 : i32
    return %c0_i32, %c0_i32_0 : i32, i32
  }
  func.func @transform_14(%arg0: i32) -> (i32, i32) {
    %c0_i32 = arith.constant 0 : i32
    %c0_i32_0 = arith.constant 0 : i32
    %c0_i32_1 = arith.constant 0 : i32
    return %c0_i32, %c0_i32_0 : i32, i32
  }
  func.func @transform_15(%arg0: i32) -> (i32, i32) {
    %c0_i32 = arith.constant 0 : i32
    %c0_i32_0 = arith.constant 0 : i32
    %c0_i32_1 = arith.constant 0 : i32
    return %c0_i32, %c0_i32_0 : i32, i32
  }
  func.func @transform_16(%arg0: i32) -> (i32, i32) {
    %c0_i32 = arith.constant 0 : i32
    %c0_i32_0 = arith.constant 0 : i32
    %c0_i32_1 = arith.constant 0 : i32
    return %c0_i32, %c0_i32_0 : i32, i32
  }
  func.func @transform_17(%arg0: i32) -> (i32, i32) {
    %c0_i32 = arith.constant 0 : i32
    %c0_i32_0 = arith.constant 0 : i32
    %c0_i32_1 = arith.constant 0 : i32
    return %c0_i32, %c0_i32_0 : i32, i32
  }
  func.func @transform_18(%arg0: i32) -> (i32, i32) {
    %c0_i32 = arith.constant 0 : i32
    %c0_i32_0 = arith.constant 0 : i32
    %c0_i32_1 = arith.constant 0 : i32
    return %c0_i32, %c0_i32_0 : i32, i32
  }
  func.func @transform_19(%arg0: i32) -> (i32, i32) {
    %c0_i32 = arith.constant 0 : i32
    %c0_i32_0 = arith.constant 0 : i32
    %c0_i32_1 = arith.constant 0 : i32
    return %c0_i32, %c0_i32_0 : i32, i32
  }
  func.func @transform_20(%arg0: i32) -> (i32, i32) {
    %c0_i32 = arith.constant 0 : i32
    %c0_i32_0 = arith.constant 0 : i32
    %c0_i32_1 = arith.constant 0 : i32
    return %c0_i32, %c0_i32_0 : i32, i32
  }
  func.func @transform_21(%arg0: i32) -> (i32, i32) {
    %c0_i32 = arith.constant 0 : i32
    %c0_i32_0 = arith.constant 0 : i32
    %c0_i32_1 = arith.constant 0 : i32
    return %c0_i32, %c0_i32_0 : i32, i32
  }
  func.func @transform_22(%arg0: i32) -> (i32, i32) {
    %c0_i32 = arith.constant 0 : i32
    %c0_i32_0 = arith.constant 0 : i32
    %c0_i32_1 = arith.constant 0 : i32
    return %c0_i32, %c0_i32_0 : i32, i32
  }
  func.func @transform_23(%arg0: i32) -> (i32, i32) {
    %c0_i32 = arith.constant 0 : i32
    %c0_i32_0 = arith.constant 0 : i32
    %c0_i32_1 = arith.constant 0 : i32
    return %c0_i32, %c0_i32_0 : i32, i32
  }
  func.func @transform_24(%arg0: i32) -> (i32, i32) {
    %c0_i32 = arith.constant 0 : i32
    %c0_i32_0 = arith.constant 0 : i32
    %c0_i32_1 = arith.constant 0 : i32
    return %c0_i32, %c0_i32_0 : i32, i32
  }
  func.func @transform_25(%arg0: i32) -> (i32, i32) {
    %c0_i32 = arith.constant 0 : i32
    %c0_i32_0 = arith.constant 0 : i32
    %c0_i32_1 = arith.constant 0 : i32
    return %c0_i32, %c0_i32_0 : i32, i32
  }
  func.func @transform_26(%arg0: i32) -> (i32, i32) {
    %c0_i32 = arith.constant 0 : i32
    %c0_i32_0 = arith.constant 0 : i32
    %c0_i32_1 = arith.constant 0 : i32
    return %c0_i32, %c0_i32_0 : i32, i32
  }
  func.func @transform_27(%arg0: i32) -> (i32, i32, i32) {
    %c0_i32 = arith.constant 0 : i32
    %c0_i32_0 = arith.constant 0 : i32
    %c0_i32_1 = arith.constant 0 : i32
    return %arg0, %c0_i32, %c0_i32_0 : i32, i32, i32
  }
}

</mosaic_0001>

<bundles_post_ra>
// kernel: _decoder_layer_box.1
= control target key start
LH: loop header
LB: loop body
LE: loop exit
PB: predicated region body
PF: predicated region fallthrough
CT: control target
= control target key end

     0   :  { %s4944_s0 = inlined_call_operand.vmem [shape: bf16[16,4], index: 0, kind: input, shape index: {}]   ;;  %s4945_s1 = inlined_call_operand.vmem [shape: f32[2,8,32], index: 1, kind: input, shape index: {}]   ;;  %s4946_s2 = inlined_call_operand.vmem [shape: f32[2,8,32], index: 2, kind: input, shape index: {}]   ;;  %s4947_s3 = inlined_call_operand.vmem [shape: f32[2,8,2], index: 3, kind: input, shape index: {}]   ;;  %s4948_s4 = inlined_call_operand.vmem [shape: bf16[2,80,32], index: 4, kind: input, shape index: {}]   ;;  %s4949_s5 = inlined_call_operand.vmem [shape: bf16[96,32], index: 5, kind: input, shape index: {}]   ;;  %s4950_s6 = inlined_call_operand.vmem [shape: f32[1,96], index: 6, kind: input, shape index: {}]   ;;  %s4951_s7 = inlined_call_operand.vmem [shape: bf16[32,32], index: 7, kind: input, shape index: {}]   ;;  %s4952_s8 = inlined_call_operand.vmem [shape: f32[1,32], index: 8, kind: input, shape index: {}]   ;;  %s4953_s9 = inlined_call_operand.vmem [shape: f32[1,32], index: 9, kind: input, shape index: {}]   ;;  %s4954_s10 = inlined_call_operand.vmem [shape: f32[1,32], index: 10, kind: input, shape index: {}]   ;;  %s4955_s11 = inlined_call_operand.vmem [shape: bf16[32,32], index: 11, kind: input, shape index: {}]   ;;  %s4956_s12 = inlined_call_operand.vmem [shape: f32[1,32], index: 12, kind: input, shape index: {}]   ;;  %s4957_s13 = inlined_call_operand.vmem [shape: bf16[16,32], index: 13, kind: input, shape index: {}]   ;;  %s4958_s14 = inlined_call_operand.vmem [shape: f32[1,16], index: 14, kind: input, shape index: {}]   ;;  %s4959_s15 = inlined_call_operand.vmem [shape: bf16[32,32], index: 15, kind: input, shape index: {}]   ;;  %s4960_s16 = inlined_call_operand.vmem [shape: f32[1,32], index: 16, kind: input, shape index: {}]   ;;  %s4961_s17 = inlined_call_operand.vmem [shape: bf16[32,32], index: 17, kind: input, shape index: {}]   ;;  %s4962_s18 = inlined_call_operand.vmem [shape: f32[1,32], index: 18, kind: input, shape index: {}]   ;;  %s4963_s19 = inlined_call_operand.vmem [shape: f32[1,32], index: 19, kind: input, shape index: {}]   ;;  %s4964_s20 = inlined_call_operand.vmem [shape: f32[1,32], index: 20, kind: input, shape index: {}]   ;;  %s4965_s21 = inlined_call_operand.vmem [shape: bf16[64,32], index: 21, kind: input, shape index: {}]   ;;  %s4966_s22 = inlined_call_operand.vmem [shape: f32[1,64], index: 22, kind: input, shape index: {}]   ;;  %s4967_s23 = inlined_call_operand.vmem [shape: bf16[32,64], index: 23, kind: input, shape index: {}]   ;;  %s4968_s24 = inlined_call_operand.vmem [shape: f32[1,32], index: 24, kind: input, shape index: {}]   ;;  %s4969_s25 = inlined_call_operand.vmem [shape: f32[1,32], index: 25, kind: input, shape index: {}]   ;;  %s4970_s26 = inlined_call_operand.vmem [shape: f32[1,32], index: 26, kind: input, shape index: {}]   ;;  %s4971_s27 = inlined_call_operand.vmem [shape: f32[2,8,32], index: 27, kind: output, shape index: {}]  }
   0x1   :  { %5028 = sst [smem:[#allocation39_spill]] %s4944_s0 }
   0x2   :  { %5029 = sst [smem:[#allocation40_spill]] %s4945_s1 }
   0x3   :  { %5030 = sst [smem:[#allocation41_spill]] %s4946_s2 }
   0x4   :  { %5031 = sst [smem:[#allocation42_spill]] %s4947_s3 }
   0x5   :  { %5032 = sst [smem:[#allocation43_spill]] %s4948_s4 }
   0x6   :  { %5033 = sst [smem:[#allocation44_spill]] %s4949_s5 }
   0x7   :  { %5034 = sst [smem:[#allocation45_spill]] %s4950_s6 }
   0x8   :  { %5035 = sst [smem:[#allocation46_spill]] %s4951_s7  ;;  %s3779_s7 = smov 0  }
   0x9   :  { %5036 = sst [smem:[#allocation47_spill]] %s4952_s8 }
   0xa   :  { %5037 = sst [smem:[#allocation48_spill]] %s4953_s9 }
   0xb   :  { %5038 = sst [smem:[#allocation49_spill]] %s4954_s10 }
   0xc   :  { %5039 = sst [smem:[#allocation50_spill]] %s4955_s11 }
   0xd LB: > { %s3101_s4 = sadd.s32 4294967295, %s3606_s7   ;;  %p3105_p0 = scmp.ge.s32.totalorder %s3606_s7, 1  ;;  %s3606_s7 = sphi %s3779_s7, %s37_s7  }
   0xe   : > { %p764_p1 = scmp.lt.s32.totalorder %s3606_s7, 3 }
  0x10   : > { %p765_p2 = pnand %p3105_p0, %p764_p1 }
  0x12   : > { %768 = sbr.rel (%p765_p2) target bundleno = 3968 (0xf80), region = 128 }
  0x17   : > { %s5040_s9 = sld [smem:[#allocation44_spill]]  ;;  %vm4988_vm0 = vcmask 261120   ;;  %p847_p3 = scmp.lt.s32.totalorder %s3101_s4, 1  ;;  %vm980_vm1 = vcmask 64512   ;;  %vm1016_vm2 = vcmask 1043456   ;;  %vm4987_vm3 = vcmask 130112  }
  0x18   : > { %s5041_s3 = sld [smem:[#allocation40_spill]]  ;;  %s3608_s11 = smov 96   ;;  %vm4986_vm4 = vcmask 195712   ;;  %vm4985_vm5 = vcmask 261312   ;;  %vm1523_vm10 = vcmask 31744   ;;  %vm1492_vm11 = vcmask 130048  }
  0x19   : > { %s5178_s4 = smov (!%p847_p3, %s3101_s4), 1  ;;  %s5042_s28 = sld [smem:[#allocation41_spill]] }
  0x1a   : > { %s3802_s29 = sshll.u32 %s5178_s4, 3  ;;  %s5043_s6 = sld [smem:[#allocation45_spill]] }
  0x1b   : > { %s4983_s2 = smov 120   ;;  %s3612_s10 = smov 64  }
  0x1c   : > { %s4981_s1 = smov 112   ;;  %s4975_s30 = smov 24  }
  0x1d   : > { %v3327_v0 = vld [vmem:[%s5040_s9 + $0x18] sm:$0xff]  ;;  %v3326_v2 = vld [vmem:[%s5040_s9 + $0x10] sm:$0xff]  ;;  %v3325_v4 = vld [vmem:[%s5040_s9 + $0x8] sm:$0xff]  ;;  %s5050_s5 = smov 120  }
  0x1e   : > { %v923_v1 = vsel %vm4988_vm0, %v3327_v0, 0  ;;  %v920_v3 = vsel %vm4988_vm0, %v3326_v2, 0  ;;  %v917_v5 = vsel %vm4988_vm0, %v3325_v4, 0  ;;  %v3324_v6 = vld [vmem:[%s5040_s9] sm:$0xff]  ;;  %s850_s8 = scalar_lea.vmem %s5041_s3, %s3802_s29  ;;  %s3610_s3 = smov 88   ;;  %v3329_v19 = vld [vmem:[%s5040_s9 + $0x28] sm:$0xff] }
  0x1f   : > { %929 = vmatpush.bf16.xpose.msra.mxu0 %v923_v1  ;;  %s854_s0 = scalar_lea.vmem %s5042_s28, %s3802_s29  ;;  %v3815_v7 = vld [vmem:[%s850_s8] sm:$0xff]  ;;  %v914_v9 = vsel %vm4988_vm0, %v3324_v6, 0  ;;  %s3611_s8 = smov 80   ;;  %v959_v20 = vsel %vm4988_vm0, %v3329_v19, 0 }
  0x20   : > { %v870_v8 = vld [vmem:[%s854_s0] sm:$0xff]  ;;  %967 = vmatpush.bf16.xpose.msra.mxu1 %v959_v20  ;;  %v938_v28 = vpack.c.bf16 %v3815_v7, %v3815_v7  ;;  %s5044_s0 = sld [smem:[#allocation46_spill]] }
  0x21   : > { %v871_v10 = vadd.f32 %v870_v8, %v3815_v7  ;;  %v3558_v12 = vld [vmem:[%s5043_s6] ss:$0 sm:$0xff]  ;;  %s4979_s6 = smov 104  }
  0x22   : > { %v3328_v26 = vld [vmem:[%s5040_s9 + $0x20] sm:$0xff] }
  0x23   : > { %v885_v11 = vpack.c.bf16 %v871_v10, %v871_v10  ;;  %v956_v27 = vsel %vm4988_vm0, %v3328_v26, 0 }
  0x27   : > { %930 = vmatpush.bf16.xpose.msra.mxu0 %v920_v3 }
  0x28   : > { %968 = vmatpush.bf16.xpose.msra.mxu1 %v956_v27 }
  0x2f   : > { %931 = vmatpush.bf16.xpose.msra.mxu0 %v917_v5  ;;  %3136 = vmatmul.msk.bf16.vlgmr.msra.gmra.mxu1 %vm4988_vm0, %v938_v28 }
  0x37   : > { %932 = vmatpush.bf16.xpose.msra.mxu0 %v914_v9 }
  0x3e   : > { %3127 = vmatmul.msk.bf16.vlgmr.msra.gmra.mxu0 %vm4988_vm0, %v885_v11 }
  0xac   : > { %v970_v35 = vpop.f32.mrf.mxu1 }
  0xb4   : > { %v972_v36 = vpop.f32.mrf.mxu1 }
  0xbb   : > { %v934_v13 = vpop.f32.mrf.mxu0 }
  0xbc   : > { %v935_v14 = vadd.f32 %v3558_v12, %v934_v13 }
  0xbe   : > { %v974_v15 = vmul.f32 0.35355338, %v935_v14  ;;  %v3823_v16 = vpack.c.bf16 %v935_v14, %v935_v14 }
  0xc0   : > { %v3825_v17 = vpack.c.bf16 %v974_v15, %v974_v15  ;;  %978 = vrot.lane.b32.xlu0 %v3823_v16, %s3608_s11  ;;  %s3615_s11 = smov 72  }
  0xc2   : > { %1035 = vrot.lane.b32.xlu1 %v3825_v17, %s4983_s2 }
  0xc3   : > { %v936_v18 = vpop.f32.mrf.mxu0 }
  0xc8   : > { %1037 = vrot.lane.b32.xlu0 %v3823_v16, %s3610_s3  ;;  %s4976_s3 = smov 8  }
  0xd0   : > { %1100 = vrot.lane.b32.xlu0 %v3823_v16, %s3611_s8  ;;  %s4977_s8 = smov 16  }
 0x132   : > { %v979_v21 = vpop.permute.xlu0 %978 }
 0x133   : > { %v985_v22 = vsel %vm980_vm1, %v979_v21, 0 }
 0x134   : > { %994 = vmatpush.bf16.xpose.msra.mxu2 %v985_v22  ;;  %v1036_v25 = vpop.permute.xlu1 %1035 }
 0x13a   : > { %v1038_v23 = vpop.permute.xlu0 %1037 }
 0x13b   : > { %3137 = vmatmul.msk.bf16.vlgmr.msra.gmra.mxu2 %vm980_vm1, %v3825_v17  ;;  %v1043_v24 = vsel %vm980_vm1, %v1038_v23, 0 }
 0x13c   : > { %1052 = vmatpush.bf16.xpose.msra.mxu3 %v1043_v24 }
 0x142   : > { %v1101_v48 = vpop.permute.xlu0 %1100 }
 0x143   : > { %3139 = vmatmul.msk.bf16.vlgmr.msra.gmra.mxu3 %vm980_vm1, %v1036_v25  ;;  %v1106_v52 = vsel %vm980_vm1, %v1101_v48, 0 }
 0x1be   : > { %v996_v29 = vpop.f32.mrf.mxu2 }
 0x1bf   : > { %v1000_v30 = vsel %vm980_vm1, %v996_v29, -inf }
 0x1c0   : > { %1001 = vmax.xlane.f32.xlu1 %v1000_v30 }
 0x1c6   : > { %v998_v31 = vpop.f32.mrf.mxu2  ;;  %v1054_v32 = vpop.f32.mrf.mxu3 }
 0x1c7   : > { %v1058_v33 = vsel %vm980_vm1, %v1054_v32, -inf }
 0x1c8   : > { %1059 = vmax.xlane.f32.xlu2 %v1058_v33 }
 0x1ce   : > { %v1056_v34 = vpop.f32.mrf.mxu3 }
 0x1e0   : > { %949 = vrot.lane.b32.xlu2 %v3558_v12, %s3612_s10  ;;  %s5053_s10 = sld [smem:[#allocation39_spill]] }
 0x233   : > { %v1002_v37 = vpop.xlane.xlu1 %1001 }
 0x234   : > { %v1003_v38 = vsub.f32 %v996_v29, %v1002_v37 }
 0x236   : > { %v1004_v39 = vmul.f32 1.442695, %v1003_v38 }
 0x238   : > { %3572 = vpow2.f32 %v1004_v39 }
 0x23b   : > { %v1060_v40 = vpop.xlane.xlu2 %1059 }
 0x23c   : > { %v1061_v41 = vsub.f32 %v1054_v32, %v1060_v40 }
 0x23e   : > { %v3573_v42 = vpop.eup %3572  ;;  %v1062_v43 = vmul.f32 1.442695, %v1061_v41  ;;  %v3331_v41 = vld [vmem:[%s5044_s0 + $0x8] sm:$0xff] }
 0x23f   : > { %v1006_v44 = vsel %vm980_vm1, %v3573_v42, 0.0 }
 0x240   : > { %3574 = vpow2.f32 %v1062_v43  ;;  %1007 = vadd.xlane.f32.xlu0 %v1006_v44  ;;  %v3330_v43 = vld [vmem:[%s5044_s0] sm:$0xff] }
 0x241   : > { %v1246_v44 = vsel %vm4988_vm0, %v3330_v43, 0 }
 0x243   : > { %v950_v45 = vpop.permute.xlu2 %949 }
 0x244   : > { %v971_v46 = vadd.f32 %v970_v35, %v950_v45 }
 0x246   : > { %v3575_v47 = vpop.eup %3574  ;;  %v3851_v49 = vpack.c.bf16 %v971_v46, %v971_v46 }
 0x247   : > { %v1064_v50 = vsel %vm980_vm1, %v3575_v47, 0.0 }
 0x248   : > { %1065 = vadd.xlane.f32.xlu2 %v1064_v50  ;;  %1071 = vrot.lane.b32.xlu1 %v3851_v49, %s4983_s2  ;;  %v1018_v51 = vsel %vm1016_vm2, %v3851_v49, 0  ;;  %s5046_s2 = sld [smem:[#allocation47_spill]] }
 0x249   : > { %1027 = vmatpush.bf16.msrb.mxu1 %v1018_v51  ;;  %v3337_v51 = vld [vmem:[%s4959_s15] sm:$0xff] }
 0x24d   : > { %1115 = vmatpush.bf16.xpose.msra.mxu1 %v1106_v52  ;;  %v1373_v52 = vsel %vm4988_vm0, %v3337_v51, 0 }
 0x250   : > { %1098 = vrot.lane.b32.xlu1 %v3825_v17, %s4981_s1 }
 0x254   : > { %1160 = vrot.lane.b32.xlu0 %v3825_v17, %s4979_s6 }
 0x260   : > { %1162 = vrot.lane.b32.xlu2 %v3823_v16, %s3615_s11  ;;  %s5049_s11 = sld [smem:[#allocation50_spill]] }
 0x2b3   : > { %v1008_v53 = vpop.xlane.xlu0 %1007 }
 0x2b4   : > { %3576 = vrcp.f32 %v1008_v53 }
 0x2ba   : > { %v3577_v54 = vpop.eup %3576  ;;  %v1072_v55 = vpop.permute.xlu1 %1071 }
 0x2bb   : > { %v1010_v56 = vmul.f32 %v3577_v54, %v3573_v42  ;;  %v1066_v57 = vpop.xlane.xlu2 %1065  ;;  %v1077_v58 = vsel %vm1016_vm2, %v1072_v55, 0  ;;  %v1249_v42 = vsel %vm4988_vm0, %v3331_v41, 0  ;;  %v3559_v54 = vld [vmem:[%s5046_s2] ss:$0 sm:$0xff] }
 0x2bc   : > { %3578 = vrcp.f32 %v1066_v57  ;;  %1086 = vmatpush.bf16.msrb.mxu2 %v1077_v58 }
 0x2bd   : > { %v1011_v59 = vpack.c.bf16 %v1010_v56, %v1010_v56 }
 0x2bf   : > { %3138 = vmatmul.msk.bf16.vlgmr.msrb.gmra.mxu1 %vm980_vm1, %v1011_v59 }
 0x2c0   : > { %1257 = vmatpush.bf16.xpose.msrb.mxu1 %v1249_v42 }
 0x2c2   : > { %v3579_v60 = vpop.eup %3578  ;;  %v1099_v1 = vpop.permute.xlu1 %1098 }
 0x2c3   : > { %v1163_v61 = vpop.permute.xlu2 %1162  ;;  %v1068_v62 = vmul.f32 %v3579_v60, %v3575_v47 }
 0x2c4   : > { %v1168_v63 = vsel %vm980_vm1, %v1163_v61, 0 }
 0x2c5   : > { %1177 = vmatpush.bf16.xpose.msra.mxu2 %v1168_v63  ;;  %v1069_v0 = vpack.c.bf16 %v1068_v62, %v1068_v62 }
 0x2c6   : > { %v1161_v2 = vpop.permute.xlu0 %1160 }
 0x2c7   : > { %3140 = vmatmul.msk.bf16.vlgmr.msrb.gmra.mxu2 %vm980_vm1, %v1069_v0  ;;  %v3619_v0 = vmov 32.0  }
 0x2c8   : > { %1258 = vmatpush.bf16.xpose.msrb.mxu1 %v1246_v44  ;;  %v3621_v44 = vmov 0  }
 0x2c9   : > { %3421 = vset.pattern.permute.xlu0 %v3621_v44 }
 0x2cf   : > { %3141 = vmatmul.msk.bf16.vlgmr.msra.gmra.mxu1 %vm980_vm1, %v1099_v1 }
 0x2d7   : > { %3143 = vmatmul.msk.bf16.vlgmr.msra.gmra.mxu2 %vm980_vm1, %v1161_v2 }
 0x33c   : > { %v1029_v3 = vpop.f32.mrf.mxu1 }
 0x33d   : > { %1033 = vst.msk [vmem:[#allocation2] sm:$0xff] %vm980_vm1, %v1029_v3 }
 0x344   : > { %v1031_v4 = vpop.f32.mrf.mxu1 }
 0x34a   : > { %v1088_v5 = vpop.f32.mrf.mxu2 }
 0x34c   : > { %v1117_v6 = vpop.f32.mrf.mxu1 }
 0x34d   : > { %v1121_v8 = vsel %vm980_vm1, %v1117_v6, -inf }
 0x34e   : > { %1122 = vmax.xlane.f32.xlu1 %v1121_v8 }
 0x352   : > { %v1090_v9 = vpop.f32.mrf.mxu2 }
 0x354   : > { %v1119_v10 = vpop.f32.mrf.mxu1 }
 0x35a   : > { %v1179_v11 = vpop.f32.mrf.mxu2 }
 0x35b   : > { %v1183_v12 = vsel %vm980_vm1, %v1179_v11, -inf }
 0x35c   : > { %1184 = vmax.xlane.f32.xlu0 %v1183_v12  ;;  %v3560_v12 = vld [vmem:[%s4960_s16] ss:$0 sm:$0xff] }
 0x362   : > { %v1181_v13 = vpop.f32.mrf.mxu2 }
 0x370   : > { %1133 = vrot.lane.b32.xlu0 %v3851_v49, %s4981_s1 }
 0x3c1   : > { %v1123_v14 = vpop.xlane.xlu1 %1122 }
 0x3c2   : > { %v1124_v15 = vsub.f32 %v1117_v6, %v1123_v14 }
 0x3c4   : > { %v1125_v16 = vmul.f32 1.442695, %v1124_v15 }
 0x3c6   : > { %3580 = vpow2.f32 %v1125_v16 }
 0x3cc   : > { %v3581_v17 = vpop.eup %3580 }
 0x3cd   : > { %v1127_v18 = vsel %vm980_vm1, %v3581_v17, 0.0 }
 0x3ce   : > { %1128 = vadd.xlane.f32.xlu2 %v1127_v18 }
 0x3cf   : > { %v1185_v19 = vpop.xlane.xlu0 %1184 }
 0x3d0   : > { %v1186_v20 = vsub.f32 %v1179_v11, %v1185_v19 }
 0x3d2   : > { %v1187_v21 = vmul.f32 1.442695, %v1186_v20 }
 0x3d4   : > { %3582 = vpow2.f32 %v1187_v21 }
 0x3da   : > { %v3583_v22 = vpop.eup %3582 }
 0x3db   : > { %v1189_v23 = vsel %vm980_vm1, %v3583_v22, 0.0 }
 0x3dc   : > { %1190 = vadd.xlane.f32.xlu1 %v1189_v23 }
 0x3e2   : > { %v1134_v24 = vpop.permute.xlu0 %1133 }
 0x3e3   : > { %v1139_v25 = vsel %vm1016_vm2, %v1134_v24, 0 }
 0x3e4   : > { %1148 = vmatpush.bf16.msrb.mxu3 %v1139_v25 }
 0x3e6   : > { %1093 = vrot.lane.b32.xlu2 %v1088_v5, %s4976_s3  ;;  %s5048_s3 = sld [smem:[#allocation42_spill]] }
 0x3f5   : > { %1195 = vrot.lane.b32.xlu1 %v3851_v49, %s4979_s6  ;;  %v3338_v49 = vld [vmem:[%s4959_s15 + $0x8] sm:$0xff]  ;;  %s5045_s6 = sld [smem:[#allocation43_spill]] }
 0x3f6   : > { %v1376_v50 = vsel %vm4988_vm0, %v3338_v49, 0 }
 0x3f7   : > { %1384 = vmatpush.bf16.xpose.msra.mxu3 %v1376_v50 }
 0x3ff   : > { %1385 = vmatpush.bf16.xpose.msra.mxu3 %v1373_v52 }
 0x441   : > { %v1129_v26 = vpop.xlane.xlu2 %1128 }
 0x442   : > { %3584 = vrcp.f32 %v1129_v26 }
 0x448   : > { %v3585_v27 = vpop.eup %3584 }
 0x449   : > { %v1094_v28 = vpop.permute.xlu2 %1093  ;;  %v1131_v29 = vmul.f32 %v3585_v27, %v3581_v17 }
 0x44a   : > { %1097 = vst.msk [vmem:[#allocation2] sm:$0xff] %vm4987_vm3, %v1094_v28 }
 0x44b   : > { %v1132_v30 = vpack.c.bf16 %v1131_v29, %v1131_v29 }
 0x44d   : > { %3142 = vmatmul.msk.bf16.vlgmr.msrb.gmra.mxu3 %vm980_vm1, %v1132_v30 }
 0x44f   : > { %v1191_v31 = vpop.xlane.xlu1 %1190 }
 0x450   : > { %3586 = vrcp.f32 %v1191_v31 }
 0x451   : > { %3588 = vrcp.f32 %v3619_v0 }
 0x456   : > { %v3587_v32 = vpop.eup %3586 }
 0x457   : > { %v1193_v33 = vmul.f32 %v3587_v32, %v3583_v22  ;;  %v3589_v1 = vpop.eup %3588 }
 0x458   : > { %vm1275_vm6 = vweird.f32 %v3589_v1 }
 0x459   : > { %v1194_v36 = vpack.c.bf16 %v1193_v33, %v1193_v33 }
 0x467   : > { %v1196_v34 = vpop.permute.xlu1 %1195 }
 0x468   : > { %v1201_v35 = vsel %vm1016_vm2, %v1196_v34, 0 }
 0x469   : > { %1210 = vmatpush.bf16.msrb.mxu0 %v1201_v35 }
 0x46c   : > { %3144 = vmatmul.msk.bf16.vlgmr.msrb.gmra.mxu0 %vm980_vm1, %v1194_v36 }
 0x4d0   : > { %v1150_v37 = vpop.f32.mrf.mxu3 }
 0x4d1   : > { %1155 = vrot.lane.b32.xlu0 %v1150_v37, %s4977_s8  ;;  %s858_s8 = scalar_lea.vmem %s5048_s3, %s3802_s29  ;;  %s5052_s3 = smov 104  }
 0x4d2   : > { %v1545_v35 = vld [vmem:[%s858_s8] sm:$0xff]  ;;  %s5055_s8 = sld [smem:[#allocation49_spill]] }
 0x4d3   : > { %v1546_v36 = vmul.f32 4.0, %v1545_v35  ;;  %v2066_v49 = vmul.f32 8.0, %v1545_v35 }
 0x4d8   : > { %v1152_v38 = vpop.f32.mrf.mxu3 }
 0x4d9   : > { %v3620_v38 = vmov 1  }
 0x4da   : > { %3419 = vset.pattern.permute.xlu1 %v3620_v38  ;;  %3420 = vset.pattern.permute.xlu2 %v3620_v38 }
 0x4e9   : > { %v1212_v39 = vpop.f32.mrf.mxu0 }
 0x4ea   : > { %1217 = vrot.lane.b32.xlu0 %v1212_v39, %s4975_s30  ;;  %s3351_s30 = smul.u32 40, %s5178_s4  ;;  %s5054_s4 = sld [smem:[#allocation48_spill]] }
 0x4ec   : > { %s863_s1 = scalar_lea.vmem %s5045_s6, %s3351_s30  ;;  %s5051_s6 = smov 112  }
 0x4ed   : > { %v3332_v53 = vld [vmem:[%s863_s1] sm:$0xff]  ;;  %v3333_v59 = vld [vmem:[%s863_s1 + $0x8] sm:$0xff]  ;;  %v3334_v61 = vld [vmem:[%s863_s1 + $0x10] sm:$0xff] }
 0x4ee   : > { %3182 = vmatmul.msk.bf16.vlgmr.msra.gmra.mxu3 %vm4988_vm0, %v3332_v53  ;;  %v3335_v62 = vld [vmem:[%s863_s1 + $0x18] sm:$0xff]  ;;  %v3336_v63 = vld [vmem:[%s863_s1 + $0x20] sm:$0xff] }
 0x4f1   : > { %v1214_v40 = vpop.f32.mrf.mxu0 }
 0x4f2   : > { %1549 = vperm.xlu0 %3421, %v1546_v36  }
 0x4fe   : > { %3183 = vmatmul.msk.bf16.gmra.mxu3 %vm4988_vm0, %v3333_v59  ;;  %v3340_v59 = vld [vmem:[%s5049_s11 + $0x8] sm:$0xff] }
 0x50e   : > { %3184 = vmatmul.msk.bf16.gmra.mxu3 %vm4988_vm0, %v3334_v61 }
 0x51e   : > { %3185 = vmatmul.msk.bf16.gmra.mxu3 %vm4988_vm0, %v3335_v62 }
 0x52e   : > { %3186 = vmatmul.msk.bf16.gmra.mxu3 %vm4988_vm0, %v3336_v63  ;;  %v1448_v63 = vsel %vm4988_vm0, %v3340_v59, 0 }
 0x52f   : > { %1456 = vmatpush.bf16.xpose.msrb.mxu2 %v1448_v63 }
 0x543   : > { %v1156_v45 = vpop.permute.xlu0 %1155 }
 0x544   : > { %1159 = vst.msk [vmem:[#allocation2] sm:$0xff] %vm4986_vm4, %v1156_v45 }
 0x55c   : > { %v1218_v46 = vpop.permute.xlu0 %1217 }
 0x55d   : > { %1221 = vst.msk [vmem:[#allocation2] sm:$0xff] %vm4985_vm5, %v1218_v46 }
 0x564   : > { %v1222_v47 = vld [vmem:[#allocation2] sm:$0xff] }
 0x565   : > { %v1227_v48 = vpack.c.bf16 %v1222_v47, %v1222_v47 }
 0x567   : > { %3153 = vmatmul.msk.bf16.vlgmr.msrb.gmra.mxu1 %vm4988_vm0, %v1227_v48 }
 0x571   : > { %v1387_v10 = vpop.f32.mrf.mxu3 }
 0x572   : > { %v1388_v14 = vadd.f32 %v3560_v12, %v1387_v10 }
 0x574   : > { %v1412_v15 = vpack.c.bf16 %v1388_v14, %v1388_v14 }
 0x576   : > { %v2332_v18 = vunpack.c.l.b16 %v1412_v15 }
 0x579   : > { %v1389_v16 = vpop.f32.mrf.mxu3 }
 0x57a   : > { %v1390_v17 = vadd.f32 %v3560_v12, %v1389_v16 }
 0x57c   : > { %v1413_v19 = vpack.c.bf16 %v1390_v17, %v1390_v17  ;;  %v3561_v17 = vld [vmem:[%s5054_s4] ss:$0 sm:$0xff]  ;;  %s5057_s4 = smov 16  }
 0x57e   : > { %v2333_v20 = vunpack.c.l.b16 %v1413_v19 }
 0x580   : > { %v3931_v21 = vpack.c.b16 %v2333_v20, %v2332_v18  ;;  %v3562_v20 = vld [vmem:[%s5055_s8] ss:$0 sm:$0xff]  ;;  %s867_s8 = scalar_lea.vmem %s4971_s27, %s3802_s29 }
 0x581   : > { %v1392_v22 = vpop.f32.mrf.mxu3 }
 0x582   : > { %v1393_v23 = vadd.f32 %v3560_v12, %v1392_v22 }
 0x584   : > { %v1414_v24 = vpack.c.bf16 %v1393_v23, %v1393_v23 }
 0x586   : > { %v2297_v27 = vunpack.c.l.b16 %v1414_v24 }
 0x589   : > { %v1394_v25 = vpop.f32.mrf.mxu3 }
 0x58a   : > { %v1395_v26 = vadd.f32 %v3560_v12, %v1394_v25 }
 0x58c   : > { %v1415_v28 = vpack.c.bf16 %v1395_v26, %v1395_v26 }
 0x58e   : > { %v2298_v29 = vunpack.c.l.b16 %v1415_v28 }
 0x590   : > { %v3933_v30 = vpack.c.b16 %v2298_v29, %v2297_v27  ;;  %v1550_v27 = vpop.permute.xlu0 %1549 }
 0x591   : > { %v1397_v31 = vpop.f32.mrf.mxu3 }
 0x592   : > { %v1398_v39 = vadd.f32 %v3560_v12, %v1397_v31 }
 0x594   : > { %v1416_v43 = vpack.c.bf16 %v1398_v39, %v1398_v39 }
 0x596   : > { %v2299_v50 = vunpack.c.l.b16 %v1416_v43 }
 0x599   : > { %v1399_v32 = vpop.f32.mrf.mxu3 }
 0x59a   : > { %v1400_v41 = vadd.f32 %v3560_v12, %v1399_v32 }
 0x59c   : > { %v1417_v45 = vpack.c.bf16 %v1400_v41, %v1400_v41 }
 0x59e   : > { %v2300_v52 = vunpack.c.l.b16 %v1417_v45 }
 0x5a1   : > { %v1402_v33 = vpop.f32.mrf.mxu3 }
 0x5a2   : > { %v1403_v37 = vadd.f32 %v3560_v12, %v1402_v33 }
 0x5a4   : > { %v1418_v42 = vpack.c.bf16 %v1403_v37, %v1403_v37 }
 0x5a6   : > { %v2301_v47 = vunpack.c.l.b16 %v1418_v42 }
 0x5a9   : > { %v1404_v34 = vpop.f32.mrf.mxu3 }
 0x5aa   : > { %v1405_v46 = vadd.f32 %v3560_v12, %v1404_v34 }
 0x5ac   : > { %v1419_v48 = vpack.c.bf16 %v1405_v46, %v1405_v46 }
 0x5ae   : > { %v2302_v53 = vunpack.c.l.b16 %v1419_v48 }
 0x5b1   : > { %v1407_v40 = vpop.f32.mrf.mxu3 }
 0x5b9   : > { %v1409_v51 = vpop.f32.mrf.mxu3 }
 0x5e4   : > { %v1260_v55 = vpop.f32.mrf.mxu1 }
 0x5e5   : > { %v1261_v56 = vadd.f32 %v3559_v54, %v1260_v55  ;;  %v1408_v54 = vadd.f32 %v3560_v12, %v1407_v40  ;;  %v1410_v55 = vadd.f32 %v3560_v12, %v1409_v51  ;;  %v3564_v40 = vld [vmem:[%s4956_s12] ss:$0 sm:$0xff] }
 0x5e7   : > { %v1264_v57 = vadd.f32 %v1261_v56, %v3815_v7  ;;  %v1271_v7 = vmul.f32 32.0, %v3589_v1  ;;  %v2307_v56 = vpack.c.b16 %v2302_v53, %v2301_v47 }
 0x5e9   : > { %v1267_v58 = vsel %vm4988_vm0, %v1264_v57, 0.0  ;;  %v1272_v2 = vsub.f32 1.0, %v1271_v7  ;;  %2453 = vrot.lane.b32.xlu0 %v2307_v56, %s5050_s5  ;;  %v3341_v7 = vld [vmem:[%s4957_s13] sm:$0xff] }
 0x5ea   : > { %1268 = vadd.xlane.f32.xlu1 %v1267_v58  ;;  %v1421_v58 = vpack.c.bf16 %v1410_v55, %v1410_v55 }
 0x5eb   : > { %v1273_v3 = vmul.f32 %v3589_v1, %v1272_v2 }
 0x5ec   : > { %v1262_v60 = vpop.f32.mrf.mxu1  ;;  %v2304_v62 = vunpack.c.l.b16 %v1421_v58 }
 0x5ed   : > { %v1274_v4 = vadd.f32 %v3589_v1, %v1273_v3  ;;  %v2306_v60 = vpack.c.b16 %v2300_v52, %v2299_v50  ;;  %v1475_v3 = vsel %vm4988_vm0, %v3341_v7, 0 }
 0x5ee   : > { %1484 = vmatpush.bf16.xpose.msra.mxu0 %v1475_v3 }
 0x5ef   : > { %v3920_v5 = vsel %vm1275_vm6, %v3589_v1, %v1274_v4  ;;  %v3339_v1 = vld [vmem:[%s5049_s11] sm:$0xff] }
 0x5f0   : > { %5047 = vst [vmem:[#allocation3_spill] sm:$0xff] %v3920_v5  ;;  %v1445_v2 = vsel %vm4988_vm0, %v3339_v1, 0  ;;  %v3342_v4 = vld [vmem:[%s5053_s10] sm:$0xff] }
 0x5f1   : > { %2477 = vrot.lane.b32.xlu0 %v3931_v21, %s5050_s5  ;;  %1457 = vmatpush.bf16.xpose.msrb.mxu2 %v1445_v2  ;;  %v1528_v25 = vsel %vm1523_vm10, %v3342_v4, 0 }
 0x5f2   : > { %1516 = vmatpush.bf16.msra.mxu1 %v3342_v4 }
 0x5f6   : > { %2346 = vmatpush.bf16.msrb.mxu1 %v3931_v21 }
 0x5f9   : > { %1537 = vmatpush.bf16.xpose.msra.mxu2 %v1528_v25 }
 0x603   : > { %1554 = vperm.xlu1 %3419, %v1546_v36   ;;  %v3563_v36 = vld [vmem:[%s4958_s14] ss:$0 sm:$0xff] }
 0x60b   : > { %3422 = vset.pattern.permute.xlu1 %v3621_v44 }
 0x60c   : > { %2069 = vperm.xlu1 %3422, %v2066_v49  }
 0x65b   : > { %v2454_v31 = vpop.permute.xlu0 %2453 }
 0x65d   : > { %v1269_v6 = vpop.xlane.xlu1 %1268 }
 0x65e   : > { %v1277_v8 = vmul.f32 %v3920_v5, %v1269_v6 }
 0x660   : > { %v3923_v9 = vsub.f32 %v1264_v57, %v1277_v8  ;;  %v1420_v57 = vpack.c.bf16 %v1408_v54, %v1408_v54 }
 0x662   : > { %v1279_v11 = vmul.f32 %v3923_v9, %v3923_v9  ;;  %v2303_v61 = vunpack.c.l.b16 %v1420_v57 }
 0x663   : > { %v2478_v34 = vpop.permute.xlu0 %2477 }
 0x664   : > { %v1280_v13 = vsel %vm4988_vm0, %v1279_v11, 0.0  ;;  %v2308_v0 = vpack.c.b16 %v2304_v62, %v2303_v61 }
 0x665   : > { %1281 = vadd.xlane.f32.xlu2 %v1280_v13 }
 0x666   : > { %2455 = vrot.lane.b32.xlu1 %v2308_v0, %s5050_s5  ;;  %2321 = vmatpush.bf16.msrb.mxu0 %v2308_v0 }
 0x667   : > { %2743 = vrot.lane.b32.xlu0 %v2308_v0, %s5052_s3 }
 0x66a   : > { %2322 = vmatpush.bf16.msrb.mxu0 %v2307_v56 }
 0x66e   : > { %2599 = vrot.lane.b32.xlu1 %v2308_v0, %s5051_s6  ;;  %2323 = vmatpush.bf16.msrb.mxu0 %v2306_v60 }
 0x66f   : > { %2621 = vrot.lane.b32.xlu0 %v3931_v21, %s5051_s6 }
 0x672   : > { %2324 = vmatpush.bf16.msrb.mxu0 %v3933_v30 }
 0x675   : > { %v1555_v26 = vpop.permute.xlu1 %1554 }
 0x676   : > { %2593 = vrot.lane.b32.xlu1 %v3933_v30, %s5051_s6 }
 0x67d   : > { %2074 = vperm.xlu2 %3420, %v2066_v49  }
 0x67e   : > { %v2070_v29 = vpop.permute.xlu1 %2069 }
 0x685   : > { %2451 = vrot.lane.b32.xlu2 %v2306_v60, %s5050_s5 }
 0x68d   : > { %2597 = vrot.lane.b32.xlu2 %v2307_v56, %s5051_s6 }
 0x695   : > { %2449 = vrot.lane.b32.xlu2 %v3933_v30, %s5050_s5 }
 0x69d   : > { %2595 = vrot.lane.b32.xlu2 %v2306_v60, %s5051_s6 }
 0x6a5   : > { %2741 = vrot.lane.b32.xlu2 %v2307_v56, %s5052_s3 }
 0x6ad   : > { %2739 = vrot.lane.b32.xlu2 %v2306_v60, %s5052_s3 }
 0x6d8   : > { %v1282_v6 = vpop.xlane.xlu2 %1281  ;;  %v2456_v32 = vpop.permute.xlu1 %2455 }
 0x6d9   : > { %v1283_v8 = vmul.f32 %v1282_v6, %v3920_v5 }
 0x6db   : > { %v1284_v10 = vadd.f32 1e-05, %v1283_v8 }
 0x6dd   : > { %3590 = vrsqrt.f32 %v1284_v10  ;;  %vm1291_vm8 = vweird.f32 %v1284_v10 }
 0x6e3   : > { %v3591_v11 = vpop.eup %3590 }
 0x6e4   : > { %v1286_v12 = vmul.f32 %v3591_v11, %v1284_v10  ;;  %vm1292_vm7 = vweird.f32 %v3591_v11 }
 0x6e5   : > { %vm1293_vm9 = vmor %vm1291_vm8, %vm1292_vm7 }
 0x6e6   : > { %v1287_v13 = vmul.f32 %v3591_v11, %v1286_v12 }
 0x6e8   : > { %v1288_v14 = vmul.f32 0.5, %v1287_v13 }
 0x6ea   : > { %v1289_v15 = vsub.f32 1.5, %v1288_v14 }
 0x6ec   : > { %v1290_v16 = vmul.f32 %v3591_v11, %v1289_v15 }
 0x6ee   : > { %v1294_v18 = vsel %vm1293_vm9, %v3591_v11, %v1290_v16 }
 0x6ef   : > { %v1295_v19 = vmul.f32 %v1294_v18, %v3923_v9  ;;  %v2075_v9 = vpop.permute.xlu2 %2074 }
 0x6f1   : > { %v1299_v22 = vmul.f32 %v3561_v17, %v1295_v19 }
 0x6f3   : > { %v3983_v23 = vadd.f32 %v3562_v20, %v1299_v22 }
 0x6f5   : > { %5056 = vst [vmem:[#allocation4_spill] sm:$0xff] %v3983_v23  ;;  %v1426_v24 = vpack.c.bf16 %v3983_v23, %v3983_v23 }
 0x6f7   : > { %3195 = vmatmul.msk.bf16.vlgmr.msrb.gmra.mxu2 %vm4988_vm0, %v1426_v24  ;;  %3200 = vmatmul.msk.bf16.vlgmr.msra.gmra.mxu0 %vm4988_vm0, %v1426_v24  ;;  %v2452_v28 = vpop.permute.xlu2 %2451 }
 0x6f8   : > { %2468 = vmatpush.bf16.msrb.mxu2 %v2456_v32  ;;  %2490 = vmatpush.bf16.msra.mxu0 %v2478_v34  ;;  %v4062_v32 = vpop.permute.xlu0 %2743 }
 0x6fc   : > { %2469 = vmatpush.bf16.msrb.mxu2 %v2454_v31 }
 0x6ff   : > { %v3990_v33 = vpop.permute.xlu2 %2597 }
 0x700   : > { %2470 = vmatpush.bf16.msrb.mxu2 %v2452_v28 }
 0x707   : > { %v2450_v35 = vpop.permute.xlu2 %2449 }
 0x708   : > { %2471 = vmatpush.bf16.msrb.mxu2 %v2450_v35  ;;  %v4064_v35 = vpop.permute.xlu0 %2621 }
 0x70f   : > { %v2596_v28 = vpop.permute.xlu2 %2595 }
 0x774   : > { %v1486_v37 = vpop.f32.mrf.mxu0 }
 0x775   : > { %v3995_v38 = vadd.f32 %v3563_v36, %v1486_v37  ;;  %v2600_v36 = vpop.permute.xlu1 %2599 }
 0x777   : > { %v1493_v39 = vsel %vm1492_vm11, %v3995_v38, -inf }
 0x778   : > { %1494 = vmax.xlane.f32.xlu0 %v1493_v39 }
 0x77a   : > { %v1459_v41 = vpop.f32.mrf.mxu2 }
 0x77b   : > { %v1460_v42 = vadd.f32 %v3564_v40, %v1459_v41  ;;  %v4989_v41 = vmov 0.0  }
 0x77c   : > { %v1488_v43 = vpop.f32.mrf.mxu0 }
 0x77d   : > { %v1557_v45 = vadd.f32 %v1555_v26, %v1460_v42  ;;  %v2077_v46 = vadd.f32 %v2075_v9, %v1460_v42  ;;  %v2072_v52 = vadd.f32 %v2070_v29, %v1460_v42  ;;  %v1552_v54 = vadd.f32 %v1550_v27, %v1460_v42  ;;  %v4058_v29 = vpop.permute.xlu2 %2741 }
 0x77f   : > { %v4002_v47 = vfloor.f32 %v1557_v45  ;;  %v4004_v48 = vfloor.f32 %v2077_v46  ;;  %v4012_v53 = vfloor.f32 %v2072_v52  ;;  %v1558_v59 = vfloor.f32 %v1552_v54 }
 0x781   : > { %vm2089_vm12 = vcmp.ge.f32.partialorder %v4004_v48, 0.0  ;;  %vm1569_vm13 = vcmp.ge.f32.partialorder %v4002_v47, 0.0  ;;  %vm2095_vm14 = vcmp.le.f32.partialorder %v4004_v48, 7.0  ;;  %vm1575_vm15 = vcmp.le.f32.partialorder %v4002_v47, 3.0 }
 0x782   : > { %v1461_v49 = vpop.f32.mrf.mxu2  ;;  %v2090_v50 = vsel %vm2089_vm12, 1, %v3621_v44  ;;  %v1570_v51 = vsel %vm1569_vm13, 1, %v3621_v44  ;;  %v2096_v55 = vsel %vm2095_vm14, 1, %v3621_v44  ;;  %v1576_v56 = vsel %vm1575_vm15, 1, %v3621_v44 }
 0x783   : > { %2091 = vrot.lane.b32.xlu1 %v2090_v50, %s5051_s6  ;;  %1571 = vrot.lane.b32.xlu2 %v1570_v51, %s5051_s6  ;;  %v2080_v57 = vsub.f32 %v2072_v52, %v4012_v53  ;;  %v4022_v58 = vadd.f32 1.0, %v4002_v47  ;;  %v4026_v60 = vadd.f32 1.0, %v4004_v48  ;;  %v4029_v61 = vsub.f32 %v2077_v46, %v4004_v48  ;;  %v2594_v50 = vpop.permute.xlu1 %2593 }
 0x784   : > { %v4032_v62 = vsub.f32 %v1557_v45, %v4002_v47  ;;  %v1608_v63 = vadd.f32 1.0, %v1558_v59  ;;  %v1560_v0 = vsub.f32 %v1552_v54, %v1558_v59  ;;  %v4044_v4 = vadd.f32 1.0, %v4012_v53 }
 0x785   : > { %vm1634_vm2 = vcmp.ge.f32.partialorder %v4022_v58, 0.0  ;;  %vm2150_vm6 = vcmp.ge.f32.partialorder %v4026_v60, 0.0  ;;  %vm2156_vm7 = vcmp.le.f32.partialorder %v4026_v60, 7.0  ;;  %vm1640_vm8 = vcmp.le.f32.partialorder %v4022_v58, 3.0  ;;  %v4060_v31 = vpop.permute.xlu2 %2739 }
 0x786   : > { %v1635_v1 = vsel %vm1634_vm2, 1, %v3621_v44  ;;  %v2151_v7 = vsel %vm2150_vm6, 1, %v3621_v44  ;;  %v1616_v2 = vmax.f32 %v1608_v63, 0.0  ;;  %v1583_v6 = vmax.f32 %v1558_v59, 0.0 }
 0x787   : > { %v2157_v8 = vsel %vm2156_vm7, 1, %v3621_v44  ;;  %v1641_v10 = vsel %vm1640_vm8, 1, %v3621_v44  ;;  %v1563_v11 = vsub.f32 1.0, %v1560_v0  ;;  %v2132_v14 = vmax.f32 %v4044_v4, 0.0 }
 0x788   : > { %v1617_v3 = vmin.f32 %v1616_v2, 3.0  ;;  %v1584_v15 = vmin.f32 %v1583_v6, 3.0  ;;  %v2083_v18 = vsub.f32 1.0, %v2080_v57  ;;  %v2103_v20 = vmax.f32 %v4012_v53, 0.0 }
 0x789   : > { %v2133_v17 = vmin.f32 %v2132_v14, 7.0  ;;  %vm1566_vm13 = vcmp.ge.f32.partialorder %v1558_v59, 0.0  ;;  %vm1567_vm14 = vcmp.le.f32.partialorder %v1558_v59, 3.0  ;;  %vm1609_vm15 = vcmp.ge.f32.partialorder %v1608_v63, 0.0 }
 0x78a   : > { %v3357_v12 = vceil.f32 %v1617_v3  ;;  %v3358_v13 = vfloor.f32 %v1617_v3  ;;  %vm3356_vm9 = vcmp.lt.s32.totalorder %v1617_v3, 0  ;;  %v3353_v19 = vcvt.f32.s32 %v1584_v15  ;;  %vm4066_vm7 = vmand %vm1566_vm13, %vm1567_vm14 }
 0x78b   : > { %2097 = vrot.lane.b32.xlu1 %v2096_v55, %s5051_s6  ;;  %1577 = vrot.lane.b32.xlu2 %v1576_v56, %s5051_s6  ;;  %v3371_v22 = vceil.f32 %v2133_v17  ;;  %v3372_v24 = vfloor.f32 %v2133_v17  ;;  %vm3370_vm12 = vcmp.lt.s32.totalorder %v2133_v17, 0  ;;  %v2104_v25 = vmin.f32 %v2103_v20, 7.0 }
 0x78c   : > { %2139 = vrot.lane.b32.xlu0 %v2080_v57, %s5057_s4  ;;  %v3359_v16 = vsel %vm3356_vm9, %v3357_v12, %v3358_v13  ;;  %vm1610_vm2 = vcmp.le.f32.partialorder %v1608_v63, 3.0  ;;  %v5019_v56 = vmov 16   ;;  %vm2125_vm14 = vcmp.ge.f32.partialorder %v4044_v4, 0.0 }
 0x78d   : > { %v3360_v44 = vcvt.f32.s32 %v3359_v16  ;;  %v3373_v9 = vsel %vm3370_vm12, %v3371_v22, %v3372_v24  ;;  %v3367_v26 = vcvt.f32.s32 %v2104_v25  ;;  %vm4070_vm8 = vmand %vm1609_vm15, %vm1610_vm2  ;;  %3443 = vset.pattern.permute.xlu1 %v5019_v56  ;;  %3445 = vset.pattern.permute.xlu2 %v5019_v56  ;;  %vm2126_vm15 = vcmp.le.f32.partialorder %v4044_v4, 7.0 }
 0x78e   : > { %v3374_v27 = vcvt.f32.s32 %v3373_v9  ;;  %v5023_v59 = vsub.f32 1.0, %v4029_v61  ;;  %v5021_v3 = vmov 24   ;;  %v1648_v6 = vmax.f32 %v4022_v58, 0.0 }
 0x78f   : > { %3444 = vset.pattern.permute.xlu0 %v5021_v3  ;;  %v1586_v12 = vmax.f32 %v4002_v47, 0.0  ;;  %v2164_v17 = vmax.f32 %v4026_v60, 0.0  ;;  %v2106_v60 = vmax.f32 %v4004_v48, 0.0 }
 0x791   : > { %v1587_v47 = vmin.f32 %v1586_v12, 3.0  ;;  %v5007_v12 = vmov 29  }
 0x793   : > { %1636 = vrot.lane.b32.xlu2 %v1635_v1, %s5051_s6  ;;  %1623 = vrot.lane.b32.xlu1 %v1560_v0, %s5057_s4  ;;  %v3355_v9 = vcvt.f32.s32 %v1587_v47  ;;  %v5001_v47 = vmov 21  }
 0x794   : > { %2152 = vrot.lane.b32.xlu0 %v2151_v7, %s5051_s6 }
 0x795   : > { %v1589_v48 = vmul.u32 4, %v3355_v9  ;;  %v4993_v9 = vmov 31  }
 0x79b   : > { %2158 = vrot.lane.b32.xlu2 %v2157_v8, %s5051_s6  ;;  %1642 = vrot.lane.b32.xlu1 %v1641_v10, %s5051_s6  ;;  %s5157_s6 = smov 8  }
 0x79c   : > { %1594 = vrot.lane.b32.xlu0 %v1563_v11, %s5057_s4  ;;  %v1649_v11 = vmin.f32 %v1648_v6, 3.0  ;;  %v5017_v6 = vmov 25  }
 0x79e   : > { %v3362_v15 = vceil.f32 %v1649_v11  ;;  %v3363_v16 = vfloor.f32 %v1649_v11 }
 0x7a3   : > { %2114 = vrot.lane.b32.xlu2 %v2083_v18, %s5057_s4  ;;  %1590 = vrot.lane.b32.xlu1 %v3353_v19, %s5057_s4  ;;  %v5024_v18 = vsub.f32 1.0, %v4032_v62 }
 0x7a4   : > { %1619 = vrot.lane.b32.xlu0 %v3360_v44, %s5057_s4 }
 0x7ab   : > { %2110 = vrot.lane.b32.xlu1 %v3367_v26, %s5057_s4 }
 0x7ac   : > { %2135 = vrot.lane.b32.xlu0 %v3374_v27, %s5057_s4  ;;  %v2165_v27 = vmin.f32 %v2164_v17, 7.0  ;;  %v4999_v17 = vmov 30  }
 0x7dd   : > { %v1572_v34 = vpop.permute.xlu2 %1571 }
 0x7de   : > { %vm1573_vm6 = vcmp.ne.s32.totalorder %v1572_v34, 0 }
 0x7df   : > { %vm1574_vm9 = vmand %vm4066_vm7, %vm1573_vm6 }
 0x7e0   : > { %vm1612_vm12 = vmand %vm4070_vm8, %vm1573_vm6 }
 0x7e5   : > { %v1578_v40 = vpop.permute.xlu2 %1577 }
 0x7e6   : > { %vm1579_vm5 = vcmp.ne.s32.totalorder %v1578_v40, 0  ;;  %v2107_v40 = vmin.f32 %v2106_v60, 7.0 }
 0x7e7   : > { %vm1580_vm4 = vmand %vm1574_vm9, %vm1579_vm5 }
 0x7e8   : > { %v3207_v42 = vsel %vm1580_vm4, 1.0, %v4989_v41  ;;  %vm1613_vm13 = vmand %vm1612_vm12, %vm1579_vm5  ;;  %vm2086_vm4 = vcmp.ge.f32.partialorder %v4012_v53, 0.0  ;;  %vm2087_vm5 = vcmp.le.f32.partialorder %v4012_v53, 7.0 }
 0x7e9   : > { %v3208_v43 = vsel %vm1613_vm13, 1.0, %v4989_v41  ;;  %vm4093_vm6 = vmand %vm2086_vm4, %vm2087_vm5 }
 0x7ea   : > { %v3423_v45 = vpack.i.bf16 %v3208_v43, %v3207_v42  ;;  %vm4097_vm9 = vmand %vm2125_vm14, %vm2126_vm15  ;;  %v3376_v43 = vceil.f32 %v2165_v27 }
 0x7eb   : > { %v1495_v46 = vpop.xlane.xlu0 %1494 }
 0x7ec   : > { %v1496_v49 = vsub.f32 %v3995_v38, %v1495_v46  ;;  %3424 = vrot.lane.b32.xlu2 %v3423_v45, %s5057_s4  ;;  %v3377_v45 = vfloor.f32 %v2165_v27 }
 0x7ed   : > { %v1637_v0 = vpop.permute.xlu2 %1636 }
 0x7ee   : > { %v1497_v51 = vmul.f32 1.442695, %v1496_v49  ;;  %vm1638_vm14 = vcmp.ne.s32.totalorder %v1637_v0, 0  ;;  %v5003_v0 = vmov 27  }
 0x7f0   : > { %3592 = vpow2.f32 %v1497_v51 }
 0x7f5   : > { %v2092_v52 = vpop.permute.xlu1 %2091  ;;  %v2159_v14 = vpop.permute.xlu2 %2158 }
 0x7f6   : > { %v4082_v54 = vpop.eup %3592  ;;  %vm2093_vm2 = vcmp.ne.s32.totalorder %v2092_v52, 0 }
 0x7f7   : > { %v1499_v55 = vpack.c.bf16 %v4082_v54, %v4082_v54  ;;  %vm2094_vm12 = vmand %vm4093_vm6, %vm2093_vm2 }
 0x7f8   : > { %vm2128_vm13 = vmand %vm4097_vm9, %vm2093_vm2 }
 0x7f9   : > { %3205 = vmatmul.msk.bf16.vlgmr.msra.gmra.mxu1 %vm1492_vm11, %v1499_v55 }
 0x7fa   : > { %2612 = vmatpush.bf16.msra.mxu1 %v2600_v36 }
 0x7fd   : > { %v2098_v53 = vpop.permute.xlu1 %2097 }
 0x7fe   : > { %2613 = vmatpush.bf16.msra.mxu1 %v3990_v33  ;;  %vm2099_vm3 = vcmp.ne.s32.totalorder %v2098_v53, 0  ;;  %v2140_v63 = vpop.permute.xlu0 %2139 }
 0x7ff   : > { %vm2100_vm4 = vmand %vm2094_vm12, %vm2099_vm3  ;;  %v4109_v1 = vmul.f32 %v2140_v63, %v5023_v59  ;;  %v4112_v7 = vmul.f32 %v2140_v63, %v4029_v61 }
 0x800   : > { %v3243_v2 = vsel %vm2100_vm4, 1.0, %v4989_v41  ;;  %vm2129_vm5 = vmand %vm2128_vm13, %vm2099_vm3  ;;  %vm2160_vm4 = vcmp.ne.s32.totalorder %v2159_v14, 0  ;;  %v5011_v14 = vmov 18  }
 0x801   : > { %v3244_v4 = vsel %vm2129_vm5, 1.0, %v4989_v41  ;;  %vm4124_vm3 = vmand %vm4066_vm7, %vm1638_vm14 }
 0x802   : > { %2614 = vmatpush.bf16.msra.mxu1 %v2596_v28  ;;  %v3428_v33 = vpack.i.bf16 %v3244_v4, %v3243_v2  ;;  %vm4134_vm13 = vmand %vm4070_vm8, %vm1638_vm14  ;;  %v5015_v4 = vmov 17  }
 0x804   : > { %3429 = vrot.lane.b32.xlu2 %v3428_v33, %s5057_s4  ;;  %v5009_v33 = vmov 28  }
 0x805   : > { %v4119_v8 = vpop.permute.xlu1 %1623 }
 0x806   : > { %2615 = vmatpush.bf16.msra.mxu1 %v2594_v50  ;;  %v2153_v10 = vpop.permute.xlu0 %2152  ;;  %v3369_v50 = vcvt.f32.s32 %v2107_v40 }
 0x807   : > { %vm2154_vm15 = vcmp.ne.s32.totalorder %v2153_v10, 0  ;;  %v4997_v10 = vmov 19  }
 0x808   : > { %vm2155_vm2 = vmand %vm4093_vm6, %vm2154_vm15  ;;  %vm3361_vm6 = vcmp.lt.s32.totalorder %v1649_v11, 0  ;;  %v4167_v55 = vmul.u32 8, %v3369_v50  ;;  %v5013_v11 = vmov 26  }
 0x809   : > { %vm2176_vm12 = vmand %vm4097_vm9, %vm2154_vm15  ;;  %v3364_v26 = vsel %vm3361_vm6, %v3362_v15, %v3363_v16 }
 0x80a   : > { %vm2161_vm7 = vmand %vm2155_vm2, %vm2160_vm4  ;;  %v3365_v39 = vcvt.f32.s32 %v3364_v26 }
 0x80b   : > { %vm2177_vm5 = vmand %vm2176_vm12, %vm2160_vm4  ;;  %v3245_v24 = vsel %vm2161_vm7, 1.0, %v4989_v41 }
 0x80c   : > { %v3246_v28 = vsel %vm2177_vm5, 1.0, %v4989_v41  ;;  %v4160_v49 = vmul.u32 4, %v3365_v39 }
 0x80d   : > { %v1643_v19 = vpop.permute.xlu1 %1642 }
 0x80e   : > { %vm1644_vm0 = vcmp.ne.s32.totalorder %v1643_v19, 0  ;;  %v1595_v20 = vpop.permute.xlu0 %1594  ;;  %v4991_v19 = vmov 22  }
 0x80f   : > { %vm1645_vm8 = vmand %vm4124_vm3, %vm1644_vm0  ;;  %v4144_v44 = vmul.f32 %v1595_v20, %v5024_v18  ;;  %v4147_v22 = vmul.f32 %v1595_v20, %v4032_v62  ;;  %v4995_v20 = vmov 20  }
 0x810   : > { %v3209_v25 = vsel %vm1645_vm8, 1.0, %v4989_v41  ;;  %vm1661_vm9 = vmand %vm4134_vm13, %vm1644_vm0  ;;  %vm3375_vm0 = vcmp.lt.s32.totalorder %v2165_v27, 0 }
 0x811   : > { %v3210_v34 = vsel %vm1661_vm9, 1.0, %v4989_v41  ;;  %v3433_v36 = vpack.i.bf16 %v3245_v24, %v3209_v25  ;;  %v3378_v52 = vsel %vm3375_vm0, %v3376_v43, %v3377_v45 }
 0x812   : > { %v3438_v37 = vpack.i.bf16 %v3246_v28, %v3210_v34  ;;  %v3379_v38 = vcvt.f32.s32 %v3378_v52  ;;  %v5005_v28 = vmov 23   ;;  %v4254_v34 = vpop.permute.xlu2 %2114 }
 0x813   : > { %3434 = vrot.lane.b32.xlu2 %v3433_v36, %s5057_s4 }
 0x814   : > { %3439 = vrot.lane.b32.xlu0 %v3438_v37, %s5057_s4  ;;  %v2167_v63 = vmul.u32 8, %v3379_v38 }
 0x815   : > { %v1591_v42 = vpop.permute.xlu1 %1590 }
 0x816   : > { %v4158_v46 = vadd.s32 %v1591_v42, %v1589_v48  ;;  %v4164_v51 = vadd.s32 %v4160_v49, %v1591_v42  ;;  %v1620_v13 = vpop.permute.xlu0 %1619 }
 0x817   : > { %v4202_v58 = vadd.s32 %v1620_v13, %v1589_v48  ;;  %v4224_v60 = vadd.s32 %v4160_v49, %v1620_v13 }
 0x818   : > { %1675 = vperm.xlu1 %3443, %v4158_v46  }
 0x81b   : > { %1701 = vperm.xlu2 %3445, %v4164_v51  }
 0x81d   : > { %v2111_v57 = vpop.permute.xlu1 %2110 }
 0x81e   : > { %v4170_v53 = vadd.s32 %v2111_v57, %v4167_v55  ;;  %v4175_v2 = vadd.s32 %v2167_v63, %v2111_v57  ;;  %v2136_v15 = vpop.permute.xlu0 %2135 }
 0x81f   : > { %v4209_v16 = vadd.s32 %v2167_v63, %v2136_v15  ;;  %v4243_v27 = vadd.s32 %v2136_v15, %v4167_v55 }
 0x820   : > { %3452 = vset.pattern.permute.xlu1 %v5003_v0  ;;  %2189 = vperm.xlu0 %3444, %v4170_v53  }
 0x821   : > { %2401 = vperm.xlu1 %3452, %v4170_v53  }
 0x823   : > { %3446 = vset.pattern.permute.xlu2 %v5021_v3 }
 0x824   : > { %2215 = vperm.xlu2 %3446, %v4175_v2  }
 0x828   : > { %3447 = vset.pattern.permute.xlu0 %v5015_v4 }
 0x829   : > { %3454 = vset.pattern.permute.xlu1 %v5009_v33  ;;  %1727 = vperm.xlu0 %3447, %v4158_v46  }
 0x82a   : > { %2497 = vperm.xlu1 %3454, %v4170_v53  }
 0x82c   : > { %3448 = vset.pattern.permute.xlu2 %v5017_v6 }
 0x82d   : > { %2241 = vperm.xlu2 %3448, %v4170_v53  }
 0x831   : > { %1751 = vperm.xlu0 %3447, %v4164_v51  }
 0x832   : > { %3457 = vset.pattern.permute.xlu1 %v4997_v10 }
 0x833   : > { %1824 = vperm.xlu1 %3457, %v4158_v46  }
 0x835   : > { %3449 = vset.pattern.permute.xlu2 %v5013_v11 }
 0x836   : > { %2353 = vperm.xlu2 %3449, %v4170_v53  }
 0x839   : > { %3451 = vset.pattern.permute.xlu0 %v5013_v11 }
 0x83a   : > { %2377 = vperm.xlu0 %3451, %v4175_v2  }
 0x83b   : > { %3458 = vset.pattern.permute.xlu1 %v5007_v12 }
 0x83c   : > { %2545 = vperm.xlu1 %3458, %v4170_v53  }
 0x83e   : > { %3450 = vset.pattern.permute.xlu2 %v5017_v6 }
 0x83f   : > { %2265 = vperm.xlu2 %3450, %v4175_v2  }
 0x842   : > { %3455 = vset.pattern.permute.xlu0 %v5009_v33 }
 0x843   : > { %2521 = vperm.xlu0 %3455, %v4175_v2  }
 0x844   : > { %3460 = vset.pattern.permute.xlu1 %v4997_v10 }
 0x845   : > { %1848 = vperm.xlu1 %3460, %v4164_v51  }
 0x846   : > { %v4262_v37 = vpop.permute.xlu2 %3424 }
 0x847   : > { %3453 = vset.pattern.permute.xlu2 %v5011_v14  ;;  %v3427_v18 = vunpack.i.h.bf16 %v4262_v37  ;;  %v3426_v5 = vunpack.i.l.bf16 %v4262_v37 }
 0x848   : > { %1776 = vperm.xlu2 %3453, %v4158_v46  }
 0x84b   : > { %3480 = vset.pattern.permute.xlu0 %v5011_v14 }
 0x84c   : > { %1788 = vperm.xlu0 %3480, %v4202_v58  }
 0x84d   : > { %3463 = vset.pattern.permute.xlu1 %v5001_v47 }
 0x84e   : > { %1921 = vperm.xlu1 %3463, %v4158_v46  }
 0x850   : > { %1800 = vperm.xlu2 %3453, %v4164_v51  }
 0x854   : > { %3485 = vset.pattern.permute.xlu0 %v5003_v0 }
 0x855   : > { %2437 = vperm.xlu0 %3485, %v4209_v16  }
 0x856   : > { %3465 = vset.pattern.permute.xlu1 %v4999_v17 }
 0x857   : > { %2641 = vperm.xlu1 %3465, %v4170_v53  }
 0x858   : > { %3456 = vset.pattern.permute.xlu2 %v5003_v0 }
 0x859   : > { %2425 = vperm.xlu2 %3456, %v4175_v2  }
 0x85d   : > { %3491 = vset.pattern.permute.xlu0 %v4991_v19 }
 0x85e   : > { %1982 = vperm.xlu0 %3491, %v4202_v58   ;;  %v4270_v48 = vpop.permute.xlu2 %3429 }
 0x85f   : > { %3466 = vset.pattern.permute.xlu1 %v4991_v19 }
 0x860   : > { %1994 = vperm.xlu1 %3466, %v4164_v51  }
 0x861   : > { %3459 = vset.pattern.permute.xlu2 %v4995_v20 }
 0x862   : > { %1873 = vperm.xlu2 %3459, %v4158_v46  }
 0x866   : > { %2006 = vperm.xlu0 %3491, %v4224_v60  }
 0x868   : > { %3467 = vset.pattern.permute.xlu1 %v4999_v17 }
 0x869   : > { %2665 = vperm.xlu1 %3467, %v4175_v2  }
 0x86a   : > { %3461 = vset.pattern.permute.xlu2 %v5007_v12 }
 0x86b   : > { %2569 = vperm.xlu2 %3461, %v4175_v2  }
 0x86d   : > { %v4278_v42 = vpop.permute.xlu2 %3434 }
 0x86e   : > { %3502 = vset.pattern.permute.xlu0 %v5021_v3 }
 0x871   : > { %3468 = vset.pattern.permute.xlu1 %v5001_v47 }
 0x872   : > { %1945 = vperm.xlu1 %3468, %v4164_v51  }
 0x873   : > { %3462 = vset.pattern.permute.xlu2 %v4995_v20 }
 0x874   : > { %1897 = vperm.xlu2 %3462, %v4164_v51  }
 0x875   : > { %v4284_v45 = vpop.permute.xlu2 %1701 }
 0x876   : > { %v1518_v24 = vpop.f32.mrf.mxu1 }
 0x877   : > { %v1522_v25 = vpack.c.bf16 %v1518_v24, %v1518_v24 }
 0x879   : > { %3206 = vmatmul.msk.bf16.vlgmr.msra.gmra.mxu2 %vm1523_vm10, %v1522_v25 }
 0x87a   : > { %2634 = vmatpush.bf16.msra.mxu2 %v4064_v35  ;;  %3470 = vset.pattern.permute.xlu1 %v4993_v9 }
 0x87b   : > { %2689 = vperm.xlu1 %3470, %v4170_v53  }
 0x87c   : > { %3464 = vset.pattern.permute.xlu2 %v4991_v19 }
 0x87d   : > { %1970 = vperm.xlu2 %3464, %v4158_v46  }
 0x87e   : > { %v1520_v26 = vpop.f32.mrf.mxu1  ;;  %v4292_v49 = vpop.permute.xlu2 %2215 }
 0x883   : > { %3473 = vset.pattern.permute.xlu1 %v5021_v3 }
 0x884   : > { %2202 = vperm.xlu1 %3473, %v4243_v27  }
 0x885   : > { %3469 = vset.pattern.permute.xlu2 %v5005_v28 }
 0x886   : > { %2018 = vperm.xlu2 %3469, %v4158_v46  }
 0x88a   : > { %v4249_v35 = vpop.permute.xlu1 %1675 }
 0x88c   : > { %3474 = vset.pattern.permute.xlu1 %v5019_v56 }
 0x88d   : > { %1714 = vperm.xlu1 %3474, %v4224_v60  }
 0x88e   : > { %2042 = vperm.xlu2 %3469, %v4164_v51   ;;  %v4300_v51 = vpop.permute.xlu2 %2241 }
 0x893   : > { %v4256_v36 = vpop.permute.xlu1 %2401 }
 0x894   : > { %5070 = vst [vmem:[#allocation5_spill] sm:$0xff] %v4256_v36 }
 0x895   : > { %3475 = vset.pattern.permute.xlu1 %v5021_v3 }
 0x896   : > { %3471 = vset.pattern.permute.xlu2 %v4993_v9  ;;  %2228 = vperm.xlu1 %3475, %v4209_v16   ;;  %v4310_v38 = vpop.permute.xlu2 %2353 }
 0x897   : > { %2713 = vperm.xlu2 %3471, %v4175_v2  }
 0x89c   : > { %v4264_v39 = vpop.permute.xlu1 %2497 }
 0x89e   : > { %3477 = vset.pattern.permute.xlu1 %v5017_v6  ;;  %v4319_v53 = vpop.permute.xlu2 %2265 }
 0x89f   : > { %3472 = vset.pattern.permute.xlu2 %v5019_v56  ;;  %2253 = vperm.xlu1 %3477, %v4243_v27  }
 0x8a0   : > { %1688 = vperm.xlu2 %3472, %v4202_v58  }
 0x8a5   : > { %v4272_v40 = vpop.permute.xlu1 %1824 }
 0x8a6   : > { %5071 = vst [vmem:[#allocation6_spill] sm:$0xff] %v4272_v40  ;;  %v4329_v2 = vpop.permute.xlu2 %1776  ;;  %v5117_v40 = vmov 22  }
 0x8a7   : > { %3478 = vset.pattern.permute.xlu1 %v5013_v11 }
 0x8a8   : > { %3476 = vset.pattern.permute.xlu2 %v5015_v4  ;;  %2365 = vperm.xlu1 %3478, %v4243_v27  }
 0x8a9   : > { %1739 = vperm.xlu2 %3476, %v4202_v58  }
 0x8ae   : > { %v4280_v43 = vpop.permute.xlu1 %2545  ;;  %v4337_v15 = vpop.permute.xlu2 %1800 }
 0x8af   : > { %5072 = vst [vmem:[#allocation7_spill] sm:$0xff] %v4280_v43 }
 0x8b0   : > { %2389 = vperm.xlu1 %3478, %v4209_v16   ;;  %5080 = vst [vmem:[#allocation15_spill] sm:$0xff] %v4337_v15 }
 0x8b1   : > { %1763 = vperm.xlu2 %3476, %v4224_v60  }
 0x8b6   : > { %v4345_v25 = vpop.permute.xlu2 %2425 }
 0x8b7   : > { %v4286_v46 = vpop.permute.xlu1 %1848  ;;  %5081 = vst [vmem:[#allocation16_spill] sm:$0xff] %v4345_v25 }
 0x8b8   : > { %5073 = vst [vmem:[#allocation8_spill] sm:$0xff] %v4286_v46  ;;  %3484 = vset.pattern.permute.xlu1 %v5009_v33 }
 0x8b9   : > { %3479 = vset.pattern.permute.xlu2 %v5017_v6  ;;  %2533 = vperm.xlu1 %3484, %v4209_v16  }
 0x8ba   : > { %2277 = vperm.xlu2 %3479, %v4209_v16  }
 0x8c0   : > { %v4294_v50 = vpop.permute.xlu1 %1921 }
 0x8c1   : > { %5074 = vst [vmem:[#allocation9_spill] sm:$0xff] %v4294_v50  ;;  %3487 = vset.pattern.permute.xlu1 %v5007_v12 }
 0x8c2   : > { %3481 = vset.pattern.permute.xlu2 %v5009_v33  ;;  %2557 = vperm.xlu1 %3487, %v4243_v27  }
 0x8c3   : > { %2509 = vperm.xlu2 %3481, %v4243_v27  }
 0x8c9   : > { %v4302_v52 = vpop.permute.xlu1 %2641 }
 0x8ca   : > { %5075 = vst [vmem:[#allocation10_spill] sm:$0xff] %v4302_v52  ;;  %3488 = vset.pattern.permute.xlu1 %v4995_v20 }
 0x8cb   : > { %3482 = vset.pattern.permute.xlu2 %v5003_v0  ;;  %1885 = vperm.xlu1 %3488, %v4202_v58  }
 0x8cc   : > { %2413 = vperm.xlu2 %3482, %v4243_v27  }
 0x8d2   : > { %v4308_v55 = vpop.permute.xlu1 %1994 }
 0x8d3   : > { %5076 = vst [vmem:[#allocation11_spill] sm:$0xff] %v4308_v55  ;;  %3489 = vset.pattern.permute.xlu1 %v5007_v12 }
 0x8d4   : > { %3483 = vset.pattern.permute.xlu2 %v5011_v14  ;;  %2581 = vperm.xlu1 %3489, %v4209_v16  }
 0x8d5   : > { %1812 = vperm.xlu2 %3483, %v4224_v60  }
 0x8db   : > { %v4316_v57 = vpop.permute.xlu1 %2665 }
 0x8dc   : > { %5077 = vst [vmem:[#allocation12_spill] sm:$0xff] %v4316_v57  ;;  %3490 = vset.pattern.permute.xlu1 %v4995_v20  ;;  %v4353_v20 = vpop.permute.xlu2 %1873  ;;  %v1602_v57 = vmul.f32 %v3426_v5, %v4144_v44  ;;  %v3436_v5 = vunpack.i.l.bf16 %v4278_v42 }
 0x8dd   : > { %3486 = vset.pattern.permute.xlu2 %v4997_v10  ;;  %1909 = vperm.xlu1 %3490, %v4224_v60  }
 0x8de   : > { %1836 = vperm.xlu2 %3486, %v4202_v58  }
 0x8e4   : > { %v4324_v63 = vpop.permute.xlu1 %1945 }
 0x8e5   : > { %5078 = vst [vmem:[#allocation13_spill] sm:$0xff] %v4324_v63  ;;  %3497 = vset.pattern.permute.xlu1 %v4993_v9  ;;  %v5094_v63 = vsub.f32 1.0, %v4029_v61 }
 0x8e6   : > { %1860 = vperm.xlu2 %3486, %v4224_v60   ;;  %2701 = vperm.xlu1 %3497, %v4243_v27  }
 0x8ed   : > { %v4331_v13 = vpop.permute.xlu1 %2689 }
 0x8ee   : > { %5079 = vst [vmem:[#allocation14_spill] sm:$0xff] %v4331_v13  ;;  %3492 = vset.pattern.permute.xlu2 %v4999_v17  ;;  %3498 = vset.pattern.permute.xlu1 %v5005_v28 }
 0x8ef   : > { %2653 = vperm.xlu2 %3492, %v4243_v27   ;;  %2054 = vperm.xlu1 %3498, %v4224_v60  }
 0x8f6   : > { %v4339_v24 = vpop.permute.xlu1 %2202 }
 0x8f7   : > { %3493 = vset.pattern.permute.xlu2 %v5001_v47  ;;  %3499 = vset.pattern.permute.xlu1 %v4993_v9 }
 0x8f8   : > { %1933 = vperm.xlu2 %3493, %v4202_v58   ;;  %2725 = vperm.xlu1 %3499, %v4209_v16  }
 0x8fc   : > { %v1539_v26 = vpop.f32.mrf.mxu2 }
 0x8fd   : > { %3594 = vrcp.f32 %v1539_v26  ;;  %v4360_v26 = vpop.permute.xlu2 %2569 }
 0x8fe   : > { %5082 = vst [vmem:[#allocation17_spill] sm:$0xff] %v4360_v26 }
 0x8ff   : > { %v4347_v41 = vpop.permute.xlu1 %1714 }
 0x900   : > { %3494 = vset.pattern.permute.xlu2 %v4999_v17  ;;  %3501 = vset.pattern.permute.xlu1 %v5019_v56 }
 0x901   : > { %2677 = vperm.xlu2 %3494, %v4209_v16  }
 0x903   : > { %v3595_v27 = vpop.eup %3594 }
 0x904   : > { %v1541_v19 = vpop.f32.mrf.mxu2  ;;  %v1544_v9 = vmul.f32 %v3595_v27, %v4082_v54 }
 0x905   : > { %v4366_v16 = vpop.permute.xlu2 %1897 }
 0x906   : > { %1604 = vrot.lane.b32.xlu1 %v1544_v9, %s5057_s4 }
 0x908   : > { %v4356_v10 = vpop.permute.xlu1 %2228 }
 0x909   : > { %3495 = vset.pattern.permute.xlu2 %v5001_v47 }
 0x90a   : > { %1957 = vperm.xlu2 %3495, %v4224_v60  }
 0x90d   : > { %v4373_v9 = vpop.permute.xlu2 %1970 }
 0x90e   : > { %5083 = vst [vmem:[#allocation18_spill] sm:$0xff] %v4373_v9 }
 0x911   : > { %v4362_v17 = vpop.permute.xlu1 %2253 }
 0x912   : > { %3496 = vset.pattern.permute.xlu2 %v5005_v28 }
 0x913   : > { %2030 = vperm.xlu2 %3496, %v4202_v58  }
 0x915   : > { %v4377_v60 = vpop.permute.xlu2 %2018 }
 0x916   : > { %5084 = vst [vmem:[#allocation19_spill] sm:$0xff] %v4377_v60  ;;  %v5093_v60 = vsub.f32 1.0, %v4032_v62 }
 0x91a   : > { %v4368_v54 = vpop.permute.xlu1 %2365 }
 0x91b   : > { %3500 = vset.pattern.permute.xlu2 %v5019_v56 }
 0x91d   : > { %v4381_v0 = vpop.permute.xlu2 %2042 }
 0x91e   : > { %5086 = vst [vmem:[#allocation21_spill] sm:$0xff] %v4381_v0  ;;  %v3431_v0 = vunpack.i.l.bf16 %v4270_v48 }
 0x922   : > { %v4371_v19 = vpop.permute.xlu1 %2389 }
 0x925   : > { %v4385_v58 = vpop.permute.xlu2 %2713 }
 0x926   : > { %5088 = vst [vmem:[#allocation23_spill] sm:$0xff] %v4385_v58 }
 0x92b   : > { %v4375_v27 = vpop.permute.xlu1 %2533 }
 0x92d   : > { %v4389_v33 = vpop.permute.xlu2 %1688 }
 0x934   : > { %v4379_v47 = vpop.permute.xlu1 %2557 }
 0x935   : > { %5085 = vst [vmem:[#allocation20_spill] sm:$0xff] %v4379_v47  ;;  %v4393_v11 = vpop.permute.xlu2 %1739  ;;  %v1672_v47 = vlaneseq }
 0x93d   : > { %v4383_v28 = vpop.permute.xlu1 %1885  ;;  %v4397_v6 = vpop.permute.xlu2 %1763 }
 0x93e   : > { %5087 = vst [vmem:[#allocation22_spill] sm:$0xff] %v4383_v28 }
 0x945   : > { %v4401_v3 = vpop.permute.xlu2 %2277 }
 0x946   : > { %v4387_v12 = vpop.permute.xlu1 %2581 }
 0x947   : > { %5089 = vst [vmem:[#allocation24_spill] sm:$0xff] %v4387_v12 }
 0x94d   : > { %v4407_v23 = vpop.permute.xlu2 %2509 }
 0x94f   : > { %v4391_v14 = vpop.permute.xlu1 %1909 }
 0x958   : > { %v4395_v4 = vpop.permute.xlu1 %2701 }
 0x959   : > { %5090 = vst [vmem:[#allocation25_spill] sm:$0xff] %v4395_v4  ;;  %v1626_v4 = vmul.f32 %v4119_v8, %v5093_v60  ;;  %v3437_v60 = vunpack.i.h.bf16 %v4278_v42  ;;  %v5097_v42 = vmov 16  }
 0x95b   : > { %v1631_v50 = vmul.f32 %v3427_v18, %v1626_v4  ;;  %v2169_v18 = vmul.f32 %v4254_v34, %v4029_v61  ;;  %v3440_v4 = vpop.permute.xlu0 %3439 }
 0x95c   : > { %v3442_v61 = vunpack.i.h.bf16 %v3440_v4 }
 0x95d   : > { %v2174_v44 = vmul.f32 %v3437_v60, %v2169_v18 }
 0x95e   : > { %v2186_v60 = vmul.f32 %v3442_v61, %v4112_v7 }
 0x961   : > { %v4399_v56 = vpop.permute.xlu1 %2054 }
 0x962   : > { %5091 = vst [vmem:[#allocation26_spill] sm:$0xff] %v4399_v56  ;;  %v2117_v56 = vmul.f32 %v4254_v34, %v5094_v63  ;;  %v3432_v63 = vunpack.i.h.bf16 %v4270_v48  ;;  %v5096_v48 = vmov 24   ;;  %v1665_v34 = vmul.f32 %v4119_v8, %v4032_v62 }
 0x963   : > { %v5100_v62 = vmov 17   ;;  %v4464_v7 = vpop.permute.xlu0 %2189  ;;  %v5101_v8 = vmov 26  }
 0x96a   : > { %v4403_v59 = vpop.permute.xlu1 %2725 }
 0x96b   : > { %5092 = vst [vmem:[#allocation27_spill] sm:$0xff] %v4403_v59  ;;  %v2122_v59 = vmul.f32 %v3431_v0, %v2117_v56  ;;  %v4429_v56 = vpop.permute.xlu2 %2413  ;;  %v1658_v0 = vmul.f32 %v3436_v5, %v4147_v22 }
 0x96c   : > { %5095 = vst [vmem:[#allocation28_spill] sm:$0xff] %v4429_v56 }
 0x973   : > { %v4447_v22 = vpop.permute.xlu2 %1812 }
 0x978   : > { %v1605_v12 = vpop.permute.xlu1 %1604 }
 0x979   : > { %v4417_v46 = vmul.f32 %v1605_v12, %v1602_v57  ;;  %v4419_v37 = vmul.f32 %v1631_v50, %v1605_v12  ;;  %v4421_v13 = vmul.f32 %v2122_v59, %v1605_v12  ;;  %v2147_v59 = vmul.f32 %v3432_v63, %v4109_v1 }
 0x97a   : > { %v4435_v50 = vmul.f32 %v2174_v44, %v1605_v12  ;;  %v4437_v57 = vmul.f32 %v1658_v0, %v1605_v12  ;;  %v3441_v1 = vunpack.i.l.bf16 %v3440_v4  ;;  %v4452_v5 = vmul.f32 %v2186_v60, %v1605_v12  ;;  %v4476_v0 = vpop.permute.xlu0 %1727 }
 0x97b   : > { %1682 = vperm.xlu2 %3500, %v4417_v46   ;;  %1695 = vperm.xlu1 %3501, %v4419_v37   ;;  %v4439_v58 = vmul.f32 %v2147_v59, %v1605_v12  ;;  %v5098_v44 = vmov 25   ;;  %v4461_v59 = vpop.permute.xlu2 %1836 }
 0x97c   : > { %2196 = vperm.xlu0 %3502, %v4421_v13   ;;  %v1670_v63 = vmul.f32 %v3441_v1, %v1665_v34  ;;  %5099 = vst [vmem:[#allocation29_spill] sm:$0xff] %v4461_v59  ;;  %v5106_v1 = vmov 28   ;;  %v4551_v59 = vand.u32 127, %v1672_v47 }
 0x97e   : > { %v4454_v18 = vmul.f32 %v1670_v63, %v1605_v12  ;;  %vm1690_vm10 = vcmp.eq.s32.totalorder %v4551_v59, %v4389_v33  ;;  %vm1677_vm14 = vcmp.eq.s32.totalorder %v4551_v59, %v4249_v35  ;;  %vm1703_vm15 = vcmp.eq.s32.totalorder %v4551_v59, %v4284_v45 }
 0x97f   : > { %vm2191_vm3 = vcmp.eq.s32.totalorder %v4551_v59, %v4464_v7  ;;  %vm2204_vm2 = vcmp.eq.s32.totalorder %v4551_v59, %v4339_v24  ;;  %vm1716_vm12 = vcmp.eq.s32.totalorder %v4551_v59, %v4347_v41  ;;  %vm2217_vm13 = vcmp.eq.s32.totalorder %v4551_v59, %v4292_v49 }
 0x980   : > { %vm2230_vm4 = vcmp.eq.s32.totalorder %v4551_v59, %v4356_v10  ;;  %vm2243_vm7 = vcmp.eq.s32.totalorder %v4551_v59, %v4300_v51  ;;  %v5120_v10 = vmov 21   ;;  %vm1729_vm6 = vcmp.eq.s32.totalorder %v4551_v59, %v4476_v0 }
 0x981   : > { %vm1741_vm5 = vcmp.eq.s32.totalorder %v4551_v59, %v4393_v11  ;;  %vm2255_vm8 = vcmp.eq.s32.totalorder %v4551_v59, %v4362_v17  ;;  %vm2511_vm9 = vcmp.eq.s32.totalorder %v4551_v59, %v4407_v23  ;;  %vm2355_vm0 = vcmp.eq.s32.totalorder %v4551_v59, %v4310_v38 }
 0x983   : > { %3505 = vset.pattern.permute.xlu2 %v5096_v48  ;;  %3503 = vset.pattern.permute.xlu1 %v5096_v48  ;;  %v4471_v12 = vpop.permute.xlu2 %1860  ;;  %v5104_v48 = vmov 18  }
 0x984   : > { %3504 = vset.pattern.permute.xlu0 %v5097_v42  ;;  %2222 = vperm.xlu2 %3505, %v4435_v50   ;;  %5102 = vst [vmem:[#allocation30_spill] sm:$0xff] %v4471_v12  ;;  %v5111_v12 = vmov 19  }
 0x985   : > { %1708 = vperm.xlu0 %3504, %v4437_v57   ;;  %2209 = vperm.xlu1 %3503, %v4439_v58  }
 0x98b   : > { %v4481_v4 = vpop.permute.xlu2 %2653 }
 0x98c   : > { %3506 = vset.pattern.permute.xlu2 %v5097_v42  ;;  %5103 = vst [vmem:[#allocation31_spill] sm:$0xff] %v4481_v4  ;;  %v4488_v42 = vpop.permute.xlu0 %1751 }
 0x98d   : > { %3508 = vset.pattern.permute.xlu0 %v5098_v44  ;;  %2235 = vperm.xlu1 %3503, %v4452_v5  }
 0x98e   : > { %2247 = vperm.xlu0 %3508, %v4421_v13   ;;  %1721 = vperm.xlu2 %3506, %v4454_v18  }
 0x993   : > { %v4491_v61 = vpop.permute.xlu2 %1933 }
 0x994   : > { %5105 = vst [vmem:[#allocation32_spill] sm:$0xff] %v4491_v61  ;;  %v4499_v34 = vpop.permute.xlu0 %2377 }
 0x995   : > { %3507 = vset.pattern.permute.xlu1 %v5100_v62 }
 0x996   : > { %3515 = vset.pattern.permute.xlu0 %v5101_v8  ;;  %1733 = vperm.xlu1 %3507, %v4417_v46  }
 0x997   : > { %3509 = vset.pattern.permute.xlu2 %v5100_v62  ;;  %2383 = vperm.xlu0 %3515, %v4435_v50  }
 0x998   : > { %1745 = vperm.xlu2 %3509, %v4419_v37  }
 0x99b   : > { %v4501_v60 = vpop.permute.xlu2 %2677 }
 0x99c   : > { %5107 = vst [vmem:[#allocation33_spill] sm:$0xff] %v4501_v60  ;;  %v4508_v63 = vpop.permute.xlu0 %2521  ;;  %v5114_v60 = vmov 20  }
 0x99e   : > { %3510 = vset.pattern.permute.xlu1 %v5098_v44 }
 0x99f   : > { %3517 = vset.pattern.permute.xlu0 %v5098_v44  ;;  %2259 = vperm.xlu1 %3510, %v4439_v58  }
 0x9a0   : > { %3512 = vset.pattern.permute.xlu2 %v5101_v8  ;;  %2283 = vperm.xlu0 %3517, %v4452_v5  }
 0x9a1   : > { %2371 = vperm.xlu2 %3512, %v4439_v58  }
 0x9a3   : > { %v4512_v61 = vpop.permute.xlu2 %1957 }
 0x9a4   : > { %5110 = vst [vmem:[#allocation34_spill] sm:$0xff] %v4512_v61 }
 0x9a7   : > { %3511 = vset.pattern.permute.xlu1 %v5101_v8 }
 0x9a8   : > { %3520 = vset.pattern.permute.xlu0 %v5104_v48  ;;  %2359 = vperm.xlu1 %3511, %v4421_v13  }
 0x9a9   : > { %3516 = vset.pattern.permute.xlu2 %v5100_v62  ;;  %1782 = vperm.xlu0 %3520, %v4417_v46  }
 0x9aa   : > { %1769 = vperm.xlu2 %3516, %v4454_v18  }
 0x9ab   : > { %v4524_v28 = vpop.permute.xlu2 %2030 }
 0x9ac   : > { %5112 = vst [vmem:[#allocation35_spill] sm:$0xff] %v4524_v28 }
 0x9b0   : > { %3513 = vset.pattern.permute.xlu1 %v5100_v62  ;;  %v5108_v62 = vmov 29  }
 0x9b1   : > { %3526 = vset.pattern.permute.xlu0 %v5106_v1  ;;  %1757 = vperm.xlu1 %3513, %v4437_v57  }
 0x9b2   : > { %3518 = vset.pattern.permute.xlu2 %v5101_v8  ;;  %2527 = vperm.xlu0 %3526, %v4435_v50   ;;  %v5109_v8 = vmov 27  }
 0x9b3   : > { %2395 = vperm.xlu2 %3518, %v4452_v5  }
 0x9b9   : > { %3514 = vset.pattern.permute.xlu1 %v5098_v44  ;;  %v4518_v44 = vpop.permute.xlu0 %1788 }
 0x9ba   : > { %2539 = vperm.xlu0 %3526, %v4452_v5   ;;  %2271 = vperm.xlu1 %3514, %v4435_v50  }
 0x9bb   : > { %3523 = vset.pattern.permute.xlu2 %v5106_v1 }
 0x9bc   : > { %2515 = vperm.xlu2 %3523, %v4439_v58  }
 0x9c1   : > { %v4528_v61 = vpop.permute.xlu0 %2437 }
 0x9c2   : > { %3531 = vset.pattern.permute.xlu0 %v5108_v62  ;;  %3519 = vset.pattern.permute.xlu1 %v5109_v8  ;;  %5113 = vst [vmem:[#allocation36_spill] sm:$0xff] %v4528_v61 }
 0x9c3   : > { %2551 = vperm.xlu0 %3531, %v4421_v13   ;;  %2407 = vperm.xlu1 %3519, %v4421_v13  }
 0x9c4   : > { %3527 = vset.pattern.permute.xlu2 %v5109_v8 }
 0x9c5   : > { %2431 = vperm.xlu2 %3527, %v4435_v50  }
 0x9c9   : > { %v4536_v28 = vpop.permute.xlu0 %1982 }
 0x9ca   : > { %5115 = vst [vmem:[#allocation37_spill] sm:$0xff] %v4536_v28 }
 0x9cb   : > { %3532 = vset.pattern.permute.xlu0 %v5111_v12  ;;  %3521 = vset.pattern.permute.xlu1 %v5104_v48 }
 0x9cc   : > { %1842 = vperm.xlu0 %3532, %v4419_v37   ;;  %1794 = vperm.xlu1 %3521, %v4419_v37  }
 0x9cd   : > { %3528 = vset.pattern.permute.xlu2 %v5104_v48 }
 0x9ce   : > { %1818 = vperm.xlu2 %3528, %v4454_v18  }
 0x9d1   : > { %v4544_v4 = vpop.permute.xlu0 %2006 }
 0x9d2   : > { %5116 = vst [vmem:[#allocation38_spill] sm:$0xff] %v4544_v4 }
 0x9d4   : > { %3534 = vset.pattern.permute.xlu0 %v5114_v60  ;;  %3522 = vset.pattern.permute.xlu1 %v5106_v1 }
 0x9d5   : > { %1879 = vperm.xlu0 %3534, %v4417_v46   ;;  %2503 = vperm.xlu1 %3522, %v4421_v13   ;;  %v1683_v26 = vpop.permute.xlu2 %1682 }
 0x9d6   : > { %3529 = vset.pattern.permute.xlu2 %v5109_v8 }
 0x9d7   : > { %2443 = vperm.xlu2 %3529, %v4452_v5  }
 0x9dd   : > { %3537 = vset.pattern.permute.xlu0 %v5108_v62  ;;  %3524 = vset.pattern.permute.xlu1 %v5109_v8 }
 0x9de   : > { %2575 = vperm.xlu0 %3537, %v4435_v50   ;;  %2419 = vperm.xlu1 %3524, %v4439_v58   ;;  %v2223_v1 = vpop.permute.xlu2 %2222 }
 0x9df   : > { %3538 = vset.pattern.permute.xlu2 %v5114_v60 }
 0x9e0   : > { %1903 = vperm.xlu2 %3538, %v4437_v57  }
 0x9e6   : > { %3539 = vset.pattern.permute.xlu0 %v5111_v12  ;;  %3525 = vset.pattern.permute.xlu1 %v5104_v48  ;;  %v5118_v48 = vmov 0.0  }
 0x9e7   : > { %1806 = vperm.xlu1 %3525, %v4437_v57   ;;  %1866 = vperm.xlu0 %3539, %v4454_v18   ;;  %v3212_v4 = vsel %vm1690_vm10, 1.0, %v5118_v48  ;;  %v3211_v15 = vsel %vm1677_vm14, 1.0, %v5118_v48  ;;  %v3247_v35 = vsel %vm2191_vm3, 1.0, %v5118_v48  ;;  %v3248_v61 = vsel %vm2204_vm2, 1.0, %v5118_v48 }
 0x9e8   : > { %1915 = vperm.xlu2 %3538, %v4454_v18   ;;  %v1722_v8 = vpop.permute.xlu2 %1721  ;;  %v1685_v52 = vmul.f32 %v3211_v15, %v1683_v26  ;;  %v3213_v45 = vsel %vm1703_vm15, 1.0, %v5118_v48  ;;  %v3214_v41 = vsel %vm1716_vm12, 1.0, %v5118_v48  ;;  %v3268_v17 = vsel %vm2511_vm9, 1.0, %v5118_v48 }
 0x9e9   : > { %v1724_v15 = vmul.f32 %v3214_v41, %v1722_v8  ;;  %v3216_v41 = vsel %vm1741_vm5, 1.0, %v5118_v48  ;;  %vm2367_vm10 = vcmp.eq.s32.totalorder %v4551_v59, %v4368_v54  ;;  %vm1778_vm14 = vcmp.eq.s32.totalorder %v4551_v59, %v4329_v2 }
 0x9ea   : > { %vm2379_vm15 = vcmp.eq.s32.totalorder %v4551_v59, %v4499_v34  ;;  %vm2391_vm3 = vcmp.eq.s32.totalorder %v4551_v59, %v4371_v19  ;;  %v3219_v54 = vsel %vm1778_vm14, 1.0, %v5118_v48  ;;  %vm1753_vm2 = vcmp.eq.s32.totalorder %v4551_v59, %v4488_v42 }
 0x9eb   : > { %vm2523_vm12 = vcmp.eq.s32.totalorder %v4551_v59, %v4508_v63  ;;  %vm2279_vm5 = vcmp.eq.s32.totalorder %v4551_v59, %v4401_v3  ;;  %vm1899_vm9 = vcmp.eq.s32.totalorder %v4551_v59, %v4366_v16  ;;  %vm2499_vm14 = vcmp.eq.s32.totalorder %v4551_v59, %v4264_v39 }
 0x9ed   : > { %v1696_v55 = vpop.permute.xlu1 %1695 }
 0x9ee   : > { %v2197_v28 = vpop.permute.xlu0 %2196  ;;  %v1698_v33 = vmul.f32 %v3212_v4, %v1696_v55  ;;  %v5119_v55 = vmov 30   ;;  %v3251_v4 = vsel %vm2243_vm7, 1.0, %v5118_v48  ;;  %vm2267_vm7 = vcmp.eq.s32.totalorder %v4551_v59, %v4319_v53 }
 0x9ef   : > { %3530 = vset.pattern.permute.xlu1 %v5111_v12  ;;  %3543 = vset.pattern.permute.xlu0 %v5117_v40  ;;  %v2199_v7 = vmul.f32 %v3247_v35, %v2197_v28  ;;  %v3215_v35 = vsel %vm1729_vm6, 1.0, %v5118_v48  ;;  %vm2535_vm6 = vcmp.eq.s32.totalorder %v4551_v59, %v4375_v27  ;;  %v3254_v53 = vsel %vm2279_vm5, 1.0, %v5118_v48 }
 0x9f0   : > { %3542 = vset.pattern.permute.xlu2 %v5117_v40  ;;  %1830 = vperm.xlu1 %3530, %v4417_v46   ;;  %v1699_v43 = vadd.f32 %v1698_v33, %v1685_v52  ;;  %v3249_v52 = vsel %vm2217_vm13, 1.0, %v5118_v48  ;;  %vm1765_vm13 = vcmp.eq.s32.totalorder %v4551_v59, %v4397_v6 }
 0x9f1   : > { %1988 = vperm.xlu0 %3543, %v4419_v37   ;;  %1976 = vperm.xlu2 %3542, %v4417_v46   ;;  %v3218_v42 = vsel %vm1765_vm13, 1.0, %v5118_v48 }
 0x9f2   : > { %v1746_v47 = vpop.permute.xlu2 %1745 }
 0x9f7   : > { %v2210_v25 = vpop.permute.xlu1 %2209  ;;  %v1709_v56 = vpop.permute.xlu0 %1708 }
 0x9f8   : > { %v2212_v36 = vmul.f32 %v3248_v61, %v2210_v25  ;;  %v1711_v9 = vmul.f32 %v3213_v45, %v1709_v56  ;;  %3533 = vset.pattern.permute.xlu1 %v5108_v62  ;;  %v2225_v25 = vmul.f32 %v3249_v52, %v2223_v1  ;;  %v3252_v52 = vsel %vm2255_vm8, 1.0, %v5118_v48 }
 0x9f9   : > { %3545 = vset.pattern.permute.xlu0 %v5119_v55  ;;  %3544 = vset.pattern.permute.xlu2 %v5119_v55  ;;  %vm2313_vm8 = vcmask 523264  }
 0x9fa   : > { %v2213_v24 = vadd.f32 %v2212_v36, %v2199_v7  ;;  %v1712_v26 = vadd.f32 %v1711_v9, %v1699_v43  ;;  %2563 = vperm.xlu1 %3533, %v4439_v58   ;;  %2659 = vperm.xlu0 %3545, %v4439_v58   ;;  %v3250_v36 = vsel %vm2230_vm4, 1.0, %v5118_v48  ;;  %vm1814_vm4 = vcmp.eq.s32.totalorder %v4551_v59, %v4447_v22 }
 0x9fb   : > { %2647 = vperm.xlu2 %3544, %v4421_v13   ;;  %v2372_v28 = vpop.permute.xlu2 %2371 }
 0x9fc   : > { %v1725_v49 = vadd.f32 %v1724_v15, %v1712_v26  ;;  %v2226_v9 = vadd.f32 %v2225_v25, %v2213_v24  ;;  %v5121_v15 = vmov 31   ;;  %v1748_v24 = vmul.f32 %v3216_v41, %v1746_v47 }
 0x9fd   : > { %v3269_v41 = vsel %vm2523_vm12, 1.0, %v5118_v48 }
 0x9ff   : > { %v2236_v43 = vpop.permute.xlu1 %2235 }
 0xa00   : > { %v2238_v56 = vmul.f32 %v3250_v36, %v2236_v43  ;;  %v2248_v61 = vpop.permute.xlu0 %2247  ;;  %v3257_v43 = vsel %vm2355_vm0, 1.0, %v5118_v48  ;;  %vm1790_vm0 = vcmp.eq.s32.totalorder %v4551_v59, %v4518_v44 }
 0xa01   : > { %v2250_v8 = vmul.f32 %v3251_v4, %v2248_v61  ;;  %v3259_v61 = vsel %vm2379_vm15, 1.0, %v5118_v48  ;;  %v3220_v16 = vsel %vm1790_vm0, 1.0, %v5118_v48  ;;  %vm1875_vm15 = vcmp.eq.s32.totalorder %v4551_v59, %v4353_v20 }
 0xa02   : > { %v2239_v33 = vadd.f32 %v2238_v56, %v2226_v9  ;;  %3535 = vset.pattern.permute.xlu1 %v5114_v60  ;;  %2683 = vperm.xlu0 %3545, %v4452_v5  }
 0xa03   : > { %3546 = vset.pattern.permute.xlu2 %v5120_v10  ;;  %1891 = vperm.xlu1 %3535, %v4419_v37  }
 0xa04   : > { %v2251_v51 = vadd.f32 %v2250_v8, %v2239_v33  ;;  %1939 = vperm.xlu2 %3546, %v4419_v37   ;;  %v4597_v1 = vpop.permute.xlu2 %1769  ;;  %v3260_v33 = vsel %vm2391_vm3, 1.0, %v5118_v48 }
 0xa05   : > { %v1772_v6 = vmul.f32 %v3218_v42, %v4597_v1 }
 0xa08   : > { %v1734_v60 = vpop.permute.xlu1 %1733 }
 0xa09   : > { %v1736_v45 = vmul.f32 %v3215_v35, %v1734_v60  ;;  %v2384_v7 = vpop.permute.xlu0 %2383  ;;  %v3217_v60 = vsel %vm1753_vm2, 1.0, %v5118_v48 }
 0xa0a   : > { %3553 = vset.pattern.permute.xlu0 %v5121_v15  ;;  %v2386_v2 = vmul.f32 %v3259_v61, %v2384_v7  ;;  %v5124_v61 = vld [vmem:[#allocation5_spill] sm:$0xff] }
 0xa0b   : > { %v1737_v26 = vadd.f32 %v1736_v45, %v1725_v49  ;;  %3536 = vset.pattern.permute.xlu1 %v5111_v12  ;;  %2695 = vperm.xlu0 %3553, %v4421_v13   ;;  %v5122_v13 = vmov 23   ;;  %vm2403_vm2 = vcmp.eq.s32.totalorder %v4551_v59, %v5124_v61 }
 0xa0c   : > { %3547 = vset.pattern.permute.xlu2 %v5117_v40  ;;  %1854 = vperm.xlu1 %3536, %v4437_v57  }
 0xa0d   : > { %2000 = vperm.xlu2 %3547, %v4437_v57   ;;  %v2396_v11 = vpop.permute.xlu2 %2395  ;;  %v1749_v0 = vadd.f32 %v1748_v24, %v1737_v26 }
 0xa0e   : > { %v2398_v19 = vmul.f32 %v3260_v33, %v2396_v11  ;;  %v3222_v11 = vsel %vm1814_vm4, 1.0, %v5118_v48 }
 0xa11   : > { %v2260_v25 = vpop.permute.xlu1 %2259 }
 0xa12   : > { %v2262_v47 = vmul.f32 %v3252_v52, %v2260_v25  ;;  %v4614_v49 = vpop.permute.xlu0 %2283 }
 0xa13   : > { %3555 = vset.pattern.permute.xlu0 %v5122_v13  ;;  %v2286_v27 = vmul.f32 %v3254_v53, %v4614_v49 }
 0xa14   : > { %v4619_v12 = vadd.f32 %v2262_v47, %v2251_v51  ;;  %3540 = vset.pattern.permute.xlu1 %v5108_v62  ;;  %2048 = vperm.xlu0 %3555, %v4437_v57   ;;  %v3258_v62 = vsel %vm2367_vm10, 1.0, %v5118_v48  ;;  %vm1911_vm10 = vcmp.eq.s32.totalorder %v4551_v59, %v4391_v14 }
 0xa15   : > { %3551 = vset.pattern.permute.xlu2 %v5120_v10  ;;  %2587 = vperm.xlu1 %3540, %v4452_v5   ;;  %v2374_v38 = vmul.f32 %v3258_v62, %v2372_v28 }
 0xa16   : > { %1963 = vperm.xlu2 %3551, %v4454_v18   ;;  %v2516_v36 = vpop.permute.xlu2 %2515 }
 0xa17   : > { %v4631_v23 = vmul.f32 %v3268_v17, %v2516_v36 }
 0xa1a   : > { %v2360_v9 = vpop.permute.xlu1 %2359 }
 0xa1b   : > { %v2362_v56 = vmul.f32 %v3257_v43, %v2360_v9  ;;  %v1783_v4 = vpop.permute.xlu0 %1782 }
 0xa1c   : > { %v4643_v8 = vmul.f32 %v3219_v54, %v1783_v4  ;;  %2060 = vperm.xlu0 %3555, %v4454_v18  }
 0xa1d   : > { %v2375_v34 = vadd.f32 %v2374_v38, %v2362_v56  ;;  %3541 = vset.pattern.permute.xlu1 %v5120_v10  ;;  %v3267_v56 = vsel %vm2499_vm14, 1.0, %v5118_v48 }
 0xa1e   : > { %3556 = vset.pattern.permute.xlu2 %v5121_v15  ;;  %1927 = vperm.xlu1 %3541, %v4417_v46  }
 0xa1f   : > { %v2387_v28 = vadd.f32 %v2386_v2, %v2375_v34  ;;  %2719 = vperm.xlu2 %3556, %v4435_v50   ;;  %v4651_v51 = vpop.permute.xlu2 %2431  ;;  %v3261_v34 = vsel %vm2403_vm2, 1.0, %v5118_v48 }
 0xa21   : > { %v4657_v35 = vadd.f32 %v2398_v19, %v2387_v28  ;;  %v5126_v28 = vld [vmem:[#allocation28_spill] sm:$0xff] }
 0xa22   : > { %vm2415_vm13 = vcmp.eq.s32.totalorder %v4551_v59, %v5126_v28 }
 0xa23   : > { %v1758_v45 = vpop.permute.xlu1 %1757 }
 0xa24   : > { %v1760_v7 = vmul.f32 %v3217_v60, %v1758_v45  ;;  %2765 = vrot.lane.b32.xlu0 %v3931_v21, %s5052_s3  ;;  %v2528_v24 = vpop.permute.xlu0 %2527 }
 0xa25   : > { %v4668_v63 = vmul.f32 %v3269_v41, %v2528_v24  ;;  %3557 = vset.pattern.permute.xlu0 %v5121_v15  ;;  %v5127_v24 = vld [vmem:[#allocation16_spill] sm:$0xff] }
 0xa26   : > { %v1761_v26 = vadd.f32 %v1760_v7, %v1749_v0  ;;  %3548 = vset.pattern.permute.xlu1 %v5119_v55  ;;  %vm2427_vm4 = vcmp.eq.s32.totalorder %v4551_v59, %v5127_v24 }
 0xa27   : > { %2737 = vrot.lane.b32.xlu2 %v3933_v30, %s5052_s3  ;;  %2671 = vperm.xlu1 %3548, %v4435_v50   ;;  %v3270_v30 = vsel %vm2535_vm6, 1.0, %v5118_v48  ;;  %v3253_v50 = vsel %vm2267_vm7, 1.0, %v5118_v48  ;;  %s5158_s3 = smov 24  }
 0xa28   : > { %v1773_v21 = vadd.f32 %v1772_v6, %v1761_v26  ;;  %v1819_v22 = vpop.permute.xlu2 %1818  ;;  %v5128_v26 = vld [vmem:[#allocation36_spill] sm:$0xff] }
 0xa29   : > { %v4681_v52 = vmul.f32 %v3222_v11, %v1819_v22  ;;  %vm2439_vm7 = vcmp.eq.s32.totalorder %v4551_v59, %v5128_v26  ;;  %v5129_v11 = vld [vmem:[#allocation10_spill] sm:$0xff]  ;;  %v3263_v22 = vsel %vm2427_vm4, 1.0, %v5118_v48 }
 0xa2a   : > { %v1774_v1 = vpack.c.bf16 %v1773_v21, %v1773_v21  ;;  %vm2643_vm6 = vcmp.eq.s32.totalorder %v4551_v59, %v5129_v11 }
 0xa2c   : > { %v2540_v55 = vpop.permute.xlu0 %2539  ;;  %v2272_v0 = vpop.permute.xlu1 %2271  ;;  %3256 = vmatmul.msk.bf16.vlgmr.msrb.gmra.mxu1 %vm1492_vm11, %v1774_v1  ;;  %v2434_v1 = vmul.f32 %v3263_v22, %v4651_v51 }
 0xa2d   : > { %v2542_v25 = vmul.f32 %v3270_v30, %v2540_v55  ;;  %v2274_v47 = vmul.f32 %v3253_v50, %v2272_v0  ;;  %v3264_v55 = vsel %vm2439_vm7, 1.0, %v5118_v48 }
 0xa2f   : > { %v2275_v17 = vadd.f32 %v2274_v47, %v4619_v12  ;;  %3549 = vset.pattern.permute.xlu1 %v5120_v10  ;;  %v5130_v47 = vld [vmem:[#allocation15_spill] sm:$0xff] }
 0xa30   : > { %1951 = vperm.xlu1 %3549, %v4437_v57   ;;  %v3229_v57 = vsel %vm1899_vm9, 1.0, %v5118_v48  ;;  %vm1802_vm5 = vcmp.eq.s32.totalorder %v4551_v59, %v5130_v47 }
 0xa31   : > { %v2287_v3 = vadd.f32 %v2286_v27, %v2275_v17  ;;  %v4693_v36 = vpop.permute.xlu2 %2443 }
 0xa32   : > { %v2446_v50 = vmul.f32 %v3264_v55, %v4693_v36  ;;  %v5140_v55 = vld [vmem:[#allocation23_spill] sm:$0xff] }
 0xa33   : > { %v2288_v62 = vpack.c.bf16 %v2287_v3, %v2287_v3  ;;  %vm2715_vm4 = vcmp.eq.s32.totalorder %v4551_v59, %v5140_v55  ;;  %v5150_v55 = vld [vmem:[#allocation38_spill] sm:$0xff] }
 0xa35   : > { %v2552_v43 = vpop.permute.xlu0 %2551  ;;  %3255 = vmatmul.msk.bf16.vlgmr.msrb.gmra.mxu0 %vm2313_vm8, %v2288_v62  ;;  %v2408_v9 = vpop.permute.xlu1 %2407 }
 0xa36   : > { %2756 = vmatpush.bf16.msrb.mxu0 %v4062_v32  ;;  %v2410_v45 = vmul.f32 %v3261_v34, %v2408_v9  ;;  %v5131_v9 = vld [vmem:[#allocation6_spill] sm:$0xff] }
 0xa37   : > { %vm1826_vm9 = vcmp.eq.s32.totalorder %v4551_v59, %v5131_v9 }
 0xa38   : > { %3550 = vset.pattern.permute.xlu1 %v5117_v40 }
 0xa39   : > { %2012 = vperm.xlu1 %3550, %v4454_v18   ;;  %v3230_v18 = vsel %vm1911_vm10, 1.0, %v5118_v48 }
 0xa3a   : > { %2757 = vmatpush.bf16.msrb.mxu0 %v4058_v29  ;;  %v1904_v10 = vpop.permute.xlu2 %1903 }
 0xa3b   : > { %v4705_v49 = vmul.f32 %v3229_v57, %v1904_v10  ;;  %v5132_v57 = vld [vmem:[#allocation37_spill] sm:$0xff] }
 0xa3c   : > { %vm1984_vm0 = vcmp.eq.s32.totalorder %v4551_v59, %v5132_v57  ;;  %v5133_v10 = vld [vmem:[#allocation29_spill] sm:$0xff] }
 0xa3d   : > { %vm1838_vm10 = vcmp.eq.s32.totalorder %v4551_v59, %v5133_v10 }
 0xa3e   : > { %2758 = vmatpush.bf16.msrb.mxu0 %v4060_v31  ;;  %v4708_v32 = vpop.permute.xlu0 %1842  ;;  %v1795_v12 = vpop.permute.xlu1 %1794  ;;  %v3227_v31 = vsel %vm1875_vm15, 1.0, %v5118_v48 }
 0xa3f   : > { %v1797_v40 = vmul.f32 %v3220_v16, %v1795_v12  ;;  %v3223_v16 = vsel %vm1826_vm9, 1.0, %v5118_v48 }
 0xa41   : > { %v1798_v29 = vadd.f32 %v1797_v40, %v4643_v8  ;;  %3552 = vset.pattern.permute.xlu1 %v5122_v13  ;;  %v5123_v13 = vld [vmem:[#allocation18_spill] sm:$0xff]  ;;  %v5125_v8 = vld [vmem:[#allocation7_spill] sm:$0xff]  ;;  %v3236_v40 = vsel %vm1984_vm0, 1.0, %v5118_v48 }
 0xa42   : > { %2024 = vperm.xlu1 %3552, %v4417_v46   ;;  %v1916_v44 = vpop.permute.xlu2 %1915  ;;  %vm1972_vm3 = vcmp.eq.s32.totalorder %v4551_v59, %v5123_v13  ;;  %vm2547_vm12 = vcmp.eq.s32.totalorder %v4551_v59, %v5125_v8  ;;  %v5135_v8 = vld [vmem:[#allocation20_spill] sm:$0xff] }
 0xa43   : > { %v4717_v38 = vmul.f32 %v3230_v18, %v1916_v44  ;;  %v3235_v39 = vsel %vm1972_vm3, 1.0, %v5118_v48  ;;  %v3271_v60 = vsel %vm2547_vm12, 1.0, %v5118_v48  ;;  %v5134_v18 = vld [vmem:[#allocation11_spill] sm:$0xff]  ;;  %vm2559_vm15 = vcmp.eq.s32.totalorder %v4551_v59, %v5135_v8 }
 0xa44   : > { %v2554_v7 = vmul.f32 %v3271_v60, %v2552_v43  ;;  %vm1996_vm14 = vcmp.eq.s32.totalorder %v4551_v59, %v5134_v18 }
 0xa47   : > { %v1880_v14 = vpop.permute.xlu0 %1879  ;;  %v2504_v54 = vpop.permute.xlu1 %2503 }
 0xa48   : > { %v4727_v46 = vmul.f32 %v3227_v31, %v1880_v14  ;;  %v2506_v4 = vmul.f32 %v3267_v56, %v2504_v54  ;;  %v3237_v54 = vsel %vm1996_vm14, 1.0, %v5118_v48 }
 0xa4a   : > { %v2519_v20 = vadd.f32 %v4631_v23, %v2506_v4  ;;  %2036 = vperm.xlu1 %3552, %v4419_v37   ;;  %v3262_v23 = vsel %vm2415_vm13, 1.0, %v5118_v48 }
 0xa4b   : > { %v1977_v2 = vpop.permute.xlu2 %1976 }
 0xa4c   : > { %v2531_v33 = vadd.f32 %v4668_v63, %v2519_v20  ;;  %v1979_v19 = vmul.f32 %v3235_v39, %v1977_v2  ;;  %v2411_v63 = vadd.f32 %v2410_v45, %v4657_v35  ;;  %v3277_v35 = vsel %vm2643_vm6, 1.0, %v5118_v48  ;;  %v5136_v20 = vld [vmem:[#allocation31_spill] sm:$0xff]  ;;  %v5137_v2 = vld [vmem:[#allocation17_spill] sm:$0xff] }
 0xa4d   : > { %vm2655_vm3 = vcmp.eq.s32.totalorder %v4551_v59, %v5136_v20  ;;  %vm2571_vm2 = vcmp.eq.s32.totalorder %v4551_v59, %v5137_v2  ;;  %v5147_v2 = vld [vmem:[#allocation12_spill] sm:$0xff] }
 0xa4e   : > { %v2543_v41 = vadd.f32 %v2542_v25, %v2531_v33  ;;  %v3278_v33 = vsel %vm2655_vm3, 1.0, %v5118_v48  ;;  %v3273_v45 = vsel %vm2571_vm2, 1.0, %v5118_v48  ;;  %vm2667_vm14 = vcmp.eq.s32.totalorder %v4551_v59, %v5147_v2 }
 0xa4f   : > { %vm2008_vm2 = vcmp.eq.s32.totalorder %v4551_v59, %v5150_v55 }
 0xa50   : > { %v2576_v37 = vpop.permute.xlu0 %2575  ;;  %v2420_v42 = vpop.permute.xlu1 %2419  ;;  %v2555_v6 = vadd.f32 %v2554_v7, %v2543_v41 }
 0xa51   : > { %v2422_v21 = vmul.f32 %v3262_v23, %v2420_v42  ;;  %v2578_v7 = vmul.f32 %v3273_v45, %v2576_v37  ;;  %v5138_v42 = vld [vmem:[#allocation33_spill] sm:$0xff] }
 0xa52   : > { %3554 = vset.pattern.permute.xlu1 %v5121_v15  ;;  %v3221_v15 = vsel %vm1802_vm5, 1.0, %v5118_v48  ;;  %vm2679_vm12 = vcmp.eq.s32.totalorder %v4551_v59, %v5138_v42  ;;  %v5148_v45 = vld [vmem:[#allocation13_spill] sm:$0xff] }
 0xa53   : > { %v2423_v30 = vadd.f32 %v2422_v21, %v2411_v63  ;;  %2707 = vperm.xlu1 %3554, %v4439_v58   ;;  %v5139_v63 = vld [vmem:[#allocation22_spill] sm:$0xff]  ;;  %v3280_v21 = vsel %vm2679_vm12, 1.0, %v5118_v48 }
 0xa54   : > { %vm1887_vm13 = vcmp.eq.s32.totalorder %v4551_v59, %v5139_v63 }
 0xa55   : > { %v2435_v0 = vadd.f32 %v2434_v1, %v2423_v30  ;;  %v2648_v25 = vpop.permute.xlu2 %2647  ;;  %v3228_v1 = vsel %vm1887_vm13, 1.0, %v5118_v48 }
 0xa56   : > { %v2650_v53 = vmul.f32 %v3277_v35, %v2648_v25  ;;  %v5141_v35 = vld [vmem:[#allocation14_spill] sm:$0xff] }
 0xa57   : > { %v2447_v27 = vadd.f32 %v2446_v50, %v2435_v0  ;;  %v3283_v50 = vsel %vm2715_vm4, 1.0, %v5118_v48  ;;  %vm2691_vm7 = vcmp.eq.s32.totalorder %v4551_v59, %v5141_v35 }
 0xa59   : > { %v2448_v17 = vpack.c.bf16 %v2447_v27, %v2447_v27  ;;  %v1807_v51 = vpop.permute.xlu1 %1806  ;;  %v4759_v3 = vpop.permute.xlu0 %1866 }
 0xa5a   : > { %v1809_v58 = vmul.f32 %v3221_v15, %v1807_v51 }
 0xa5b   : > { %2731 = vperm.xlu1 %3554, %v4452_v5   ;;  %3265 = vmatmul.msk.bf16.vlgmr.msrb.gmra.mxu2 %vm2313_vm8, %v2448_v17  ;;  %v5143_v17 = vld [vmem:[#allocation30_spill] sm:$0xff] }
 0xa5c   : > { %v1810_v36 = vadd.f32 %v1809_v58, %v1798_v29  ;;  %vm1862_vm5 = vcmp.eq.s32.totalorder %v4551_v59, %v5143_v17 }
 0xa5e   : > { %v4763_v62 = vpop.permute.xlu2 %1939  ;;  %v1822_v43 = vadd.f32 %v4681_v52, %v1810_v36  ;;  %v3224_v52 = vsel %vm1838_vm10, 1.0, %v5118_v48 }
 0xa5f   : > { %v1845_v31 = vmul.f32 %v3224_v52, %v4708_v32  ;;  %v3272_v32 = vsel %vm2559_vm15, 1.0, %v5118_v48  ;;  %vm1947_vm15 = vcmp.eq.s32.totalorder %v4551_v59, %v5148_v45 }
 0xa62   : > { %v1831_v12 = vpop.permute.xlu1 %1830 }
 0xa63   : > { %v1833_v5 = vmul.f32 %v3223_v16, %v1831_v12  ;;  %v1989_v29 = vpop.permute.xlu0 %1988 }
 0xa64   : > { %v1991_v44 = vmul.f32 %v3236_v40, %v1989_v29 }
 0xa65   : > { %v1834_v14 = vadd.f32 %v1833_v5, %v1822_v43 }
 0xa66   : > { %v1992_v56 = vadd.f32 %v1991_v44, %v1979_v19 }
 0xa67   : > { %v2001_v13 = vpop.permute.xlu2 %2000  ;;  %v1846_v4 = vadd.f32 %v1845_v31, %v1834_v14  ;;  %v5145_v31 = vld [vmem:[#allocation9_spill] sm:$0xff]  ;;  %v5146_v14 = vld [vmem:[#allocation32_spill] sm:$0xff] }
 0xa68   : > { %v2003_v61 = vmul.f32 %v3237_v54, %v2001_v13  ;;  %vm1923_vm0 = vcmp.eq.s32.totalorder %v4551_v59, %v5145_v31  ;;  %vm1935_vm10 = vcmp.eq.s32.totalorder %v4551_v59, %v5146_v14 }
 0xa6a   : > { %v4783_v39 = vadd.f32 %v2003_v61, %v1992_v56  ;;  %v3231_v56 = vsel %vm1923_vm0, 1.0, %v5118_v48 }
 0xa6c   : > { %v2564_v34 = vpop.permute.xlu1 %2563  ;;  %v2660_v19 = vpop.permute.xlu0 %2659 }
 0xa6d   : > { %v2566_v28 = vmul.f32 %v3272_v32, %v2564_v34  ;;  %v2662_v60 = vmul.f32 %v3278_v33, %v2660_v19  ;;  %v3279_v34 = vsel %vm2667_vm14, 1.0, %v5118_v48 }
 0xa6f   : > { %v2567_v41 = vadd.f32 %v2566_v28, %v2555_v6  ;;  %v2663_v24 = vadd.f32 %v2662_v60, %v2650_v53  ;;  %v5142_v53 = vld [vmem:[#allocation8_spill] sm:$0xff] }
 0xa70   : > { %v4790_v23 = vpop.permute.xlu2 %1963  ;;  %vm1850_vm6 = vcmp.eq.s32.totalorder %v4551_v59, %v5142_v53 }
 0xa71   : > { %v2579_v26 = vadd.f32 %v2578_v7, %v2567_v41  ;;  %v3225_v58 = vsel %vm1850_vm6, 1.0, %v5118_v48  ;;  %v5149_v41 = vld [vmem:[#allocation34_spill] sm:$0xff] }
 0xa72   : > { %vm1959_vm3 = vcmp.eq.s32.totalorder %v4551_v59, %v5149_v41 }
 0xa73   : > { %v3234_v63 = vsel %vm1959_vm3, 1.0, %v5118_v48 }
 0xa74   : > { %v2684_v11 = vpop.permute.xlu0 %2683 }
 0xa75   : > { %v2686_v22 = vmul.f32 %v3280_v21, %v2684_v11  ;;  %v1892_v30 = vpop.permute.xlu1 %1891  ;;  %v1966_v21 = vmul.f32 %v3234_v63, %v4790_v23 }
 0xa76   : > { %v1894_v37 = vmul.f32 %v3228_v1, %v1892_v30 }
 0xa78   : > { %v1895_v6 = vadd.f32 %v1894_v37, %v4727_v46  ;;  %v3281_v46 = vsel %vm2691_vm7, 1.0, %v5118_v48  ;;  %v3238_v37 = vsel %vm2008_vm2, 1.0, %v5118_v48 }
 0xa79   : > { %v2720_v0 = vpop.permute.xlu2 %2719 }
 0xa7a   : > { %v1907_v25 = vadd.f32 %v4705_v49, %v1895_v6  ;;  %v4805_v47 = vmul.f32 %v3283_v50, %v2720_v0  ;;  %v3226_v49 = vsel %vm1862_vm5, 1.0, %v5118_v48  ;;  %v5151_v6 = vld [vmem:[#allocation19_spill] sm:$0xff]  ;;  %vm5160_vm5 = vcmask 130112  }
 0xa7b   : > { %v1869_v9 = vmul.f32 %v3226_v49, %v4759_v3  ;;  %vm2020_vm12 = vcmp.eq.s32.totalorder %v4551_v59, %v5151_v6  ;;  %v5154_v49 = vld [vmem:[#allocation26_spill] sm:$0xff]  ;;  %v5165_v6 = vld [vmem:[#allocation4_spill] sm:$0xff] }
 0xa7c   : > { %v1919_v27 = vadd.f32 %v4717_v38, %v1907_v25  ;;  %v5144_v38 = vld [vmem:[#allocation24_spill] sm:$0xff]  ;;  %v3239_v23 = vsel %vm2020_vm12, 1.0, %v5118_v48  ;;  %vm2056_vm7 = vcmp.eq.s32.totalorder %v4551_v59, %v5154_v49 }
 0xa7d   : > { %v2696_v15 = vpop.permute.xlu0 %2695  ;;  %vm2583_vm9 = vcmp.eq.s32.totalorder %v4551_v59, %v5144_v38 }
 0xa7e   : > { %v2698_v51 = vmul.f32 %v3281_v46, %v2696_v15  ;;  %v1855_v36 = vpop.permute.xlu1 %1854  ;;  %v3274_v40 = vsel %vm2583_vm9, 1.0, %v5118_v48  ;;  %v5152_v15 = vld [vmem:[#allocation35_spill] sm:$0xff]  ;;  %vm5161_vm9 = vcmask 195712  }
 0xa7f   : > { %v1857_v43 = vmul.f32 %v3225_v58, %v1855_v36  ;;  %vm2032_vm13 = vcmp.eq.s32.totalorder %v4551_v59, %v5152_v15  ;;  %v5153_v58 = vld [vmem:[#allocation21_spill] sm:$0xff] }
 0xa80   : > { %vm2044_vm4 = vcmp.eq.s32.totalorder %v4551_v59, %v5153_v58  ;;  %v3240_v36 = vsel %vm2032_vm13, 1.0, %v5118_v48 }
 0xa81   : > { %v1858_v57 = vadd.f32 %v1857_v43, %v1846_v4  ;;  %v2738_v10 = vpop.permute.xlu2 %2737  ;;  %v3232_v4 = vsel %vm1935_vm10, 1.0, %v5118_v48  ;;  %vm5163_vm10 = vcmask 261312  }
 0xa82   : > { %2759 = vmatpush.bf16.msrb.mxu0 %v2738_v10  ;;  %v1942_v61 = vmul.f32 %v3232_v4, %v4763_v62  ;;  %v3233_v62 = vsel %vm1947_vm15, 1.0, %v5118_v48 }
 0xa83   : > { %v1870_v16 = vadd.f32 %v1869_v9, %v1858_v57 }
 0xa85   : > { %v1871_v12 = vpack.c.bf16 %v1870_v16, %v1870_v16  ;;  %v3242_v16 = vsel %vm2056_vm7, 1.0, %v5118_v48 }
 0xa86   : > { %v2049_v5 = vpop.permute.xlu0 %2048 }
 0xa87   : > { %v2588_v29 = vpop.permute.xlu1 %2587  ;;  %3266 = vmatmul.msk.bf16.vlgmr.msra.gmra.mxu0 %vm1492_vm11, %v1871_v12 }
 0xa88   : > { %v2590_v18 = vmul.f32 %v3274_v40, %v2588_v29  ;;  %v5155_v40 = vld [vmem:[#allocation25_spill] sm:$0xff] }
 0xa8a   : > { %v2591_v52 = vadd.f32 %v2590_v18, %v2579_v26 }
 0xa8c   : > { %v2592_v44 = vpack.c.bf16 %v2591_v52, %v2591_v52 }
 0xa8e   : > { %v2061_v3 = vpop.permute.xlu0 %2060  ;;  %3275 = vmatmul.msk.bf16.vlgmr.msra.gmra.mxu1 %vm2313_vm8, %v2592_v44 }
 0xa8f   : > { %v2063_v38 = vmul.f32 %v3242_v16, %v2061_v3 }
 0xa90   : > { %v1928_v54 = vpop.permute.xlu1 %1927 }
 0xa91   : > { %v1930_v13 = vmul.f32 %v3231_v56, %v1928_v54  ;;  %v5156_v56 = vld [vmem:[#allocation27_spill] sm:$0xff] }
 0xa92   : > { %vm2727_vm6 = vcmp.eq.s32.totalorder %v4551_v59, %v5156_v56 }
 0xa93   : > { %v1931_v8 = vadd.f32 %v1930_v13, %v1919_v27  ;;  %v3284_v3 = vsel %vm2727_vm6, 1.0, %v5118_v48 }
 0xa95   : > { %v1943_v20 = vadd.f32 %v1942_v61, %v1931_v8 }
 0xa96   : > { %v2766_v32 = vpop.permute.xlu0 %2765 }
 0xa97   : > { %2778 = vmatpush.bf16.msrb.mxu1 %v2766_v32 }
 0xa99   : > { %v2672_v33 = vpop.permute.xlu1 %2671 }
 0xa9a   : > { %v2674_v19 = vmul.f32 %v3279_v34, %v2672_v33 }
 0xa9c   : > { %v2675_v28 = vadd.f32 %v2674_v19, %v2663_v24 }
 0xa9e   : > { %v2687_v60 = vadd.f32 %v2686_v22, %v2675_v28 }
 0xaa0   : > { %v2699_v7 = vadd.f32 %v2698_v51, %v2687_v60 }
 0xaa2   : > { %v1952_v42 = vpop.permute.xlu1 %1951 }
 0xaa3   : > { %v1954_v26 = vmul.f32 %v3233_v62, %v1952_v42  ;;  %v3344_v62 = vld [vmem:[%s4961_s17 + $0x8] sm:$0xff] }
 0xaa5   : > { %v1955_v11 = vadd.f32 %v1954_v26, %v1943_v20 }
 0xaa7   : > { %v1967_v1 = vadd.f32 %v1966_v21, %v1955_v11  ;;  %v3343_v21 = vld [vmem:[%s4961_s17] sm:$0xff] }
 0xaa9   : > { %v1968_v30 = vpack.c.bf16 %v1967_v1, %v1967_v1  ;;  %v2348_v24 = vpop.f32.mrf.mxu1 }
 0xaab   : > { %v2013_v22 = vpop.permute.xlu1 %2012  ;;  %3276 = vmatmul.msk.bf16.vlgmr.msra.gmra.mxu2 %vm1492_vm11, %v1968_v30 }
 0xaac   : > { %v2015_v50 = vmul.f32 %v3238_v37, %v2013_v22  ;;  %v3565_v22 = vld [vmem:[%s4962_s18] ss:$0 sm:$0xff] }
 0xaae   : > { %v2016_v27 = vadd.f32 %v2015_v50, %v4783_v39  ;;  %v3241_v39 = vsel %vm2044_vm4, 1.0, %v5118_v48 }
 0xaaf   : > { %v2051_v57 = vmul.f32 %v3241_v39, %v2049_v5  ;;  %v3350_v39 = vld [vmem:[%s4967_s23 + $0x8] sm:$0xff] }
 0xab0   : > { %v2963_v16 = vsel %vm2313_vm8, %v3350_v39, 0 }
 0xab1   : > { %v2350_v0 = vpop.f32.mrf.mxu1  ;;  %2971 = vmatpush.bf16.xpose.msra.mxu0 %v2963_v16 }
 0xab2   : > { %v2326_v35 = vpop.f32.mrf.mxu0 }
 0xab3   : > { %v2349_v25 = vadd.f32 %v2348_v24, %v2326_v35 }
 0xab4   : > { %v2025_v53 = vpop.permute.xlu1 %2024 }
 0xab5   : > { %2784 = vst.msk [vmem:[#allocation2] sm:$0xff] %vm980_vm1, %v2349_v25  ;;  %v2027_v17 = vmul.f32 %v3239_v23, %v2025_v53  ;;  %vm2703_vm1 = vcmp.eq.s32.totalorder %v4551_v59, %v5155_v40  ;;  %v3348_v25 = vld [vmem:[%s4965_s21 + $0x18] sm:$0xff]  ;;  %v3347_v53 = vld [vmem:[%s4965_s21 + $0x10] sm:$0xff] }
 0xab6   : > { %v3282_v52 = vsel %vm2703_vm1, 1.0, %v5118_v48 }
 0xab7   : > { %v2028_v46 = vadd.f32 %v2027_v17, %v2016_v27 }
 0xaba   : > { %v2328_v51 = vpop.f32.mrf.mxu0 }
 0xabc   : > { %v2037_v43 = vpop.permute.xlu1 %2036 }
 0xabd   : > { %v2039_v9 = vmul.f32 %v3240_v36, %v2037_v43  ;;  %v3346_v43 = vld [vmem:[%s4965_s21 + $0x8] sm:$0xff] }
 0xabf   : > { %v2040_v10 = vadd.f32 %v2039_v9, %v2028_v46  ;;  %v5169_v46 = vld [vmem:[#allocation3_spill] sm:$0xff]  ;;  %v3345_v9 = vld [vmem:[%s4965_s21] sm:$0xff] }
 0xac1   : > { %v2052_v12 = vadd.f32 %v2051_v57, %v2040_v10 }
 0xac3   : > { %v2064_v29 = vadd.f32 %v2063_v38, %v2052_v12 }
 0xac5   : > { %v2065_v18 = vpack.c.bf16 %v2064_v29, %v2064_v29  ;;  %v2708_v44 = vpop.permute.xlu1 %2707 }
 0xac6   : > { %v2710_v31 = vmul.f32 %v3282_v52, %v2708_v44 }
 0xac7   : > { %3286 = vmatmul.msk.bf16.vlgmr.msrb.gmra.mxu1 %vm1492_vm11, %v2065_v18  ;;  %vm5159_vm11 = vcmask 261120  }
 0xac8   : > { %v2711_v14 = vadd.f32 %v2710_v31, %v2699_v7  ;;  %v2827_v42 = vsel %vm5159_vm11, %v3344_v62, 0  ;;  %vm5162_vm0 = vmmov %vm5159_vm11 }
 0xac9   : > { %2835 = vmatpush.bf16.xpose.msrb.mxu2 %v2827_v42  ;;  %v2824_v11 = vsel %vm5162_vm0, %v3343_v21, 0  ;;  %vm5164_vm14 = vmmov %vm5162_vm0 }
 0xaca   : > { %v2723_v5 = vadd.f32 %v4805_v47, %v2711_v14  ;;  %vm5166_vm15 = vmmov %vm5162_vm0  ;;  %v3566_v14 = vld [vmem:[%s4963_s19] ss:$0 sm:$0xff] }
 0xacb   : > { %vm5167_vm3 = vmmov %vm5162_vm0 }
 0xacc   : > { %v2921_v23 = vsel %vm5167_vm3, %v3348_v25, 0  ;;  %vm5168_vm2 = vmmov %vm5162_vm0 }
 0xacd   : > { %v2732_v54 = vpop.permute.xlu1 %2731  ;;  %2927 = vmatpush.bf16.xpose.msrb.mxu3 %v2921_v23  ;;  %v2918_v27 = vsel %vm5168_vm2, %v3347_v53, 0  ;;  %vm5170_vm12 = vmmov %vm5162_vm0 }
 0xace   : > { %v2734_v13 = vmul.f32 %v3284_v3, %v2732_v54  ;;  %vm5171_vm13 = vmmov %vm5162_vm0 }
 0xacf   : > { %v2915_v49 = vsel %vm5171_vm13, %v3346_v43, 0  ;;  %vm5172_vm4 = vmmov %vm5162_vm0 }
 0xad0   : > { %v2735_v4 = vadd.f32 %v2734_v13, %v2723_v5  ;;  %v2912_v12 = vsel %vm5172_vm4, %v3345_v9, 0  ;;  %v3567_v5 = vld [vmem:[%s4964_s20] ss:$0 sm:$0xff]  ;;  %vm5173_vm11 = vmmov %vm5162_vm0 }
 0xad1   : > { %2836 = vmatpush.bf16.xpose.msrb.mxu2 %v2824_v11 }
 0xad2   : > { %v2736_v61 = vpack.c.bf16 %v2735_v4, %v2735_v4 }
 0xad4   : > { %3285 = vmatmul.msk.bf16.vlgmr.msrb.gmra.mxu0 %vm2313_vm8, %v2736_v61  ;;  %v3349_v61 = vld [vmem:[%s4967_s23] sm:$0xff] }
 0xad5   : > { %2928 = vmatpush.bf16.xpose.msrb.mxu3 %v2918_v27 }
 0xadd   : > { %2929 = vmatpush.bf16.xpose.msrb.mxu3 %v2915_v49 }
 0xade   : > { %v2473_v8 = vpop.f32.mrf.mxu2 }
 0xae5   : > { %2930 = vmatpush.bf16.xpose.msrb.mxu3 %v2912_v12 }
 0xae6   : > { %v2475_v20 = vpop.f32.mrf.mxu2 }
 0xae7   : > { %v3568_v20 = vld [vmem:[%s4966_s22] ss:$0 sm:$0xff] }
 0xb04   : > { %v2492_v2 = vpop.f32.mrf.mxu0 }
 0xb05   : > { %v2493_v32 = vadd.f32 %v2492_v2, %v2473_v8  ;;  %v2960_v8 = vsel %vm2313_vm8, %v3349_v61, 0 }
 0xb06   : > { %2972 = vmatpush.bf16.xpose.msra.mxu0 %v2960_v8 }
 0xb07   : > { %2786 = vrot.lane.b32.xlu1 %v2493_v32, %s5157_s6 }
 0xb0b   : > { %v2617_v34 = vpop.f32.mrf.mxu1 }
 0xb0c   : > { %v2494_v33 = vpop.f32.mrf.mxu0 }
 0xb13   : > { %v2619_v19 = vpop.f32.mrf.mxu1 }
 0xb2e   : > { %v2636_v59 = vpop.f32.mrf.mxu2 }
 0xb2f   : > { %v2637_v28 = vadd.f32 %v2636_v59, %v2617_v34  ;;  %v3569_v59 = vld [vmem:[%s4968_s24] ss:$0 sm:$0xff] }
 0xb31   : > { %2791 = vrot.lane.b32.xlu2 %v2637_v28, %s5057_s4 }
 0xb36   : > { %v2638_v48 = vpop.f32.mrf.mxu2 }
 0xb44   : > { %v2780_v47 = vpop.f32.mrf.mxu1 }
 0xb4c   : > { %v2782_v60 = vpop.f32.mrf.mxu1 }
 0xb51   : > { %v2761_v45 = vpop.f32.mrf.mxu0 }
 0xb52   : > { %v2781_v7 = vadd.f32 %v2780_v47, %v2761_v45 }
 0xb54   : > { %2796 = vrot.lane.b32.xlu0 %v2781_v7, %s5158_s3 }
 0xb59   : > { %v2763_v41 = vpop.f32.mrf.mxu0 }
 0xb79   : > { %v2787_v26 = vpop.permute.xlu1 %2786 }
 0xb7a   : > { %2789 = vst.msk [vmem:[#allocation2] sm:$0xff] %vm5160_vm5, %v2787_v26  ;;  %vm5174_vm5 = vmmov %vm5162_vm0 }
 0xb8b   : > { %v2792_v63 = vpop.permute.xlu2 %2791 }
 0xb8c   : > { %2794 = vst.msk [vmem:[#allocation2] sm:$0xff] %vm5161_vm9, %v2792_v63  ;;  %vm5175_vm9 = vmmov %vm5162_vm0 }
 0xbc6   : > { %v2797_v1 = vpop.permute.xlu0 %2796 }
 0xbc7   : > { %2799 = vst.msk [vmem:[#allocation2] sm:$0xff] %vm5163_vm10, %v2797_v1 }
 0xbce   : > { %v2800_v30 = vld [vmem:[#allocation2] sm:$0xff] }
 0xbcf   : > { %v2805_v24 = vpack.c.bf16 %v2800_v30, %v2800_v30 }
 0xbd1   : > { %3295 = vmatmul.msk.bf16.vlgmr.msrb.gmra.mxu2 %vm5164_vm14, %v2805_v24  ;;  %vm5176_vm14 = vmmov %vm5168_vm2 }
 0xc54   : > { %v2838_v55 = vpop.f32.mrf.mxu2 }
 0xc55   : > { %v2839_v37 = vadd.f32 %v3565_v22, %v2838_v55 }
 0xc57   : > { %v2842_v50 = vadd.f32 %v2839_v37, %v5165_v6  ;;  %v3570_v6 = vld [vmem:[%s4969_s25] ss:$0 sm:$0xff] }
 0xc59   : > { %v2845_v0 = vsel %vm5166_vm15, %v2842_v50, 0.0 }
 0xc5a   : > { %2846 = vadd.xlane.f32.xlu1 %v2845_v0  ;;  %v3571_v0 = vld [vmem:[%s4970_s26] ss:$0 sm:$0xff] }
 0xc5c   : > { %v2840_v35 = vpop.f32.mrf.mxu2 }
 0xccd   : > { %v2847_v17 = vpop.xlane.xlu1 %2846 }
 0xcce   : > { %v2848_v15 = vmul.f32 %v2847_v17, %v5169_v46 }
 0xcd0   : > { %v2849_v51 = vsub.f32 %v2842_v50, %v2848_v15 }
 0xcd2   : > { %v2850_v58 = vmul.f32 %v2849_v51, %v2849_v51 }
 0xcd4   : > { %v2851_v36 = vsel %vm5170_vm12, %v2850_v58, 0.0 }
 0xcd5   : > { %2852 = vadd.xlane.f32.xlu2 %v2851_v36 }
 0xd48   : > { %v2853_v57 = vpop.xlane.xlu2 %2852 }
 0xd49   : > { %v2854_v10 = vmul.f32 %v2853_v57, %v5169_v46 }
 0xd4b   : > { %v2855_v38 = vadd.f32 1e-05, %v2854_v10 }
 0xd4d   : > { %3596 = vrsqrt.f32 %v2855_v38  ;;  %vm2862_vm1 = vweird.f32 %v2855_v38 }
 0xd53   : > { %v3597_v40 = vpop.eup %3596 }
 0xd54   : > { %v2857_v29 = vmul.f32 %v3597_v40, %v2855_v38  ;;  %vm2863_vm7 = vweird.f32 %v3597_v40 }
 0xd55   : > { %vm2864_vm6 = vmor %vm2862_vm1, %vm2863_vm7 }
 0xd56   : > { %v2858_v18 = vmul.f32 %v3597_v40, %v2857_v29 }
 0xd58   : > { %v2859_v52 = vmul.f32 0.5, %v2858_v18 }
 0xd5a   : > { %v2860_v44 = vsub.f32 1.5, %v2859_v52 }
 0xd5c   : > { %v2861_v31 = vmul.f32 %v3597_v40, %v2860_v44 }
 0xd5e   : > { %v2865_v56 = vsel %vm2864_vm6, %v3597_v40, %v2861_v31 }
 0xd5f   : > { %v2866_v3 = vmul.f32 %v2865_v56, %v2849_v51 }
 0xd61   : > { %v2870_v54 = vmul.f32 %v3566_v14, %v2866_v3 }
 0xd63   : > { %v2874_v13 = vadd.f32 %v3567_v5, %v2870_v54 }
 0xd65   : > { %v2883_v4 = vpack.c.bf16 %v2874_v13, %v2874_v13 }
 0xd67   : > { %3312 = vmatmul.msk.bf16.vlgmr.msrb.gmra.mxu3 %vm5173_vm11, %v2883_v4 }
 0xdea   : > { %v2932_v2 = vpop.f32.mrf.mxu3 }
 0xdeb   : > { %v2933_v32 = vadd.f32 %v3568_v20, %v2932_v2 }
 0xded   : > { %v2936_v34 = vmax.f32 %v2933_v32, 0.0 }
 0xdef   : > { %v2941_v33 = vpack.c.bf16 %v2936_v34, %v2936_v34 }
 0xdf1   : > { %3321 = vmatmul.msk.bf16.vlgmr.msra.gmra.mxu0 %vm2313_vm8, %v2941_v33 }
 0xdf2   : > { %v2934_v19 = vpop.f32.mrf.mxu3 }
 0xe6e   : > { %v2974_v28 = vpop.f32.mrf.mxu0 }
 0xe6f   : > { %v2975_v48 = vadd.f32 %v3569_v59, %v2974_v28 }
 0xe71   : > { %v2978_v47 = vadd.f32 %v2975_v48, %v2874_v13 }
 0xe73   : > { %v2981_v60 = vsel %vm5174_vm5, %v2978_v47, 0.0 }
 0xe74   : > { %2982 = vadd.xlane.f32.xlu0 %v2981_v60 }
 0xe76   : > { %v2976_v45 = vpop.f32.mrf.mxu0 }
 0xee7   : > { %v2983_v7 = vpop.xlane.xlu0 %2982 }
 0xee8   : > { %v2984_v41 = vmul.f32 %v2983_v7, %v5169_v46 }
 0xeea   : > { %v2985_v62 = vsub.f32 %v2978_v47, %v2984_v41 }
 0xeec   : > { %v2986_v42 = vmul.f32 %v2985_v62, %v2985_v62 }
 0xeee   : > { %v2987_v26 = vsel %vm5175_vm9, %v2986_v42, 0.0 }
 0xeef   : > { %2988 = vadd.xlane.f32.xlu1 %v2987_v26 }
 0xf62   : > { %v2989_v63 = vpop.xlane.xlu1 %2988 }
 0xf63   : > { %v2990_v21 = vmul.f32 %v2989_v63, %v5169_v46 }
 0xf65   : > { %v2991_v11 = vadd.f32 1e-05, %v2990_v21 }
 0xf67   : > { %3598 = vrsqrt.f32 %v2991_v11  ;;  %vm2998_vm0 = vweird.f32 %v2991_v11 }
 0xf6d   : > { %v3599_v1 = vpop.eup %3598 }
 0xf6e   : > { %v2993_v30 = vmul.f32 %v3599_v1, %v2991_v11  ;;  %vm2999_vm8 = vweird.f32 %v3599_v1 }
 0xf6f   : > { %vm3000_vm10 = vmor %vm2998_vm0, %vm2999_vm8 }
 0xf70   : > { %v2994_v24 = vmul.f32 %v3599_v1, %v2993_v30 }
 0xf72   : > { %v2995_v22 = vmul.f32 0.5, %v2994_v24 }
 0xf74   : > { %v2996_v55 = vsub.f32 1.5, %v2995_v22 }
 0xf76   : > { %v2997_v37 = vmul.f32 %v3599_v1, %v2996_v55 }
 0xf78   : > { %v3001_v50 = vsel %vm3000_vm10, %v3599_v1, %v2997_v37 }
 0xf79   : > { %v3002_v35 = vmul.f32 %v3001_v50, %v2985_v62 }
 0xf7b   : > { %v3006_v25 = vmul.f32 %v3570_v6, %v3002_v35 }
 0xf7d   : > { %v3010_v23 = vadd.f32 %v3571_v0, %v3006_v25 }
 0xf7f   : > { %3011 = vst.msk [vmem:[%s867_s8] sm:$0xff] %vm5176_vm14, %v3010_v23 }
 0xf80 PF: > { %s37_s7 = sadd.s32 1, %s3606_s7  }
 0xf81   : > { %p34_p4 = scmp.ge.s32.totalorder %s37_s7, 4  }
 0xf83   :  { %36 = sbr.rel (!%p34_p4) target bundleno = 13 (0xd), region = 167 }

</bundles_post_ra>
